<compile_context>
chip_gen: v7x
topology: tpu7x:2x2x1
jax: 0.10.0
libtpu: 0.0.40
codegen_flags: <defaults>
</compile_context>

<pallas_src>
import functools
import math

import jax
import jax.numpy as jnp
from jax.experimental import pallas as pl
from jax.experimental.pallas import tpu as pltpu


# ----------------------------------------------------------------------------
# Per-generation knobs
# ----------------------------------------------------------------------------
@functools.lru_cache(maxsize=None)
def _vmem_limit_bytes():
    """~75% of physical VMEM (headroom for Mosaic scratch + double-buffered IO):
    ~96 MiB on v5e/v6e (128 MiB physical), ~48 MiB on v7x (64 MiB physical)."""
    cap = 64 * 1024 * 1024
    try:
        cap = int(pltpu.get_tpu_info().vmem_capacity_bytes)
    except Exception:
        pass
    return (cap * 3) // 4


@functools.lru_cache(maxsize=None)
def _weight_pipeline_mode():
    """pl.Buffered(1) if this Pallas build supports it (probed once with a tiny kernel).

    Resident (constant-index) weights do not need a second pipeline buffer; single
    buffering halves their VMEM footprint (matters most on v7x's 64 MiB VMEM)."""
    try:
        mode = pl.Buffered(1)

        def _probe(w_ref, x_ref, o_ref):
            o_ref[...] = x_ref[...] + w_ref[...]

        out = pl.pallas_call(
            _probe,
            out_shape=jax.ShapeDtypeStruct((16, 128), jnp.float32),
            grid=(2,),
            in_specs=[pl.BlockSpec((8, 128), lambda i: (0, 0), pipeline_mode=mode),
                      pl.BlockSpec((8, 128), lambda i: (i, 0))],
            out_specs=pl.BlockSpec((8, 128), lambda i: (i, 0)),
        )(jnp.ones((8, 128), jnp.float32), jnp.zeros((16, 128), jnp.float32))
        jax.block_until_ready(out)
        return mode
    except Exception:
        return None


def _resident_spec(block_shape, index_map):
    """BlockSpec for a VMEM-resident (constant index) weight; single-buffered if possible."""
    mode = _weight_pipeline_mode()
    if mode is not None:
        return pl.BlockSpec(block_shape, index_map, pipeline_mode=mode)
    return pl.BlockSpec(block_shape, index_map)


def _pick_tile(n, target, multiple):
    """Largest tile <= target that divides n and is a multiple of `multiple`; n if none."""
    if n <= target:
        return n
    t = (target // multiple) * multiple
    while t >= multiple:
        if n % t == 0:
            return t
        t -= multiple
    return n


# ----------------------------------------------------------------------------
# Kernels
# ----------------------------------------------------------------------------
def _head_proj_kernel(x_ref, w_ref, b_ref, *out_refs, n_heads, mm_dtype):
    """Fused projection x @ [W_0 | ... | W_{n-1}] (+bias); each output stored head-major.

    x_ref: (1, TR, D) f32.  w_ref: (D, n*D) in mm_dtype.  out_refs[j]: (1, H, TR, dh).
    The head split happens ONCE here (amortized over the whole flash attention loop);
    for dh that is a multiple of 128 the per-head slices are lane-aligned and free.
    """
    x = x_ref[0]
    d = x.shape[-1]
    dh = d // n_heads
    y = jnp.dot(x.astype(mm_dtype), w_ref[...],
                preferred_element_type=jnp.float32) + b_ref[...]       # (TR, n*D)
    for j, o_ref in enumerate(out_refs):
        base = j * d
        for h in range(n_heads):
            o_ref[0, h] = y[:, base + h * dh: base + (h + 1) * dh].astype(o_ref.dtype)


def _flash_attn_add_ln_kernel(xres_ref, q_ref, k_ref, v_ref, mask_ref,
                              wo_ref, bo_ref, g_ref, bln_ref, o_ref,
                              m_scr, l_scr, acc_scr,
                              *, eps, mm_dtype, approx_recip):
    """Online-softmax attention for one (batch, q-tile, k-tile) grid step.

    q_ref: (1, H, TQ, dh), pre-scaled by 1/sqrt(dh).  k/v_ref: (1, H, TK, dh).
    mask_ref: (1, 1|TQ, TK) additive mask (0 / -1e9).  At the last k-tile the context is
    normalized, projected with head-major Wo, residual-added and LayerNorm'ed.
    """
    ki = pl.program_id(2)

    @pl.when(ki == 0)
    def _init():
        m_scr[...] = jnp.full(m_scr.shape, -jnp.inf, m_scr.dtype)
        l_scr[...] = jnp.zeros(l_scr.shape, l_scr.dtype)
        acc_scr[...] = jnp.zeros(acc_scr.shape, acc_scr.dtype)

    q_h = q_ref[0]                                   # (H, TQ, dh)
    k_h = k_ref[0]                                   # (H, TK, dh)
    v_h = v_ref[0]
    s = jnp.einsum("hqd,hkd->hqk", q_h, k_h, preferred_element_type=jnp.float32)
    s = s + mask_ref[0][None, :, :]                  # one VPU add; no compare/select

    m_prev = m_scr[...]
    m_new = jnp.maximum(m_prev, jnp.max(s, axis=-1, keepdims=True))
    alpha = jnp.exp(m_prev - m_new)
    p = jnp.exp(s - m_new)
    l_scr[...] = alpha * l_scr[...] + jnp.sum(p, axis=-1, keepdims=True)
    acc_scr[...] = alpha * acc_scr[...] + jnp.einsum(
        "hqk,hkd->hqd", p.astype(mm_dtype), v_h, preferred_element_type=jnp.float32)
    m_scr[...] = m_new

    @pl.when(ki == pl.num_programs(2) - 1)
    def _finalize():
        x = xres_ref[0]                                               # (TQ, D) f32 residual
        ctx = acc_scr[...] * pl.reciprocal(l_scr[...], approx=approx_recip)
        o_heads = jnp.einsum("hqd,hde->hqe", ctx.astype(mm_dtype), wo_ref[...],
                             preferred_element_type=jnp.float32)      # (H, TQ, D)
        attn = jnp.sum(o_heads, axis=0) + bo_ref[...]                 # == concat(ctx) @ Wo
        z = x + attn
        mean = jnp.mean(z, axis=-1, keepdims=True)
        var = jnp.mean((z - mean) ** 2, axis=-1, keepdims=True)
        o_ref[0] = ((z - mean) * jax.lax.rsqrt(var + eps) * g_ref[...]
                    + bln_ref[...]).astype(o_ref.dtype)


def _ffn_add_ln_kernel(x_ref, w1_ref, b1_ref, w2_ref, b2_ref, g_ref, bln_ref, o_ref,
                       *, eps, mm_dtype):
    """relu(x@W1+b1)@W2+b2, fused residual add + LayerNorm, on a (TM, D) row tile."""
    x = x_ref[...]                                                    # (TM, D) f32
    h = jnp.dot(x.astype(mm_dtype), w1_ref[...],
                preferred_element_type=jnp.float32) + b1_ref[...]
    h = jnp.maximum(h, 0.0)
    ff = jnp.dot(h.astype(mm_dtype), w2_ref[...],
                 preferred_element_type=jnp.float32) + b2_ref[...]
    z = x + ff
    mean = jnp.mean(z, axis=-1, keepdims=True)
    var = jnp.mean((z - mean) ** 2, axis=-1, keepdims=True)
    o_ref[...] = ((z - mean) * jax.lax.rsqrt(var + eps) * g_ref[...]
                  + bln_ref[...]).astype(o_ref.dtype)


# ----------------------------------------------------------------------------
# pallas_call wrappers
# ----------------------------------------------------------------------------
def _project_heads(x, w, b, n_out, n_heads, *, row_tile, mm_dtype, vmem_limit):
    """x (B,S,D) @ fused W (D, n_out*D) -> n_out head-major tensors (B, H, S, dh)."""
    B, S, D = x.shape
    dh = D // n_heads
    TR = _pick_tile(S, row_tile, 8)
    nr = S // TR
    mm_bytes = jnp.dtype(mm_dtype).itemsize
    cost = pl.CostEstimate(
        flops=int(2 * B * S * D * D * n_out),
        transcendentals=0,
        bytes_accessed=int(B * S * D * 4 + w.size * mm_bytes + n_out * B * S * D * mm_bytes))
    outs = pl.pallas_call(
        functools.partial(_head_proj_kernel, n_heads=n_heads, mm_dtype=mm_dtype),
        out_shape=tuple(jax.ShapeDtypeStruct((B, n_heads, S, dh), mm_dtype)
                        for _ in range(n_out)),
        grid=(B, nr),
        in_specs=[
            pl.BlockSpec((1, TR, D), lambda bb, r: (bb, r, 0)),
            _resident_spec((D, n_out * D), lambda bb, r: (0, 0)),
            _resident_spec((1, n_out * D), lambda bb, r: (0, 0)),
        ],
        out_specs=tuple(pl.BlockSpec((1, n_heads, TR, dh), lambda bb, r: (bb, 0, r, 0))
                        for _ in range(n_out)),
        compiler_params=pltpu.CompilerParams(
            dimension_semantics=("parallel", "parallel"),
            vmem_limit_bytes=vmem_limit),
        cost_estimate=cost,
    )(x, w, b)
    if not isinstance(outs, (list, tuple)):
        outs = (outs,)
    return tuple(outs)


def _flash_attention_add_ln(x_res, q_hm, k_hm, v_hm, mask_add, wo_h, bo, gamma, beta, *,
                            q_tile, k_tile, eps, mm_dtype, approx_recip, vmem_limit):
    B, Sq, D = x_res.shape
    _, n_heads, Sk, dh = k_hm.shape
    TQ = _pick_tile(Sq, q_tile, 8)
    TK = _pick_tile(Sk, k_tile, 128)   # mask's lane axis is tiled by TK -> 128-multiple
    nq, nk = Sq // TQ, Sk // TK
    Bm, Sqm, _ = mask_add.shape
    TQm = TQ if Sqm > 1 else 1

    def qres_index(b, qi, ki):
        return (b, qi, 0)

    def q_index(b, qi, ki):
        return (b, 0, qi, 0)

    def kv_index(b, qi, ki):
        return (b, 0, ki, 0)

    def mask_index(b, qi, ki):
        return (b if Bm > 1 else 0, qi if Sqm > 1 else 0, ki)

    mm_bytes = jnp.dtype(mm_dtype).itemsize
    cost = pl.CostEstimate(
        flops=int(B * (4 * Sq * Sk * D + 2 * Sq * D * D)),
        transcendentals=int(B * n_heads * Sq * Sk),
        bytes_accessed=int(2 * B * Sq * D * 4 + B * Sq * D * mm_bytes
                           + 2 * B * Sk * D * mm_bytes + mask_add.size * 4
                           + D * D * mm_bytes))

    kernel = functools.partial(_flash_attn_add_ln_kernel, eps=eps, mm_dtype=mm_dtype,
                               approx_recip=approx_recip)
    return pl.pallas_call(
        kernel,
        out_shape=jax.ShapeDtypeStruct((B, Sq, D), jnp.float32),
        grid=(B, nq, nk),
        in_specs=[
            pl.BlockSpec((1, TQ, D), qres_index),                            # residual
            pl.BlockSpec((1, n_heads, TQ, dh), q_index),                     # Q (pre-scaled)
            pl.BlockSpec((1, n_heads, TK, dh), kv_index),                    # K
            pl.BlockSpec((1, n_heads, TK, dh), kv_index),                    # V
            pl.BlockSpec((1, TQm, TK), mask_index),                          # additive mask
            _resident_spec((n_heads, dh, D), lambda b, qi, ki: (0, 0, 0)),   # Wo head-major
            _resident_spec((1, D), lambda b, qi, ki: (0, 0)),                # bo
            _resident_spec((1, D), lambda b, qi, ki: (0, 0)),                # LN gamma
            _resident_spec((1, D), lambda b, qi, ki: (0, 0)),                # LN beta
        ],
        out_specs=pl.BlockSpec((1, TQ, D), qres_index),
        scratch_shapes=[
            pltpu.VMEM((n_heads, TQ, 1), jnp.float32),                       # running max
            pltpu.VMEM((n_heads, TQ, 1), jnp.float32),                       # running denom
            pltpu.VMEM((n_heads, TQ, dh), jnp.float32),                      # context acc
        ],
        compiler_params=pltpu.CompilerParams(
            dimension_semantics=("parallel", "parallel", "arbitrary"),
            vmem_limit_bytes=vmem_limit),
        cost_estimate=cost,
    )(x_res, q_hm, k_hm, v_hm, mask_add, wo_h, bo, gamma, beta)


def _feed_forward_add_ln(x, p_ff, gamma, beta, *, eps, mm_dtype, vmem_limit):
    """FFN + residual add + LayerNorm, row-tiled over B*S with VMEM-resident weights."""
    B, S, D = x.shape
    R = B * S
    FF = p_ff["w1"].shape[1]
    # per-generation row tile: biggest that keeps the f32 (TM, FF) hidden + IO under budget
    budget = max(vmem_limit // 3, 1 << 20)
    per_row_bytes = 4 * (FF + 4 * D)
    tm_cap = max(8, min(1024, budget // per_row_bytes))
    tm_cap = max(8, (tm_cap // 8) * 8)
    if R <= tm_cap:
        TM = R
    else:
        TM = _pick_tile(R, tm_cap, 8)
        if TM > tm_cap:
            TM = tm_cap   # no friendly divisor: partial last tile, padded rows discarded
    x2 = x.reshape(R, D)
    mm_bytes = jnp.dtype(mm_dtype).itemsize
    cost = pl.CostEstimate(flops=int(4 * R * D * FF), transcendentals=0,
                           bytes_accessed=int(2 * R * D * 4 + 2 * D * FF * mm_bytes))
    out = pl.pallas_call(
        functools.partial(_ffn_add_ln_kernel, eps=eps, mm_dtype=mm_dtype),
        out_shape=jax.ShapeDtypeStruct((R, D), jnp.float32),
        grid=(pl.cdiv(R, TM),),
        in_specs=[
            pl.BlockSpec((TM, D), lambda r: (r, 0)),
            _resident_spec((D, FF), lambda r: (0, 0)),
            _resident_spec((1, FF), lambda r: (0, 0)),
            _resident_spec((FF, D), lambda r: (0, 0)),
            _resident_spec((1, D), lambda r: (0, 0)),
            _resident_spec((1, D), lambda r: (0, 0)),
            _resident_spec((1, D), lambda r: (0, 0)),
        ],
        out_specs=pl.BlockSpec((TM, D), lambda r: (r, 0)),
        compiler_params=pltpu.CompilerParams(
            dimension_semantics=("parallel",), vmem_limit_bytes=vmem_limit),
        cost_estimate=cost,
    )(x2, p_ff["w1"], p_ff["b1"], p_ff["w2"], p_ff["b2"], gamma, beta)
    return out.reshape(B, S, D)


# ----------------------------------------------------------------------------
# Mask prep, one-time weight packing, full layer
# ----------------------------------------------------------------------------
def _prep_additive_mask(mask, B, Sq, Sk):
    """PyTorch-style mask (broadcastable to (B,1,Sq,Sk)) -> compact ADDITIVE f32 mask
    (1|B, 1|Sq, Sk) with 0 (keep) / -1e9 (masked).  Broadcast dims stay size 1 so the
    full (B,Sq,Sk) mask is never materialized in HBM."""
    m = jnp.asarray(mask)
    if m.ndim == 4:
        m = m[:, 0]
    elif m.ndim == 2:
        m = m[None]
    assert m.ndim == 3
    Bm, Sqm, Skm = m.shape
    assert Bm in (1, B) and Sqm in (1, Sq) and Skm in (1, Sk)
    if Skm != Sk:
        m = jnp.broadcast_to(m, (Bm, Sqm, Sk))
    return jnp.where(m == 0, -1e9, 0.0).astype(jnp.float32)


def pack_decoder_params(params, n_heads, mm_dtype=jnp.bfloat16):
    """Pack / cast all weights ONCE (outside the forward): fused QKV / KV projections,
    1/sqrt(dh) folded into Wq & bq, head-major Wo, matmul operands in mm_dtype (bf16 by
    default), biases / LN params in f32."""
    sa, ca, ff = params["self_attn"], params["cross_attn"], params["ff"]
    D = sa["wq"].shape[0]
    dh = D // n_heads
    scale = 1.0 / math.sqrt(dh)

    def row(b):
        return jnp.asarray(b, jnp.float32).reshape(1, -1)

    packed_sa = {
        "w_qkv": jnp.concatenate([sa["wq"] * scale, sa["wk"], sa["wv"]],
                                 axis=1).astype(mm_dtype),
        "b_qkv": jnp.concatenate([row(sa["bq"]) * scale, row(sa["bk"]), row(sa["bv"])],
                                 axis=1),
        "wo_h": sa["wo"].reshape(n_heads, dh, D).astype(mm_dtype),
        "bo": row(sa["bo"]),
    }
    packed_ca = {
        "w_q": (ca["wq"] * scale).astype(mm_dtype),
        "b_q": row(ca["bq"]) * scale,
        "w_kv": jnp.concatenate([ca["wk"], ca["wv"]], axis=1).astype(mm_dtype),
        "b_kv": jnp.concatenate([row(ca["bk"]), row(ca["bv"])], axis=1),
        "wo_h": ca["wo"].reshape(n_heads, dh, D).astype(mm_dtype),
        "bo": row(ca["bo"]),
    }
    return {
        "mm_dtype": mm_dtype,
        "n_heads": n_heads,
        "self_attn": packed_sa,
        "cross_attn": packed_ca,
        "ff": {"w1": ff["w1"].astype(mm_dtype), "b1": row(ff["b1"]),
               "w2": ff["w2"].astype(mm_dtype), "b2": row(ff["b2"])},
        "ln1_g": row(params["ln1_g"]), "ln1_b": row(params["ln1_b"]),
        "ln2_g": row(params["ln2_g"]), "ln2_b": row(params["ln2_b"]),
        "ln3_g": row(params["ln3_g"]), "ln3_b": row(params["ln3_b"]),
    }


def decoder_layer(resid, encoding_out, source_mask, target_mask, packed, *,
                  q_tile=None, k_tile=None, kv_row_tile=512, eps=1e-5,
                  approx_softmax_recip=True):
    """Matches DecoderLayer.forward (dropout == identity / eval mode).

    `packed` comes from pack_decoder_params(): weights are packed & cast once, outside
    the forward, so no per-call weight reshuffling sits on the critical path."""
    B, Sq, D = resid.shape
    Sk = encoding_out.shape[1]
    H = packed["n_heads"]
    mm_dtype = packed["mm_dtype"]
    assert D % H == 0
    vmem = _vmem_limit_bytes()
    if q_tile is None:
        q_tile = 256
    if k_tile is None:
        k_tile = 512 if vmem >= 80 * 1024 * 1024 else 256   # bigger tiles on v5e/v6e

    tgt_mask = _prep_additive_mask(target_mask, B, Sq, Sq)
    src_mask = _prep_additive_mask(source_mask, B, Sq, Sk)
    akw = dict(q_tile=q_tile, k_tile=k_tile, eps=eps, mm_dtype=mm_dtype,
               approx_recip=approx_softmax_recip, vmem_limit=vmem)

    # ---- self-attention + add + LN1 (fused QKV projection, flash attention) ----
    sa = packed["self_attn"]
    q_hm, k_hm, v_hm = _project_heads(resid, sa["w_qkv"], sa["b_qkv"], 3, H,
                                      row_tile=kv_row_tile, mm_dtype=mm_dtype,
                                      vmem_limit=vmem)
    resid = _flash_attention_add_ln(resid, q_hm, k_hm, v_hm, tgt_mask,
                                    sa["wo_h"], sa["bo"],
                                    packed["ln1_g"], packed["ln1_b"], **akw)

    # ---- cross-attention + add + LN2 ----
    # TODO(synk): in decode loops the encoder K/V projection is loop-invariant; cache it.
    ca = packed["cross_attn"]
    (q_hm,) = _project_heads(resid, ca["w_q"], ca["b_q"], 1, H,
                             row_tile=kv_row_tile, mm_dtype=mm_dtype, vmem_limit=vmem)
    k_hm, v_hm = _project_heads(encoding_out, ca["w_kv"], ca["b_kv"], 2, H,
                                row_tile=kv_row_tile, mm_dtype=mm_dtype, vmem_limit=vmem)
    resid = _flash_attention_add_ln(resid, q_hm, k_hm, v_hm, src_mask,
                                    ca["wo_h"], ca["bo"],
                                    packed["ln2_g"], packed["ln2_b"], **akw)

    # ---- FFN + add + LN3 ----
    resid = _feed_forward_add_ln(resid, packed["ff"], packed["ln3_g"], packed["ln3_b"],
                                 eps=eps, mm_dtype=mm_dtype, vmem_limit=vmem)
    return resid


# ----------------------------------------------------------------------------
# Pure-JAX reference (for correctness check)
# ----------------------------------------------------------------------------
def _ref_mha(x_q, x_kv, mask, p, n_heads):
    B, Sq, D = x_q.shape
    Sk = x_kv.shape[1]
    dh = D // n_heads
    q = x_q @ p["wq"] + p["bq"]
    k = x_kv @ p["wk"] + p["bk"]
    v = x_kv @ p["wv"] + p["bv"]
    q = q.reshape(B, Sq, n_heads, dh).transpose(0, 2, 1, 3)
    k = k.reshape(B, Sk, n_heads, dh).transpose(0, 2, 1, 3)
    v = v.reshape(B, Sk, n_heads, dh).transpose(0, 2, 1, 3)
    s = jnp.einsum("bhqd,bhkd->bhqk", q, k) / math.sqrt(dh)
    s = jnp.where(mask[:, None, :, :] == 0, -1e9, s)
    p_attn = jax.nn.softmax(s, axis=-1)
    ctx = jnp.einsum("bhqk,bhkd->bhqd", p_attn, v).transpose(0, 2, 1, 3).reshape(B, Sq, D)
    return ctx @ p["wo"] + p["bo"]


def _ref_ln(z, g, b, eps=1e-5):
    m = jnp.mean(z, axis=-1, keepdims=True)
    v = jnp.mean((z - m) ** 2, axis=-1, keepdims=True)
    return (z - m) / jnp.sqrt(v + eps) * g + b


def _ref_decoder(resid, enc, src_m4, tgt_m4, params, n_heads):
    B, Sq, _ = resid.shape
    Sk = enc.shape[1]
    tgt_m = jnp.broadcast_to(tgt_m4, (B, 1, Sq, Sq))[:, 0]
    src_m = jnp.broadcast_to(src_m4, (B, 1, Sq, Sk))[:, 0]
    x = _ref_ln(resid + _ref_mha(resid, resid, tgt_m, params["self_attn"], n_heads),
                params["ln1_g"], params["ln1_b"])
    x = _ref_ln(x + _ref_mha(x, enc, src_m, params["cross_attn"], n_heads),
                params["ln2_g"], params["ln2_b"])
    ff = jnp.maximum(x @ params["ff"]["w1"] + params["ff"]["b1"], 0.0) @ params["ff"]["w2"] \
        + params["ff"]["b2"]
    return _ref_ln(x + ff, params["ln3_g"], params["ln3_b"])


# ----------------------------------------------------------------------------
# Parameter init + main
# ----------------------------------------------------------------------------
def init_params(key, dim, ff_dim):
    ks = jax.random.split(key, 16)

    def lin(k, din, dout):
        return 0.05 * jax.random.normal(k, (din, dout), jnp.float32)

    def attn_params(k0, k1, k2, k3):
        return {
            "wq": lin(k0, dim, dim), "bq": jnp.zeros((1, dim), jnp.float32),
            "wk": lin(k1, dim, dim), "bk": jnp.zeros((1, dim), jnp.float32),
            "wv": lin(k2, dim, dim), "bv": jnp.zeros((1, dim), jnp.float32),
            "wo": lin(k3, dim, dim), "bo": jnp.zeros((1, dim), jnp.float32),
        }

    return {
        "self_attn": attn_params(ks[0], ks[1], ks[2], ks[3]),
        "cross_attn": attn_params(ks[4], ks[5], ks[6], ks[7]),
        "ff": {
            "w1": lin(ks[8], dim, ff_dim), "b1": jnp.zeros((1, ff_dim), jnp.float32),
            "w2": lin(ks[9], ff_dim, dim), "b2": jnp.zeros((1, dim), jnp.float32),
        },
        "ln1_g": jnp.ones((dim,), jnp.float32), "ln1_b": jnp.zeros((dim,), jnp.float32),
        "ln2_g": jnp.ones((dim,), jnp.float32), "ln2_b": jnp.zeros((dim,), jnp.float32),
        "ln3_g": jnp.ones((dim,), jnp.float32), "ln3_b": jnp.zeros((dim,), jnp.float32),
    }


if __name__ == "__main__":
    B, S_TGT, S_SRC, D, H, FF = 2, 256, 256, 128, 4, 256
    key = jax.random.PRNGKey(0)
    k_x, k_e, k_p = jax.random.split(key, 3)

    resid = jax.random.normal(k_x, (B, S_TGT, D), jnp.float32)
    encoding_out = jax.random.normal(k_e, (B, S_SRC, D), jnp.float32)
    source_mask = jnp.ones((B, 1, 1, S_SRC), jnp.float32)                       # key padding
    target_mask = jnp.tril(jnp.ones((S_TGT, S_TGT), jnp.float32))[None, None]   # causal

    params = init_params(k_p, D, FF)
    ref = _ref_decoder(resid, encoding_out, source_mask, target_mask, params, H)

    # f32 path, exact softmax reciprocal: strict check.  q_tile = k_tile = 128 makes the
    # flash grid (B, 2, 2), exercising the multi-(q,k)-tile online-softmax path.
    packed_f32 = pack_decoder_params(params, H, mm_dtype=jnp.float32)
    out = decoder_layer(resid, encoding_out, source_mask, target_mask, packed_f32,
                        q_tile=128, k_tile=128, approx_softmax_recip=False)
    out = jax.block_until_ready(out)
    assert out.shape == (B, S_TGT, D)
    err = float(jnp.max(jnp.abs(out - ref)))
    assert jnp.allclose(out, ref, atol=1e-4, rtol=1e-4), f"f32 max err {err}"

    # production path: bf16 matmul operands (f32 accumulation), approx softmax reciprocal.
    packed_bf16 = pack_decoder_params(params, H)   # bf16 is the default
    out_bf16 = decoder_layer(resid, encoding_out, source_mask, target_mask, packed_bf16,
                             q_tile=128, k_tile=128)
    out_bf16 = jax.block_until_ready(out_bf16)
    assert bool(jnp.all(jnp.isfinite(out_bf16)))
    assert float(jnp.max(jnp.abs(out_bf16 - ref))) < 0.5

    print("KERNEL_OK")
</pallas_src>

<mosaic_0001>
module attributes {stable_mosaic.version = 11 : i64} {
  func.func @_probe(%arg0: i32, %arg1: memref<8x128xf32, #tpu.memory_space<vmem>>, %arg2: memref<8x128xf32, #tpu.memory_space<vmem>>, %arg3: memref<8x128xf32, #tpu.memory_space<vmem>>) attributes {dimension_semantics = [#tpu.dimension_semantics<arbitrary>], iteration_bounds = array<i64: 2>, scalar_prefetch = 0 : i64, scratch_operands = 0 : i64, tpu.core_type = #tpu.core_type<tc>, window_params = [{pipeline_mode = #tpu.pipeline_mode<synchronous>, transform_indices = @transform_0, window_bounds = array<i64: 8, 128>}, {transform_indices = @transform_1, window_bounds = array<i64: 8, 128>}, {transform_indices = @transform_2, window_bounds = array<i64: 8, 128>}]} {
    %c0 = arith.constant 0 : index
    %c0_0 = arith.constant 0 : index
    %0 = vector.load %arg2[%c0, %c0_0] : memref<8x128xf32, #tpu.memory_space<vmem>>, vector<8x128xf32>
    %c0_1 = arith.constant 0 : index
    %c0_2 = arith.constant 0 : index
    %1 = vector.load %arg1[%c0_1, %c0_2] : memref<8x128xf32, #tpu.memory_space<vmem>>, vector<8x128xf32>
    %2 = arith.addf %0, %1 : vector<8x128xf32>
    %c0_3 = arith.constant 0 : index
    %c0_4 = arith.constant 0 : index
    %3 = vector.load %arg3[%c0_3, %c0_4] : memref<8x128xf32, #tpu.memory_space<vmem>>, vector<8x128xf32>
    tpu.vector_store %arg3[%c0_3, %c0_4], %2 {strides = array<i32>} : memref<8x128xf32, #tpu.memory_space<vmem>>, vector<8x128xf32>,
    return
  }
  func.func @transform_0(%arg0: i32) -> (i32, i32) {
    %c0_i32 = arith.constant 0 : i32
    %c0_i32_0 = arith.constant 0 : i32
    %c0_i32_1 = arith.constant 0 : i32
    return %c0_i32, %c0_i32_0 : i32, i32
  }
  func.func @transform_1(%arg0: i32) -> (i32, i32) {
    %c0_i32 = arith.constant 0 : i32
    %c0_i32_0 = arith.constant 0 : i32
    return %arg0, %c0_i32 : i32, i32
  }
  func.func @transform_2(%arg0: i32) -> (i32, i32) {
    %c0_i32 = arith.constant 0 : i32
    %c0_i32_0 = arith.constant 0 : i32
    return %arg0, %c0_i32 : i32, i32
  }
}

module attributes {stable_mosaic.version = 11 : i64} {
  func.func @_head_proj_kernel(%arg0: i32, %arg1: i32, %arg2: memref<1x256x128xf32, #tpu.memory_space<vmem>>, %arg3: memref<128x384xf32, #tpu.memory_space<vmem>>, %arg4: memref<1x384xf32, #tpu.memory_space<vmem>>, %arg5: memref<1x4x256x32xf32, #tpu.memory_space<vmem>>, %arg6: memref<1x4x256x32xf32, #tpu.memory_space<vmem>>, %arg7: memref<1x4x256x32xf32, #tpu.memory_space<vmem>>) attributes {dimension_semantics = [#tpu.dimension_semantics<parallel>, #tpu.dimension_semantics<parallel>], iteration_bounds = array<i64: 2, 1>, scalar_prefetch = 0 : i64, scratch_operands = 0 : i64, tpu.core_type = #tpu.core_type<tc>, window_params = [{transform_indices = @transform_0, window_bounds = array<i64: 1, 256, 128>}, {pipeline_mode = #tpu.pipeline_mode<synchronous>, transform_indices = @transform_1, window_bounds = array<i64: 128, 384>}, {pipeline_mode = #tpu.pipeline_mode<synchronous>, transform_indices = @transform_2, window_bounds = array<i64: 1, 384>}, {transform_indices = @transform_3, window_bounds = array<i64: 1, 4, 256, 32>}, {transform_indices = @transform_4, window_bounds = array<i64: 1, 4, 256, 32>}, {transform_indices = @transform_5, window_bounds = array<i64: 1, 4, 256, 32>}]} {
    %c0 = arith.constant 0 : index
    %c0_0 = arith.constant 0 : index
    %c0_1 = arith.constant 0 : index
    %0 = vector.load %arg2[%c0, %c0_0, %c0_1] : memref<1x256x128xf32, #tpu.memory_space<vmem>>, vector<1x256x128xf32>
    %1 = vector.shape_cast %0 : vector<1x256x128xf32> to vector<256x128xf32>
    %c0_2 = arith.constant 0 : index
    %c0_3 = arith.constant 0 : index
    %2 = vector.load %arg3[%c0_2, %c0_3] : memref<128x384xf32, #tpu.memory_space<vmem>>, vector<128x384xf32>
    %cst = arith.constant dense<0.000000e+00> : vector<256x384xf32>
    %3 = tpu.matmul %1, %2, %cst {dimension_numbers = #tpu.dot_dimension_numbers<[1], [0], [0], [1], [0, 0, 1, 1], [], []>} : vector<256x128xf32>, vector<128x384xf32>, vector<256x384xf32> -> vector<256x384xf32>
    %c0_4 = arith.constant 0 : index
    %c0_5 = arith.constant 0 : index
    %4 = vector.load %arg4[%c0_4, %c0_5] : memref<1x384xf32, #tpu.memory_space<vmem>>, vector<1x384xf32>
    %5 = vector.broadcast %4 : vector<1x384xf32> to vector<256x384xf32>
    %6 = arith.addf %3, %5 : vector<256x384xf32>
    %7 = vector.extract_strided_slice %6 {offsets = [0, 0], sizes = [256, 32], strides = [1, 1]} : vector<256x384xf32> to vector<256x32xf32>
    %c0_6 = arith.constant 0 : index
    %c0_7 = arith.constant 0 : index
    %c0_8 = arith.constant 0 : index
    %c0_9 = arith.constant 0 : index
    %8 = vector.load %arg5[%c0_6, %c0_7, %c0_8, %c0_9] : memref<1x4x256x32xf32, #tpu.memory_space<vmem>>, vector<1x1x256x32xf32>
    %9 = vector.shape_cast %8 : vector<1x1x256x32xf32> to vector<256x32xf32>
    %10 = vector.shape_cast %7 : vector<256x32xf32> to vector<1x1x256x32xf32>
    tpu.vector_store %arg5[%c0_6, %c0_7, %c0_8, %c0_9], %10 {strides = array<i32>} : memref<1x4x256x32xf32, #tpu.memory_space<vmem>>, vector<1x1x256x32xf32>,
    %11 = vector.extract_strided_slice %6 {offsets = [0, 32], sizes = [256, 32], strides = [1, 1]} : vector<256x384xf32> to vector<256x32xf32>
    %c0_10 = arith.constant 0 : index
    %c1 = arith.constant 1 : index
    %c0_11 = arith.constant 0 : index
    %c0_12 = arith.constant 0 : index
    %12 = vector.load %arg5[%c0_10, %c1, %c0_11, %c0_12] : memref<1x4x256x32xf32, #tpu.memory_space<vmem>>, vector<1x1x256x32xf32>
    %13 = vector.shape_cast %12 : vector<1x1x256x32xf32> to vector<256x32xf32>
    %14 = vector.shape_cast %11 : vector<256x32xf32> to vector<1x1x256x32xf32>
    tpu.vector_store %arg5[%c0_10, %c1, %c0_11, %c0_12], %14 {strides = array<i32>} : memref<1x4x256x32xf32, #tpu.memory_space<vmem>>, vector<1x1x256x32xf32>,
    %15 = vector.extract_strided_slice %6 {offsets = [0, 64], sizes = [256, 32], strides = [1, 1]} : vector<256x384xf32> to vector<256x32xf32>
    %c0_13 = arith.constant 0 : index
    %c2 = arith.constant 2 : index
    %c0_14 = arith.constant 0 : index
    %c0_15 = arith.constant 0 : index
    %16 = vector.load %arg5[%c0_13, %c2, %c0_14, %c0_15] : memref<1x4x256x32xf32, #tpu.memory_space<vmem>>, vector<1x1x256x32xf32>
    %17 = vector.shape_cast %16 : vector<1x1x256x32xf32> to vector<256x32xf32>
    %18 = vector.shape_cast %15 : vector<256x32xf32> to vector<1x1x256x32xf32>
    tpu.vector_store %arg5[%c0_13, %c2, %c0_14, %c0_15], %18 {strides = array<i32>} : memref<1x4x256x32xf32, #tpu.memory_space<vmem>>, vector<1x1x256x32xf32>,
    %19 = vector.extract_strided_slice %6 {offsets = [0, 96], sizes = [256, 32], strides = [1, 1]} : vector<256x384xf32> to vector<256x32xf32>
    %c0_16 = arith.constant 0 : index
    %c3 = arith.constant 3 : index
    %c0_17 = arith.constant 0 : index
    %c0_18 = arith.constant 0 : index
    %20 = vector.load %arg5[%c0_16, %c3, %c0_17, %c0_18] : memref<1x4x256x32xf32, #tpu.memory_space<vmem>>, vector<1x1x256x32xf32>
    %21 = vector.shape_cast %20 : vector<1x1x256x32xf32> to vector<256x32xf32>
    %22 = vector.shape_cast %19 : vector<256x32xf32> to vector<1x1x256x32xf32>
    tpu.vector_store %arg5[%c0_16, %c3, %c0_17, %c0_18], %22 {strides = array<i32>} : memref<1x4x256x32xf32, #tpu.memory_space<vmem>>, vector<1x1x256x32xf32>,
    %23 = vector.extract_strided_slice %6 {offsets = [0, 128], sizes = [256, 32], strides = [1, 1]} : vector<256x384xf32> to vector<256x32xf32>
    %c0_19 = arith.constant 0 : index
    %c0_20 = arith.constant 0 : index
    %c0_21 = arith.constant 0 : index
    %c0_22 = arith.constant 0 : index
    %24 = vector.load %arg6[%c0_19, %c0_20, %c0_21, %c0_22] : memref<1x4x256x32xf32, #tpu.memory_space<vmem>>, vector<1x1x256x32xf32>
    %25 = vector.shape_cast %24 : vector<1x1x256x32xf32> to vector<256x32xf32>
    %26 = vector.shape_cast %23 : vector<256x32xf32> to vector<1x1x256x32xf32>
    tpu.vector_store %arg6[%c0_19, %c0_20, %c0_21, %c0_22], %26 {strides = array<i32>} : memref<1x4x256x32xf32, #tpu.memory_space<vmem>>, vector<1x1x256x32xf32>,
    %27 = vector.extract_strided_slice %6 {offsets = [0, 160], sizes = [256, 32], strides = [1, 1]} : vector<256x384xf32> to vector<256x32xf32>
    %c0_23 = arith.constant 0 : index
    %c1_24 = arith.constant 1 : index
    %c0_25 = arith.constant 0 : index
    %c0_26 = arith.constant 0 : index
    %28 = vector.load %arg6[%c0_23, %c1_24, %c0_25, %c0_26] : memref<1x4x256x32xf32, #tpu.memory_space<vmem>>, vector<1x1x256x32xf32>
    %29 = vector.shape_cast %28 : vector<1x1x256x32xf32> to vector<256x32xf32>
    %30 = vector.shape_cast %27 : vector<256x32xf32> to vector<1x1x256x32xf32>
    tpu.vector_store %arg6[%c0_23, %c1_24, %c0_25, %c0_26], %30 {strides = array<i32>} : memref<1x4x256x32xf32, #tpu.memory_space<vmem>>, vector<1x1x256x32xf32>,
    %31 = vector.extract_strided_slice %6 {offsets = [0, 192], sizes = [256, 32], strides = [1, 1]} : vector<256x384xf32> to vector<256x32xf32>
    %c0_27 = arith.constant 0 : index
    %c2_28 = arith.constant 2 : index
    %c0_29 = arith.constant 0 : index
    %c0_30 = arith.constant 0 : index
    %32 = vector.load %arg6[%c0_27, %c2_28, %c0_29, %c0_30] : memref<1x4x256x32xf32, #tpu.memory_space<vmem>>, vector<1x1x256x32xf32>
    %33 = vector.shape_cast %32 : vector<1x1x256x32xf32> to vector<256x32xf32>
    %34 = vector.shape_cast %31 : vector<256x32xf32> to vector<1x1x256x32xf32>
    tpu.vector_store %arg6[%c0_27, %c2_28, %c0_29, %c0_30], %34 {strides = array<i32>} : memref<1x4x256x32xf32, #tpu.memory_space<vmem>>, vector<1x1x256x32xf32>,
    %35 = vector.extract_strided_slice %6 {offsets = [0, 224], sizes = [256, 32], strides = [1, 1]} : vector<256x384xf32> to vector<256x32xf32>
    %c0_31 = arith.constant 0 : index
    %c3_32 = arith.constant 3 : index
    %c0_33 = arith.constant 0 : index
    %c0_34 = arith.constant 0 : index
    %36 = vector.load %arg6[%c0_31, %c3_32, %c0_33, %c0_34] : memref<1x4x256x32xf32, #tpu.memory_space<vmem>>, vector<1x1x256x32xf32>
    %37 = vector.shape_cast %36 : vector<1x1x256x32xf32> to vector<256x32xf32>
    %38 = vector.shape_cast %35 : vector<256x32xf32> to vector<1x1x256x32xf32>
    tpu.vector_store %arg6[%c0_31, %c3_32, %c0_33, %c0_34], %38 {strides = array<i32>} : memref<1x4x256x32xf32, #tpu.memory_space<vmem>>, vector<1x1x256x32xf32>,
    %39 = vector.extract_strided_slice %6 {offsets = [0, 256], sizes = [256, 32], strides = [1, 1]} : vector<256x384xf32> to vector<256x32xf32>
    %c0_35 = arith.constant 0 : index
    %c0_36 = arith.constant 0 : index
    %c0_37 = arith.constant 0 : index
    %c0_38 = arith.constant 0 : index
    %40 = vector.load %arg7[%c0_35, %c0_36, %c0_37, %c0_38] : memref<1x4x256x32xf32, #tpu.memory_space<vmem>>, vector<1x1x256x32xf32>
    %41 = vector.shape_cast %40 : vector<1x1x256x32xf32> to vector<256x32xf32>
    %42 = vector.shape_cast %39 : vector<256x32xf32> to vector<1x1x256x32xf32>
    tpu.vector_store %arg7[%c0_35, %c0_36, %c0_37, %c0_38], %42 {strides = array<i32>} : memref<1x4x256x32xf32, #tpu.memory_space<vmem>>, vector<1x1x256x32xf32>,
    %43 = vector.extract_strided_slice %6 {offsets = [0, 288], sizes = [256, 32], strides = [1, 1]} : vector<256x384xf32> to vector<256x32xf32>
    %c0_39 = arith.constant 0 : index
    %c1_40 = arith.constant 1 : index
    %c0_41 = arith.constant 0 : index
    %c0_42 = arith.constant 0 : index
    %44 = vector.load %arg7[%c0_39, %c1_40, %c0_41, %c0_42] : memref<1x4x256x32xf32, #tpu.memory_space<vmem>>, vector<1x1x256x32xf32>
    %45 = vector.shape_cast %44 : vector<1x1x256x32xf32> to vector<256x32xf32>
    %46 = vector.shape_cast %43 : vector<256x32xf32> to vector<1x1x256x32xf32>
    tpu.vector_store %arg7[%c0_39, %c1_40, %c0_41, %c0_42], %46 {strides = array<i32>} : memref<1x4x256x32xf32, #tpu.memory_space<vmem>>, vector<1x1x256x32xf32>,
    %47 = vector.extract_strided_slice %6 {offsets = [0, 320], sizes = [256, 32], strides = [1, 1]} : vector<256x384xf32> to vector<256x32xf32>
    %c0_43 = arith.constant 0 : index
    %c2_44 = arith.constant 2 : index
    %c0_45 = arith.constant 0 : index
    %c0_46 = arith.constant 0 : index
    %48 = vector.load %arg7[%c0_43, %c2_44, %c0_45, %c0_46] : memref<1x4x256x32xf32, #tpu.memory_space<vmem>>, vector<1x1x256x32xf32>
    %49 = vector.shape_cast %48 : vector<1x1x256x32xf32> to vector<256x32xf32>
    %50 = vector.shape_cast %47 : vector<256x32xf32> to vector<1x1x256x32xf32>
    tpu.vector_store %arg7[%c0_43, %c2_44, %c0_45, %c0_46], %50 {strides = array<i32>} : memref<1x4x256x32xf32, #tpu.memory_space<vmem>>, vector<1x1x256x32xf32>,
    %51 = vector.extract_strided_slice %6 {offsets = [0, 352], sizes = [256, 32], strides = [1, 1]} : vector<256x384xf32> to vector<256x32xf32>
    %c0_47 = arith.constant 0 : index
    %c3_48 = arith.constant 3 : index
    %c0_49 = arith.constant 0 : index
    %c0_50 = arith.constant 0 : index
    %52 = vector.load %arg7[%c0_47, %c3_48, %c0_49, %c0_50] : memref<1x4x256x32xf32, #tpu.memory_space<vmem>>, vector<1x1x256x32xf32>
    %53 = vector.shape_cast %52 : vector<1x1x256x32xf32> to vector<256x32xf32>
    %54 = vector.shape_cast %51 : vector<256x32xf32> to vector<1x1x256x32xf32>
    tpu.vector_store %arg7[%c0_47, %c3_48, %c0_49, %c0_50], %54 {strides = array<i32>} : memref<1x4x256x32xf32, #tpu.memory_space<vmem>>, vector<1x1x256x32xf32>,
    return
  }
  func.func @transform_0(%arg0: i32, %arg1: i32) -> (i32, i32, i32) {
    %c0_i32 = arith.constant 0 : i32
    %c0_i32_0 = arith.constant 0 : i32
    return %arg0, %arg1, %c0_i32 : i32, i32, i32
  }
  func.func @transform_1(%arg0: i32, %arg1: i32) -> (i32, i32) {
    %c0_i32 = arith.constant 0 : i32
    %c0_i32_0 = arith.constant 0 : i32
    %c0_i32_1 = arith.constant 0 : i32
    return %c0_i32, %c0_i32_0 : i32, i32
  }
  func.func @transform_2(%arg0: i32, %arg1: i32) -> (i32, i32) {
    %c0_i32 = arith.constant 0 : i32
    %c0_i32_0 = arith.constant 0 : i32
    %c0_i32_1 = arith.constant 0 : i32
    return %c0_i32, %c0_i32_0 : i32, i32
  }
  func.func @transform_3(%arg0: i32, %arg1: i32) -> (i32, i32, i32, i32) {
    %c0_i32 = arith.constant 0 : i32
    %c0_i32_0 = arith.constant 0 : i32
    %c0_i32_1 = arith.constant 0 : i32
    return %arg0, %c0_i32, %arg1, %c0_i32_0 : i32, i32, i32, i32
  }
  func.func @transform_4(%arg0: i32, %arg1: i32) -> (i32, i32, i32, i32) {
    %c0_i32 = arith.constant 0 : i32
    %c0_i32_0 = arith.constant 0 : i32
    %c0_i32_1 = arith.constant 0 : i32
    return %arg0, %c0_i32, %arg1, %c0_i32_0 : i32, i32, i32, i32
  }
  func.func @transform_5(%arg0: i32, %arg1: i32) -> (i32, i32, i32, i32) {
    %c0_i32 = arith.constant 0 : i32
    %c0_i32_0 = arith.constant 0 : i32
    %c0_i32_1 = arith.constant 0 : i32
    return %arg0, %c0_i32, %arg1, %c0_i32_0 : i32, i32, i32, i32
  }
}

</mosaic_0001>

<bundles_post_ra>
// kernel: tpu_custom_call.1
= control target key start
LH: loop header
LB: loop body
LE: loop exit
PB: predicated region body
PF: predicated region fallthrough
CT: control target
= control target key end

     0   :  { %7 = vsyncpa [#allocation3], 0  ;;  %s692_s0 = inlined_call_operand.hbm [shape: f32[8,128], index: 0, kind: input, shape index: {}]   ;;  %s693_s1 = inlined_call_operand.hbm [shape: f32[16,128], index: 1, kind: input, shape index: {}]   ;;  %s694_s2 = inlined_call_operand.hbm [shape: f32[16,128], index: 2, kind: output, shape index: {}]  }
   0x1   :  { %8 = vsyncpa [#allocation6], 0 }
   0x2   :  { %10 = vsyncpa [#allocation6 + $0x1], 0 }
   0x3   :  { %11 = vsyncpa [#allocation4], 0 }
   0x4   :  { %13 = vsyncpa [#allocation4 + $0x1], 0  ;;  %s491_s9 = smov 0   ;;  %s493_s10 = smov 0  }
   0x5   :  { %s495_s11 = smov 0   ;;  %s497_s12 = smov 0  }
   0x6 LB: > { %s512_s13 = sadd.s32 4294967295, %s471_s12   ;;  %s272_s14 = sadd.s32 4294967294, %s471_s12   ;;  %s471_s12 = sphi %s497_s12, %s718_s12   ;;  %s467_s11 = sphi %s495_s11, %s717_s11   ;;  %s463_s10 = sphi %s493_s10, %s716_s10   ;;  %s459_s9 = sphi %s491_s9, %s715_s9  }
   0x7   : > { %p60_p0 = scmp.ne.s32.totalorder %s463_s10, %s459_s9  ;;  %p695_p1 = scmp.eq.s32.totalorder %s512_s13, 0 }
   0x8   : > { %p90_p3 = scmp.eq.s32.totalorder %s272_s14, 1  ;;  %p273_p5 = scmp.ge.s32.totalorder %s471_s12, 1 }
   0x9   : > { %p521_p4 = por %p695_p1, %p60_p0  ;;  %p97_p7 = scmp.lt.s32.totalorder %s471_s12, 3 }
   0xa   : > { %p526_p6 = por %p90_p3, %p60_p0  ;;  %s473_s18 = smov [#allocation2]  }
   0xb   : > { %s698_s15 = scalar_select %p521_p4, 1, 0 }
   0xc   : > { %s699_s16 = scalar_select %p526_p6, 1, 0 }
   0xd   : > { %p531_p8 = pnand %p273_p5, %p97_p7  ;;  %s110_s19 = sshll.u32 %s473_s18, 4  ;;  %s111_s19 = int_to_ptr.vmem [resolvable:$true] %s110_s19 }
   0xe   : > { %s539_s20 = sadd.s32 1, %s471_s12   ;;  %s47_s24 = sadd.s32 1, %s467_s11 }
   0xf   : > { %s700_s17 = scalar_select %p531_p8, 1, 0 }
  0x10   : > { %p294_p10 = pneg %p531_p8  ;;  %s44_s22 = ssub.s32 %s471_s12, %s539_s20 }
  0x11   : > { %p549_p12 = scmp.eq.s32.totalorder %s44_s22, 0  ;;  %s343_s27 = scalar_lea.hbm %s692_s0, 128 }
  0x12   : > { %p543_p11 = pnand %p294_p10, %p695_p1  ;;  %p344_p0 = scmp.ne.s32.totalorder %s692_s0, %s343_s27 }
  0x13   : > { %s702_s23 = scalar_select %p549_p12, 1, 0 }
  0x14   : > { %p345_p3 = pneg %p543_p11  ;;  %p350_p10 = scmp.lt.u32.totalorder %s343_s27, %s692_s0 }
  0x16   : > { %p346_p5 = pnand %p345_p3, %p344_p0 }
  0x18   : > { %p347_p7 = pneg %p346_p5 }
  0x1a   : > { %p352_p9 = pnand %p350_p10, %p347_p7 }
  0x1c   : > { %355 = shalt.err (!%p352_p9)
}
  0x1d   : > { %s356_s4 = scalar_lea.vmem %s111_s19, 128  ;;  %p364_p6 = scmp.lt.s32.totalorder %s111_s19, %s111_s19 }
  0x1e   : > { %p357_p1 = scmp.ne.s32.totalorder %s111_s19, %s356_s4  ;;  %p365_p4 = scmp.lt.s32.totalorder %s356_s4, %s356_s4 }
  0x20   : > { %p359_p2 = pnand %p357_p1, %p345_p3  ;;  %p366_p8 = por %p365_p4, %p364_p6 }
  0x22   : > { %p360_p13 = pneg %p359_p2 }
  0x24   : > { %p367_p12 = pnand %p366_p8, %p360_p13 }
  0x26   : > { %370 = shalt.err (!%p367_p12)
}
  0x27   : > { %297 = dma.hbm_to_vmem [thread:$0]  (!%p543_p11), %s692_s0, 128, %s111_s19, [#allocation3]  }
  0x28   : > { %p703_p1 = scmp.ne.s32.totalorder %s702_s23, 0  ;;  %p55_p2 = scmp.eq.s32.totalorder %s471_s12, 0 }
  0x29   : > { %p704_p4 = scmp.ne.s32.totalorder %s467_s11, %s463_s10  ;;  %p705_p6 = scmp.eq.s32.totalorder %s512_s13, 1 }
  0x2a   : > { %s575_s7 = scalar_select %p703_p1, %s467_s11, %s47_s24  }
  0x2b   : > { %p583_p8 = por %p705_p6, %p704_p4  ;;  %p307_p9 = scmp.lt.s32.totalorder %s471_s12, 2 }
  0x2c   : > { %s121_s14 = sand.u32 1, %s467_s11   ;;  %p707_p12 = pmov %p704_p4 }
  0x2d   : > { %s276_s18 = sshll.u32 %s121_s14, 3  ;;  %s277_s21 = sshll.u32 %s471_s12, 7 }
  0x2e   : > { %p56_p13 = por %p55_p2, %p707_p12  ;;  %s596_s19 = scalar_lea.hbm %s693_s1, %s277_s21 }
  0x2f   : > { %s125_s23 = scalar_lea.vmem [#allocation5], %s276_s18  ;;  %s122_s27 = scalar_lea.sflag [#allocation6], %s121_s14 }
  0x30   : > { %s132_s24 = sshll.u32 %s125_s23, 4  ;;  %p598_p11 = pnand %p307_p9, %p56_p13  ;;  %s602_s24 = int_to_ptr.vmem [resolvable:$true] %s132_s24 }
  0x31   : > { %s371_s28 = scalar_lea.hbm %s596_s19, 128  ;;  %s376_s3 = scalar_lea.hbm %s693_s1, 256 }
  0x32   : > { %p372_p0 = scmp.ne.s32.totalorder %s596_s19, %s371_s28  ;;  %p373_p3 = pneg %p598_p11 }
  0x33   : > { %p377_p10 = scmp.lt.u32.totalorder %s596_s19, %s693_s1  ;;  %p378_p1 = scmp.lt.u32.totalorder %s376_s3, %s371_s28 }
  0x34   : > { %p374_p5 = pnand %p373_p3, %p372_p0  ;;  %p380_p4 = scmp.lt.u32.totalorder %s371_s28, %s596_s19 }
  0x35   : > { %p379_p2 = por %p378_p1, %p377_p10 }
  0x36   : > { %p375_p7 = pneg %p374_p5 }
  0x37   : > { %p381_p6 = por %p380_p4, %p379_p2 }
  0x39   : > { %p382_p9 = pnand %p381_p6, %p375_p7 }
  0x3b   : > { %385 = shalt.err (!%p382_p9)
}
  0x3c   : > { %s386_s6 = scalar_lea.vmem %s602_s24, 128  ;;  %s474_s14 = smov [#allocation5]  }
  0x3d   : > { %p387_p12 = scmp.ne.s32.totalorder %s602_s24, %s386_s6  ;;  %s391_s18 = sshll.u32 %s474_s14, 4  ;;  %s392_s18 = int_to_ptr.vmem [resolvable:$false] %s391_s18 }
  0x3e   : > { %s393_s21 = scalar_lea.vmem %s392_s18, 256  ;;  %p394_p5 = scmp.lt.s32.totalorder %s602_s24, %s392_s18 }
  0x3f   : > { %p389_p13 = pnand %p387_p12, %p373_p3  ;;  %p395_p10 = scmp.lt.s32.totalorder %s393_s21, %s386_s6 }
  0x41   : > { %p390_p0 = pneg %p389_p13  ;;  %p396_p1 = por %p395_p10, %p394_p5 }
  0x43   : > { %p397_p2 = pnand %p396_p1, %p390_p0 }
  0x45   : > { %400 = shalt.err (!%p397_p2)
}
  0x46   : > { %301 = dma.hbm_to_vmem [thread:$0]  (!%p598_p11), %s596_s19, 128, %s602_s24, %s122_s27  }
  0x47   : > { %p709_p7 = scmp.ne.s32.totalorder %s700_s17, 0 }
  0x48   : > { %p710_p3 = scmp.eq.s32.totalorder (!%p709_p7), %s512_s13, 0 }
  0x49   : > { %141 = sbr.rel (%p709_p7) target bundleno = 110 (0x6e), region = 28 }
  0x50   : > { %446 = dma.done.wait (%p710_p3), [#allocation3], 128   ;;  %p711_p4 = pmov %p710_p3 }
  0x51   : > { %s636_s22 = sand.u32 1, %s463_s10   ;;  %p712_p6 = scmp.ne.s32.totalorder %s698_s15, 0 }
  0x52   : > { %448 = vsyncadd (%p711_p4), [#allocation3], 4294967168  ;;  %s280_s25 = sshll.u32 %s636_s22, 3  ;;  %s148_s23 = scalar_lea.sflag [#allocation6], %s636_s22 }
  0x53   : > { %s151_s26 = scalar_lea.vmem [#allocation5], %s280_s25 }
  0x54   : > { %450 = dma.done.wait (%p712_p6), %s148_s23, 128  }
  0x55   : > { %452 = vsyncadd (%p712_p6), %s148_s23, 4294967168  ;;  %s171_s17 = scalar_lea.vmem [#allocation7], %s280_s25  ;;  %s283_s24 = sshll.u32 %s512_s13, 7  ;;  %v172_v0 = vld [vmem:[%s151_s26] sm:$0xff]  ;;  %v173_v1 = vld [vmem:[#allocation2] sm:$0xff] }
  0x56   : > { %s190_s19 = sshll.u32 %s171_s17, 4  ;;  %v174_v2 = vadd.f32 %v173_v1, %v172_v0  ;;  %s650_s29 = scalar_lea.hbm %s694_s2, %s283_s24  ;;  %s645_s19 = int_to_ptr.vmem [resolvable:$true] %s190_s19 }
  0x57   : > { %s177_s15 = scalar_lea.sflag [#allocation4], %s636_s22  ;;  %s401_s30 = scalar_lea.vmem %s645_s19, 128 }
  0x58   : > { %175 = vst [vmem:[%s171_s17] sm:$0xff] %v174_v2  ;;  %p402_p11 = scmp.ne.s32.totalorder %s645_s19, %s401_s30  ;;  %s475_s13 = smov [#allocation7]  }
  0x59   : > { %s405_s3 = sshll.u32 %s475_s13, 4  ;;  %s406_s3 = int_to_ptr.vmem [resolvable:$false] %s405_s3 }
  0x5a   : > { %p403_p9 = pnand %p402_p11, %p583_p8  ;;  %s407_s4 = scalar_lea.vmem %s406_s3, 256 }
  0x5b   : > { %p408_p13 = scmp.lt.s32.totalorder %s645_s19, %s406_s3  ;;  %p409_p0 = scmp.lt.s32.totalorder %s407_s4, %s401_s30 }
  0x5c   : > { %p404_p12 = pneg %p403_p9 }
  0x5d   : > { %p410_p5 = por %p409_p0, %p408_p13 }
  0x5f   : > { %p411_p10 = pnand %p410_p5, %p404_p12 }
  0x61   : > { %414 = shalt.err (!%p411_p10)
}
  0x62   : > { %s415_s5 = scalar_lea.hbm %s650_s29, 128  ;;  %s419_s18 = scalar_lea.hbm %s694_s2, 256 }
  0x63   : > { %p416_p1 = scmp.ne.s32.totalorder %s650_s29, %s415_s5  ;;  %p420_p3 = scmp.lt.u32.totalorder %s650_s29, %s694_s2 }
  0x64   : > { %p421_p4 = scmp.lt.u32.totalorder %s419_s18, %s415_s5  ;;  %p423_p11 = scmp.lt.u32.totalorder %s415_s5, %s650_s29 }
  0x65   : > { %p417_p2 = pnand %p416_p1, %p583_p8 }
  0x66   : > { %p422_p6 = por %p421_p4, %p420_p3 }
  0x67   : > { %p418_p7 = pneg %p417_p2 }
  0x68   : > { %p424_p9 = por %p423_p11, %p422_p6 }
  0x6a   : > { %p425_p12 = pnand %p424_p9, %p418_p7 }
  0x6c   : > { %428 = shalt.err (!%p425_p12)
}
  0x6d   : > { %292 = dma.vmem_to_hbm [thread:$0]  (%p583_p8), %s645_s19, 128, %s650_s29, %s177_s15  }
  0x6e PF: > { %s202_s25 = sand.u32 1, %s459_s9   ;;  %p713_p13 = scmp.ne.s32.totalorder %s699_s16, 0 }
  0x6f   : > { %p714_p0 = scmp.ge.s32.totalorder %s471_s12, 2  ;;  %s203_s23 = scalar_lea.sflag [#allocation4], %s202_s25 }
  0x71   : > { %p303_p5 = pnand %p714_p0, %p713_p13 }
  0x73   : > { %454 = dma.done.wait (!%p303_p5), %s203_s23, 128  }
  0x74   : > { %456 = vsyncadd (!%p303_p5), %s203_s23, 4294967168  ;;  %p16_p10 = scmp.ge.s32.totalorder %s539_s20, 4   ;;  %s715_s9 = smov %s463_s10 }
  0x75   : > { %s716_s10 = smov %s467_s11  ;;  %s717_s11 = smov %s575_s7 }
  0x76   : > { %s718_s12 = smov %s539_s20  ;;  %18 = sbr.rel (!%p16_p10) target bundleno = 6 (0x6), region = 78 }
  0x7d   :  { %208 = vsyncpa [#allocation3], 1 }
  0x7e   :  { %210 = vsyncpa [#allocation3 + $0x1], 1 }
  0x7f   :  { %211 = vsyncpa [#allocation6], 1 }
  0x80   :  { %213 = vsyncpa [#allocation6 + $0x1], 1 }
  0x81   :  { %214 = vsyncpa [#allocation4], 1 }
  0x82   :  { %216 = vsyncpa [#allocation4 + $0x1], 1 }

// kernel: tpu_custom_call.1
= control target key start
LH: loop header
LB: loop body
LE: loop exit
PB: predicated region body
PF: predicated region fallthrough
CT: control target
= control target key end

     0   :  { %11 = vsyncpa [#allocation3], 0  ;;  %s5331_s0 = inlined_call_operand.hbm [shape: f32[2,256,128], index: 0, kind: input, shape index: {}]   ;;  %s5332_s1 = inlined_call_operand.hbm [shape: f32[128,384], index: 1, kind: input, shape index: {}]   ;;  %s5333_s2 = inlined_call_operand.vmem [shape: f32[1,384], index: 2, kind: input, shape index: {}]   ;;  %s5334_s3 = inlined_call_operand.vmem [shape: f32[2,4,256,32], index: 3, kind: output, shape index: {0}]   ;;  %s5335_s4 = inlined_call_operand.vmem [shape: f32[2,4,256,32], index: 4, kind: output, shape index: {1}]   ;;  %s5336_s5 = inlined_call_operand.vmem [shape: f32[2,4,256,32], index: 5, kind: output, shape index: {2}]  }
   0x1   :  { %13 = vsyncpa [#allocation3 + $0x1], 0 }
   0x2   :  { %14 = vsyncpa [#allocation5], 0  ;;  %s3221_s18 = smov 0   ;;  %s3223_s19 = smov 0  }
   0x3   :  { %s3225_s20 = smov 0   ;;  %s3227_s21 = smov 0  }
   0x4   :  { %s3229_s22 = smov 0   ;;  %s3231_s23 = smov 0  }
   0x5 LB: > { %s2473_s24 = sadd.s32 4294967295, %s3179_s23   ;;  %p54_p0 = scmp.ne.s32.totalorder %s3163_s19, %s3159_s18  ;;  %s3179_s23 = sphi %s3231_s23, %s20_s23   ;;  %s3175_s22 = sphi %s3229_s22, %s5380_s22   ;;  %s3171_s21 = sphi %s3227_s21, %s5379_s21   ;;  %s3167_s20 = sphi %s3225_s20, %s5378_s20   ;;  %s3163_s19 = sphi %s3223_s19, %s5377_s19   ;;  %s3159_s18 = sphi %s3221_s18, %s5376_s18  }
   0x6   : > { %p3251_p1 = scmp.eq.s32.totalorder %s2473_s24, 0  ;;  %p2475_p2 = scmp.ge.s32.totalorder %s3179_s23, 1 }
   0x7   : > { %p191_p3 = scmp.lt.s32.totalorder %s3179_s23, 3  ;;  %s3181_s28 = smov [#allocation4]  }
   0x8   : > { %s5354_s25 = scalar_select %p3251_p1, 1, 0 }
   0x9   : > { %p3259_p4 = por %p3251_p1, %p54_p0  ;;  %p3263_p5 = pnand %p2475_p2, %p191_p3 }
   0xa   : > { %s203_s29 = sshll.u32 %s3181_s28, 4  ;;  %s32_s6 = sadd.s32 1, %s3175_s22  ;;  %s204_s29 = int_to_ptr.vmem [resolvable:$true] %s203_s29 }
   0xb   : > { %s5355_s26 = scalar_select %p3259_p4, 1, 0 }
   0xc   : > { %s5356_s27 = scalar_select %p3263_p5, 1, 0 }
   0xd   : > { %p2998_p6 = pneg %p3263_p5  ;;  %s3067_s9 = scalar_lea.hbm %s5332_s1, 6144 }
   0xe   : > { %p3068_p8 = scmp.ne.s32.totalorder %s5332_s1, %s3067_s9  ;;  %p3074_p12 = scmp.lt.u32.totalorder %s3067_s9, %s5332_s1 }
   0xf   : > { %p3271_p7 = pnand %p2998_p6, %p3251_p1 }
  0x11   : > { %p3069_p9 = pneg %p3271_p7 }
  0x13   : > { %p3070_p10 = pnand %p3069_p9, %p3068_p8 }
  0x15   : > { %p3071_p11 = pneg %p3070_p10 }
  0x17   : > { %p3076_p13 = pnand %p3074_p12, %p3071_p11 }
  0x19   : > { %3079 = shalt.err (!%p3076_p13)
}
  0x1a   : > { %s3080_s14 = scalar_lea.vmem %s204_s29, 6144  ;;  %p3088_p6 = scmp.lt.s32.totalorder %s204_s29, %s204_s29 }
  0x1b   : > { %p3081_p0 = scmp.ne.s32.totalorder %s204_s29, %s3080_s14  ;;  %p3089_p1 = scmp.lt.s32.totalorder %s3080_s14, %s3080_s14 }
  0x1d   : > { %p3083_p2 = pnand %p3081_p0, %p3069_p9  ;;  %p3090_p4 = por %p3089_p1, %p3088_p6 }
  0x1f   : > { %p3084_p3 = pneg %p3083_p2 }
  0x21   : > { %p3091_p5 = pnand %p3090_p4, %p3084_p3 }
  0x23   : > { %3094 = shalt.err (!%p3091_p5)
}
  0x24   : > { %s3182_s15 = smov 384   ;;  %s3183_s16 = smov 24  }
  0x25   : > { %3001 = dma.hbm_to_vmem [thread:$0]  (!%p3271_p7), %s5332_s1, 6144, %s204_s29, [#allocation5], %s3182_s15, %s3182_s15, %s3183_s16  }
  0x26   : > { %p34_p1 = scmp.ge.s32.totalorder %s32_s6, 2  ;;  %s41_s24 = sadd.s32 1, %s3167_s20 }
  0x27   : > { %p48_p4 = scmp.ne.s32.totalorder %s3167_s20, %s3163_s19  ;;  %p49_p5 = scmp.eq.s32.totalorder %s3179_s23, 0 }
  0x28   : > { %s5382_s6 = smov (%p34_p1, %s32_s6), 0  ;;  %p3007_p9 = scmp.lt.s32.totalorder %s3179_s23, 2 }
  0x29   : > { %p50_p8 = por %p49_p5, %p48_p4  ;;  %s36_s28 = ssub.s32 %s3175_s22, %s5382_s6 }
  0x2a   : > { %s220_s7 = sand.u32 1, %s3167_s20   ;;  %p39_p10 = scmp.eq.s32.totalorder %s36_s28, 0 }
  0x2b   : > { %s2478_s8 = sshll.u32 %s220_s7, 8  ;;  %s2780_s9 = sshll.u32 %s3175_s22, 12 }
  0x2c   : > { %s3304_s10 = scalar_select %p39_p10, %s3167_s20, %s41_s24  }
  0x2d   : > { %s3309_s29 = scalar_lea.hbm %s5331_s0, %s2780_s9  ;;  %s224_s12 = scalar_lea.vmem [#allocation2], %s2478_s8 }
  0x2e   : > { %s233_s13 = sshll.u32 %s224_s12, 4  ;;  %p3311_p7 = pnand %p3007_p9, %p50_p8  ;;  %s3315_s13 = int_to_ptr.vmem [resolvable:$true] %s233_s13 }
  0x2f   : > { %s3317_s15 = scalar_lea.sflag [#allocation3], %s220_s7  ;;  %s3095_s16 = scalar_lea.hbm %s3309_s29, 4096 }
  0x30   : > { %p3096_p11 = scmp.ne.s32.totalorder %s3309_s29, %s3095_s16  ;;  %p3097_p12 = pneg %p3311_p7 }
  0x31   : > { %s3100_s24 = scalar_lea.hbm %s5331_s0, 8192  ;;  %p3101_p2 = scmp.lt.u32.totalorder %s3309_s29, %s5331_s0 }
  0x32   : > { %p3098_p13 = pnand %p3097_p12, %p3096_p11  ;;  %p3102_p3 = scmp.lt.u32.totalorder %s3100_s24, %s3095_s16 }
  0x33   : > { %p3104_p1 = scmp.lt.u32.totalorder %s3095_s16, %s3309_s29 }
  0x34   : > { %p3099_p0 = pneg %p3098_p13  ;;  %p3103_p6 = por %p3102_p3, %p3101_p2 }
  0x36   : > { %p3105_p4 = por %p3104_p1, %p3103_p6 }
  0x38   : > { %p3106_p5 = pnand %p3105_p4, %p3099_p0 }
  0x3a   : > { %3109 = shalt.err (!%p3106_p5)
}
  0x3b   : > { %s3110_s7 = scalar_lea.vmem %s3315_s13, 4096  ;;  %s3184_s9 = smov [#allocation2]  }
  0x3c   : > { %p3111_p8 = scmp.ne.s32.totalorder %s3315_s13, %s3110_s7  ;;  %s3115_s30 = sshll.u32 %s3184_s9, 4  ;;  %s3116_s30 = int_to_ptr.vmem [resolvable:$false] %s3115_s30 }
  0x3d   : > { %s3117_s11 = scalar_lea.vmem %s3116_s30, 8192  ;;  %p3118_p11 = scmp.lt.s32.totalorder %s3315_s13, %s3116_s30 }
  0x3e   : > { %p3113_p9 = pnand %p3111_p8, %p3097_p12  ;;  %p3119_p13 = scmp.lt.s32.totalorder %s3117_s11, %s3110_s7 }
  0x40   : > { %p3114_p10 = pneg %p3113_p9  ;;  %p3120_p2 = por %p3119_p13, %p3118_p11 }
  0x42   : > { %p3121_p3 = pnand %p3120_p2, %p3114_p10 }
  0x44   : > { %3124 = shalt.err (!%p3121_p3)
}
  0x45   : > { %s3185_s12 = smov 128   ;;  %s3186_s16 = smov 8  }
  0x46   : > { %3005 = dma.hbm_to_vmem [thread:$0]  (!%p3311_p7), %s3309_s29, 4096, %s3315_s13, %s3317_s15, %s3185_s12, %s3185_s12, %s3186_s16  }
  0x47   : > { %p5359_p12 = scmp.ne.s32.totalorder %s5356_s27, 0 }
  0x49   : > { %245 = sbr.rel (%p5359_p12) target bundleno = 1028 (0x404), region = 32 }
  0x50   : > { %s247_s17 = sand.u32 1, %s3163_s19   ;;  %p5360_p0 = scmp.ne.s32.totalorder %s5355_s26, 0 }
  0x51   : > { %s2482_s18 = sshll.u32 %s247_s17, 8  ;;  %s248_s24 = scalar_lea.sflag [#allocation3], %s247_s17 }
  0x52   : > { %s3348_s28 = scalar_lea.vmem [#allocation2], %s2482_s18 }
  0x53   : > { %3150 = dma.done.wait (%p5360_p0), %s248_s24, 4096  }
  0x54   : > { %3152 = vsyncadd (%p5360_p0), %s248_s24, 4294963200  ;;  %p5361_p6 = scmp.ne.s32.totalorder %s5354_s25, 0 }
  0x56   : > { %3154 = dma.done.wait (%p5361_p6), [#allocation5], 6144  }
  0x57   : > { %3156 = vsyncadd (%p5361_p6), [#allocation5], 4294961152  ;;  %v3187_v0 = vmov 0.0   ;;  %v368_v1 = vld [vmem:[#allocation4 + $0x8] sm:$0xff]  ;;  %v371_v2 = vld [vmem:[#allocation4 + $0x20] sm:$0xff]  ;;  %p306_p7 = scmp.lt.s32.totalorder %s3171_s21, 1 }
  0x58   : > { %496 = vmatprep.mubr.f32.mxu0 %v3187_v0  ;;  %640 = vmatprep.mubr.f32.mxu1 %v3187_v0  ;;  %v367_v3 = vld [vmem:[#allocation4] sm:$0xff]  ;;  %v2912_v4 = vpack.c.bf16 %v371_v2, %v368_v1  ;;  %v370_v5 = vld [vmem:[#allocation4 + $0x18] sm:$0xff]  ;;  %v377_v7 = vld [vmem:[#allocation4 + $0x50] sm:$0xff]  ;;  %vm914_vm0 = vcmask 261120   ;;  %s3188_s7 = smov 96   ;;  %s3189_s9 = smov 64  }
  0x59   : > { %v374_v6 = vld [vmem:[#allocation4 + $0x38] sm:$0xff]  ;;  %v2914_v8 = vpack.c.bf16 %v370_v5, %v367_v3  ;;  %v373_v10 = vld [vmem:[#allocation4 + $0x30] sm:$0xff]  ;;  %v376_v11 = vld [vmem:[#allocation4 + $0x48] sm:$0xff]  ;;  %s5384_s21 = smov (!%p306_p7, %s3171_s21), 1  ;;  %s3190_s30 = smov 32  }
  0x5a   : > { %v2916_v9 = vpack.c.bf16 %v377_v7, %v374_v6  ;;  %v380_v12 = vld [vmem:[#allocation4 + $0x68] sm:$0xff]  ;;  %2913 = vmatprep.subr.bf16.mxu0 %v2912_v4  ;;  %2976 = vmatprep.subr.bf16.mxu1 %v2912_v4  ;;  %v383_v13 = vld [vmem:[#allocation4 + $0x80] sm:$0xff]  ;;  %v2918_v14 = vpack.c.bf16 %v376_v11, %v373_v10  ;;  %v382_v17 = vld [vmem:[#allocation4 + $0x78] sm:$0xff]  ;;  %s3524_s27 = sshll.u32 %s5384_s21, 10 }
  0x5b   : > { %2915 = vmatpush1.bf16.msra.mxu0 %v2914_v8  ;;  %2984 = vmatpush1.bf16.msra.mxu1 %v2914_v8  ;;  %v2920_v15 = vpack.c.bf16 %v383_v13, %v380_v12  ;;  %v379_v16 = vld [vmem:[#allocation4 + $0x60] sm:$0xff]  ;;  %v386_v18 = vld [vmem:[#allocation4 + $0x98] sm:$0xff]  ;;  %v389_v19 = vld [vmem:[#allocation4 + $0xb0] sm:$0xff]  ;;  %s3534_s14 = scalar_lea.vmem %s5334_s3, %s3524_s27  ;;  %s3546_s8 = scalar_lea.vmem %s5335_s4, %s3524_s27 }
  0x5c   : > { %2917 = vmatprep.subr.bf16.mxu0 %v2916_v9  ;;  %2977 = vmatprep.subr.bf16.mxu1 %v2916_v9  ;;  %v2922_v20 = vpack.c.bf16 %v382_v17, %v379_v16  ;;  %v2924_v21 = vpack.c.bf16 %v389_v19, %v386_v18  ;;  %v385_v22 = vld [vmem:[#allocation4 + $0x90] sm:$0xff]  ;;  %v388_v23 = vld [vmem:[#allocation4 + $0xa8] sm:$0xff]  ;;  %v395_v25 = vld [vmem:[#allocation4 + $0xe0] sm:$0xff]  ;;  %v417_v16 = vlaneseq  ;;  %s4359_s18 = scalar_lea.vmem %s5336_s5, %s3524_s27 }
  0x5d   : > { %v392_v24 = vld [vmem:[#allocation4 + $0xc8] sm:$0xff]  ;;  %v2926_v26 = vpack.c.bf16 %v388_v23, %v385_v22  ;;  %v391_v28 = vld [vmem:[#allocation4 + $0xc0] sm:$0xff]  ;;  %v394_v29 = vld [vmem:[#allocation4 + $0xd8] sm:$0xff] }
  0x5e   : > { %v2928_v27 = vpack.c.bf16 %v395_v25, %v392_v24  ;;  %v398_v30 = vld [vmem:[#allocation4 + $0xf8] sm:$0xff]  ;;  %v401_v31 = vld [vmem:[#allocation4 + $0x110] sm:$0xff]  ;;  %v2930_v32 = vpack.c.bf16 %v394_v29, %v391_v28  ;;  %v400_v35 = vld [vmem:[#allocation4 + $0x108] sm:$0xff]  ;;  %v3511_v18 = vshrl.u32 %v417_v16, 7 }
  0x5f   : > { %2919 = vmatpush1.bf16.msra.mxu0 %v2918_v14  ;;  %2985 = vmatpush1.bf16.msra.mxu1 %v2918_v14  ;;  %v2932_v33 = vpack.c.bf16 %v401_v31, %v398_v30  ;;  %v397_v34 = vld [vmem:[#allocation4 + $0xf0] sm:$0xff]  ;;  %v404_v36 = vld [vmem:[#allocation4 + $0x128] sm:$0xff]  ;;  %v407_v37 = vld [vmem:[#allocation4 + $0x140] sm:$0xff] }
  0x60   : > { %2921 = vmatprep.subr.bf16.mxu0 %v2920_v15  ;;  %2978 = vmatprep.subr.bf16.mxu1 %v2920_v15  ;;  %v2934_v38 = vpack.c.bf16 %v400_v35, %v397_v34  ;;  %v2936_v39 = vpack.c.bf16 %v407_v37, %v404_v36  ;;  %v403_v40 = vld [vmem:[#allocation4 + $0x120] sm:$0xff]  ;;  %v406_v41 = vld [vmem:[#allocation4 + $0x138] sm:$0xff]  ;;  %v413_v43 = vld [vmem:[#allocation4 + $0x170] sm:$0xff]  ;;  %5362 = vst [vmem:[#allocation8_spill] sm:$0xff] %v3511_v18  ;;  %v419_v19 = vsub.s32 0, %v3511_v18 }
  0x61   : > { %v410_v42 = vld [vmem:[#allocation4 + $0x158] sm:$0xff]  ;;  %v2938_v44 = vpack.c.bf16 %v406_v41, %v403_v40  ;;  %v409_v46 = vld [vmem:[#allocation4 + $0x150] sm:$0xff]  ;;  %v412_v47 = vld [vmem:[#allocation4 + $0x168] sm:$0xff] }
  0x62   : > { %v2940_v45 = vpack.c.bf16 %v413_v43, %v410_v42  ;;  %v2942_v48 = vpack.c.bf16 %v412_v47, %v409_v46  ;;  %v335_v49 = vld [vmem:[%s3348_s28] sm:$0xff]  ;;  %v3367_v51 = vld [vmem:[%s3348_s28 + $0xc8] sm:$0xff]  ;;  %v3377_v53 = vld [vmem:[%s3348_s28 + $0x10] sm:$0xff] }
  0x63   : > { %2923 = vmatpush1.bf16.msra.mxu0 %v2922_v20  ;;  %2986 = vmatpush1.bf16.msra.mxu1 %v2922_v20  ;;  %v3362_v50 = vld [vmem:[%s3348_s28 + $0xc0] sm:$0xff]  ;;  %v3371_v52 = vld [vmem:[%s3348_s28 + $0x8] sm:$0xff]  ;;  %v3381_v54 = vld [vmem:[%s3348_s28 + $0xd0] sm:$0xff] }
  0x64   : > { %2925 = vmatprep.subr.bf16.mxu0 %v2924_v21  ;;  %2979 = vmatprep.subr.bf16.mxu1 %v2924_v21  ;;  %v3387_v55 = vld [vmem:[%s3348_s28 + $0x18] sm:$0xff]  ;;  %v3397_v57 = vld [vmem:[%s3348_s28 + $0x20] sm:$0xff]  ;;  %v3407_v59 = vld [vmem:[%s3348_s28 + $0x28] sm:$0xff]  ;;  %v423_v21 = vsub.s32 1, %v3511_v18 }
  0x65   : > { %v3391_v56 = vld [vmem:[%s3348_s28 + $0xd8] sm:$0xff]  ;;  %v3401_v58 = vld [vmem:[%s3348_s28 + $0xe0] sm:$0xff]  ;;  %v3411_v60 = vld [vmem:[%s3348_s28 + $0xe8] sm:$0xff] }
  0x66   : > { %v3417_v61 = vld [vmem:[%s3348_s28 + $0x30] sm:$0xff]  ;;  %v3427_v63 = vld [vmem:[%s3348_s28 + $0x38] sm:$0xff]  ;;  %v3437_v2 = vld [vmem:[%s3348_s28 + $0x40] sm:$0xff] }
  0x67   : > { %2927 = vmatpush1.bf16.msra.mxu0 %v2926_v26  ;;  %2987 = vmatpush1.bf16.msra.mxu1 %v2926_v26  ;;  %v3421_v62 = vld [vmem:[%s3348_s28 + $0xf0] sm:$0xff]  ;;  %v3431_v1 = vld [vmem:[%s3348_s28 + $0xf8] sm:$0xff]  ;;  %v3442_v3 = vld [vmem:[%s3348_s28 + $0x48] sm:$0xff] }
  0x68   : > { %2929 = vmatprep.subr.bf16.mxu0 %v2928_v27  ;;  %2980 = vmatprep.subr.bf16.mxu1 %v2928_v27  ;;  %v3447_v4 = vld [vmem:[%s3348_s28 + $0x50] sm:$0xff]  ;;  %v3452_v5 = vld [vmem:[%s3348_s28 + $0x58] sm:$0xff]  ;;  %v3457_v6 = vld [vmem:[%s3348_s28 + $0x60] sm:$0xff] }
  0x69   : > { %v3462_v7 = vld [vmem:[%s3348_s28 + $0x68] sm:$0xff]  ;;  %v3467_v8 = vld [vmem:[%s3348_s28 + $0x70] sm:$0xff]  ;;  %v3472_v9 = vld [vmem:[%s3348_s28 + $0x78] sm:$0xff] }
  0x6a   : > { %v3477_v10 = vld [vmem:[%s3348_s28 + $0x80] sm:$0xff]  ;;  %v3482_v11 = vld [vmem:[%s3348_s28 + $0x88] sm:$0xff]  ;;  %v3487_v12 = vld [vmem:[%s3348_s28 + $0x90] sm:$0xff] }
  0x6b   : > { %2931 = vmatpush1.bf16.msra.mxu0 %v2930_v32  ;;  %2988 = vmatpush1.bf16.msra.mxu1 %v2930_v32  ;;  %v3492_v13 = vld [vmem:[%s3348_s28 + $0x98] sm:$0xff]  ;;  %v3497_v14 = vld [vmem:[%s3348_s28 + $0xa0] sm:$0xff]  ;;  %v3502_v15 = vld [vmem:[%s3348_s28 + $0xa8] sm:$0xff] }
  0x6c   : > { %2933 = vmatprep.subr.bf16.mxu0 %v2932_v33  ;;  %2981 = vmatprep.subr.bf16.mxu1 %v2932_v33  ;;  %v3507_v17 = vld [vmem:[%s3348_s28 + $0xb0] sm:$0xff]  ;;  %v415_v20 = vld [vmem:[%s5333_s2] sm:$0x7]  ;;  %v3521_v22 = vld [vmem:[%s3348_s28 + $0xb8] sm:$0xff] }
  0x6d   : > { %v3526_v23 = vrot.slane %v415_v20, %v419_v19  ;;  %v369_v46 = vld [vmem:[#allocation4 + $0x10] sm:$0xff]  ;;  %v372_v47 = vld [vmem:[#allocation4 + $0x28] sm:$0xff] }
  0x6e   : > { %v2944_v16 = vpack.c.bf16 %v372_v47, %v369_v46 }
  0x6f   : > { %2935 = vmatpush1.bf16.msra.mxu0 %v2934_v38  ;;  %2989 = vmatpush1.bf16.msra.mxu1 %v2934_v38 }
  0x70   : > { %2937 = vmatprep.subr.bf16.mxu0 %v2936_v39  ;;  %2982 = vmatprep.subr.bf16.mxu1 %v2936_v39 }
  0x73   : > { %2939 = vmatpush1.bf16.msra.mxu0 %v2938_v44  ;;  %2990 = vmatpush1.bf16.msra.mxu1 %v2938_v44 }
  0x74   : > { %2941 = vmatprep.subr.bf16.mxu0 %v2940_v45  ;;  %2983 = vmatprep.subr.bf16.mxu1 %v2940_v45 }
  0x77   : > { %2943 = vmatpush1.bf16.msra.mxu0 %v2942_v48  ;;  %2991 = vmatpush1.bf16.msra.mxu1 %v2942_v48 }
  0x78   : > { %2945 = vmatprep.subr.bf16.mxu1 %v2944_v16 }
  0x7a   : > { %497 = vmatmul.mubr.f32.vlgmr.msra.gmra.mrb[0].mxu0 %v335_v49  ;;  %641 = vmatmul.mubr.f32.vlgmr.msra.gmra.mrb[0].mxu1 %v3362_v50 }
  0x7b   : > { %646 = vmatprep.mubr.f32.mxu1 %v3187_v0  ;;  %502 = vmatprep.mubr.f32.mxu0 %v3187_v0 }
  0x7c   : > { %2947 = vmatpush3.bf16.msra.mxu1 %v2944_v16  ;;  %v381_v16 = vld [vmem:[#allocation4 + $0x70] sm:$0xff] }
  0x7e   : > { %647 = vmatmul.mubr.f32.gmra.mrb[2].mxu1 %v3367_v51  ;;  %503 = vmatmul.mubr.f32.gmra.mrb[2].mxu0 %v3371_v52 }
  0x7f   : > { %508 = vmatprep.mubr.f32.mxu0 %v3187_v0  ;;  %652 = vmatprep.mubr.f32.mxu1 %v3187_v0 }
  0x82   : > { %509 = vmatmul.mubr.f32.gmra.mrb[4].mxu0 %v3377_v53  ;;  %653 = vmatmul.mubr.f32.gmra.mrb[4].mxu1 %v3381_v54 }
  0x83   : > { %514 = vmatprep.mubr.f32.mxu0 %v3187_v0  ;;  %658 = vmatprep.mubr.f32.mxu1 %v3187_v0 }
  0x86   : > { %515 = vmatmul.mubr.f32.gmra.mrb[6].mxu0 %v3387_v55  ;;  %659 = vmatmul.mubr.f32.gmra.mrb[6].mxu1 %v3391_v56 }
  0x87   : > { %520 = vmatprep.mubr.f32.mxu0 %v3187_v0  ;;  %664 = vmatprep.mubr.f32.mxu1 %v3187_v0 }
  0x8a   : > { %521 = vmatmul.mubr.f32.gmra.mrb[8].mxu0 %v3397_v57  ;;  %665 = vmatmul.mubr.f32.gmra.mrb[8].mxu1 %v3401_v58 }
  0x8b   : > { %526 = vmatprep.mubr.f32.mxu0 %v3187_v0  ;;  %670 = vmatprep.mubr.f32.mxu1 %v3187_v0 }
  0x8e   : > { %527 = vmatmul.mubr.f32.gmra.mrb[10].mxu0 %v3407_v59  ;;  %671 = vmatmul.mubr.f32.gmra.mrb[10].mxu1 %v3411_v60 }
  0x8f   : > { %532 = vmatprep.mubr.f32.mxu0 %v3187_v0  ;;  %676 = vmatprep.mubr.f32.mxu1 %v3187_v0 }
  0x92   : > { %533 = vmatmul.mubr.f32.gmra.mrb[12].mxu0 %v3417_v61  ;;  %677 = vmatmul.mubr.f32.gmra.mrb[12].mxu1 %v3421_v62 }
  0x93   : > { %538 = vmatprep.mubr.f32.mxu0 %v3187_v0  ;;  %682 = vmatprep.mubr.f32.mxu1 %v3187_v0 }
  0x96   : > { %539 = vmatmul.mubr.f32.gmra.mrb[14].mxu0 %v3427_v63  ;;  %683 = vmatmul.mubr.f32.gmra.mrb[14].mxu1 %v3431_v1 }
  0x97   : > { %544 = vmatprep.mubr.f32.mxu0 %v3187_v0  ;;  %2864 = vmatprep.mubr.f32.mxu1 %v335_v49 }
  0x9a   : > { %545 = vmatmul.mubr.f32.gmra.mrb[16].mxu0 %v3437_v2 }
  0x9b   : > { %550 = vmatprep.mubr.f32.mxu0 %v3187_v0 }
  0x9e   : > { %551 = vmatmul.mubr.f32.gmra.mrb[18].mxu0 %v3442_v3 }
  0x9f   : > { %556 = vmatprep.mubr.f32.mxu0 %v3187_v0 }
  0xa2   : > { %557 = vmatmul.mubr.f32.gmra.mrb[20].mxu0 %v3447_v4 }
  0xa3   : > { %562 = vmatprep.mubr.f32.mxu0 %v3187_v0 }
  0xa6   : > { %563 = vmatmul.mubr.f32.gmra.mrb[22].mxu0 %v3452_v5 }
  0xa7   : > { %568 = vmatprep.mubr.f32.mxu0 %v3187_v0 }
  0xaa   : > { %569 = vmatmul.mubr.f32.gmra.mrb[24].mxu0 %v3457_v6 }
  0xab   : > { %574 = vmatprep.mubr.f32.mxu0 %v3187_v0 }
  0xae   : > { %575 = vmatmul.mubr.f32.gmra.mrb[26].mxu0 %v3462_v7 }
  0xaf   : > { %580 = vmatprep.mubr.f32.mxu0 %v3187_v0 }
  0xb2   : > { %581 = vmatmul.mubr.f32.gmra.mrb[28].mxu0 %v3467_v8 }
  0xb3   : > { %586 = vmatprep.mubr.f32.mxu0 %v3187_v0 }
  0xb6   : > { %587 = vmatmul.mubr.f32.gmra.mrb[30].mxu0 %v3472_v9 }
  0xb7   : > { %592 = vmatprep.mubr.f32.mxu0 %v3187_v0 }
  0xba   : > { %593 = vmatmul.mubr.f32.gmra.mrb[32].mxu0 %v3477_v10 }
  0xbb   : > { %598 = vmatprep.mubr.f32.mxu0 %v3187_v0 }
  0xbe   : > { %599 = vmatmul.mubr.f32.gmra.mrb[34].mxu0 %v3482_v11 }
  0xbf   : > { %604 = vmatprep.mubr.f32.mxu0 %v3187_v0 }
  0xc2   : > { %605 = vmatmul.mubr.f32.gmra.mrb[36].mxu0 %v3487_v12 }
  0xc3   : > { %610 = vmatprep.mubr.f32.mxu0 %v3187_v0 }
  0xc6   : > { %611 = vmatmul.mubr.f32.gmra.mrb[38].mxu0 %v3492_v13 }
  0xc7   : > { %616 = vmatprep.mubr.f32.mxu0 %v3187_v0 }
  0xca   : > { %617 = vmatmul.mubr.f32.gmra.mrb[40].mxu0 %v3497_v14 }
  0xcb   : > { %622 = vmatprep.mubr.f32.mxu0 %v3187_v0 }
  0xce   : > { %623 = vmatmul.mubr.f32.gmra.mrb[42].mxu0 %v3502_v15 }
  0xcf   : > { %628 = vmatprep.mubr.f32.mxu0 %v3187_v0 }
  0xd2   : > { %629 = vmatmul.mubr.f32.gmra.mrb[44].mxu0 %v3507_v17 }
  0xd3   : > { %634 = vmatprep.mubr.f32.mxu0 %v3187_v0  ;;  %v3528_v0 = vrot.slane %v415_v20, %v423_v21 }
  0xd6   : > { %635 = vmatmul.mubr.f32.gmra.mrb[46].mxu0 %v3521_v22 }
 0x14d   : > { %v498_v24 = vpop.f32.mrb[0].mxu0  ;;  %v642_v25 = vpop.f32.mrb[0].mxu1 }
 0x14e   : > { %v3537_v26 = vadd.f32 %v498_v24, %v3526_v23  ;;  %v3540_v27 = vadd.f32 %v642_v25, %v3526_v23  ;;  %v644_v28 = vpop.f32.mrb[1].mxu1  ;;  %v500_v29 = vpop.f32.mrb[1].mxu0 }
 0x14f   : > { %v3549_v30 = vadd.f32 %v644_v28, %v3528_v0  ;;  %v3552_v31 = vadd.f32 %v500_v29, %v3528_v0  ;;  %v375_v29 = vld [vmem:[#allocation4 + $0x40] sm:$0xff] }
 0x150   : > { %915 = vst.msk [vmem:[%s3534_s14] sm:$0xff] %vm914_vm0, %v3537_v26  ;;  %939 = vst.msk [vmem:[%s3534_s14 + $0xc0] sm:$0xff] %vm914_vm0, %v3540_v27  ;;  %979 = vrot.lane.b32.xlu0 %v3537_v26, %s3188_s7 }
 0x151   : > { %1390 = vst.msk [vmem:[%s3546_s8 + $0xc0] sm:$0xff] %vm914_vm0, %v3549_v30  ;;  %1366 = vst.msk [vmem:[%s3546_s8] sm:$0xff] %vm914_vm0, %v3552_v31  ;;  %v648_v32 = vpop.f32.mrb[2].mxu1  ;;  %v504_v33 = vpop.f32.mrb[2].mxu0 }
 0x152   : > { %v3569_v34 = vadd.f32 %v648_v32, %v3526_v23  ;;  %v650_v35 = vpop.f32.mrb[3].mxu1  ;;  %v3572_v36 = vadd.f32 %v504_v33, %v3526_v23  ;;  %v506_v37 = vpop.f32.mrb[3].mxu0  ;;  %v378_v32 = vld [vmem:[#allocation4 + $0x58] sm:$0xff] }
 0x153   : > { %v3575_v38 = vadd.f32 %v650_v35, %v3528_v0  ;;  %v3578_v39 = vadd.f32 %v506_v37, %v3528_v0  ;;  %v2948_v37 = vpack.c.bf16 %v378_v32, %v375_v29 }
 0x154   : > { %940 = vst.msk [vmem:[%s3534_s14 + $0xc8] sm:$0xff] %vm914_vm0, %v3569_v34  ;;  %1029 = vrot.lane.b32.xlu1 %v3569_v34, %s3188_s7  ;;  %916 = vst.msk [vmem:[%s3534_s14 + $0x8] sm:$0xff] %vm914_vm0, %v3572_v36  ;;  %1027 = vrot.lane.b32.xlu0 %v3540_v27, %s3188_s7 }
 0x155   : > { %1391 = vst.msk [vmem:[%s3546_s8 + $0xc8] sm:$0xff] %vm914_vm0, %v3575_v38  ;;  %1367 = vst.msk [vmem:[%s3546_s8 + $0x8] sm:$0xff] %vm914_vm0, %v3578_v39  ;;  %v510_v40 = vpop.f32.mrb[4].mxu0  ;;  %v654_v41 = vpop.f32.mrb[4].mxu1  ;;  %2949 = vmatprep.subr.bf16.mxu1 %v2948_v37 }
 0x156   : > { %v3597_v42 = vadd.f32 %v510_v40, %v3526_v23  ;;  %v512_v43 = vpop.f32.mrb[5].mxu0  ;;  %v3600_v44 = vadd.f32 %v654_v41, %v3526_v23  ;;  %v656_v45 = vpop.f32.mrb[5].mxu1  ;;  %2951 = vmatpush3.bf16.msra.mxu1 %v2948_v37 }
 0x157   : > { %v3603_v48 = vadd.f32 %v512_v43, %v3528_v0  ;;  %v3606_v49 = vadd.f32 %v656_v45, %v3528_v0 }
 0x158   : > { %1110 = vrot.lane.b32.xlu1 %v3572_v36, %s3189_s9  ;;  %1108 = vrot.lane.b32.xlu0 %v3537_v26, %s3189_s9  ;;  %917 = vst.msk [vmem:[%s3534_s14 + $0x10] sm:$0xff] %vm914_vm0, %v3597_v42  ;;  %941 = vst.msk [vmem:[%s3534_s14 + $0xd0] sm:$0xff] %vm914_vm0, %v3600_v44 }
 0x159   : > { %1368 = vst.msk [vmem:[%s3546_s8 + $0x10] sm:$0xff] %vm914_vm0, %v3603_v48  ;;  %v516_v19 = vpop.f32.mrb[6].mxu0  ;;  %1392 = vst.msk [vmem:[%s3546_s8 + $0xd0] sm:$0xff] %vm914_vm0, %v3606_v49  ;;  %v660_v20 = vpop.f32.mrb[6].mxu1 }
 0x15a   : > { %v3625_v21 = vadd.f32 %v516_v19, %v3526_v23  ;;  %v518_v24 = vpop.f32.mrb[7].mxu0  ;;  %v3628_v25 = vadd.f32 %v660_v20, %v3526_v23  ;;  %v662_v28 = vpop.f32.mrb[7].mxu1  ;;  %v384_v19 = vld [vmem:[#allocation4 + $0x88] sm:$0xff] }
 0x15b   : > { %v3631_v33 = vadd.f32 %v518_v24, %v3528_v0  ;;  %v3634_v35 = vadd.f32 %v662_v28, %v3528_v0  ;;  %v2952_v28 = vpack.c.bf16 %v384_v19, %v381_v16 }
 0x15c   : > { %1158 = vrot.lane.b32.xlu1 %v3569_v34, %s3189_s9  ;;  %1156 = vrot.lane.b32.xlu0 %v3540_v27, %s3189_s9  ;;  %918 = vst.msk [vmem:[%s3534_s14 + $0x18] sm:$0xff] %vm914_vm0, %v3625_v21  ;;  %942 = vst.msk [vmem:[%s3534_s14 + $0xd8] sm:$0xff] %vm914_vm0, %v3628_v25 }
 0x15d   : > { %1369 = vst.msk [vmem:[%s3546_s8 + $0x18] sm:$0xff] %vm914_vm0, %v3631_v33  ;;  %1393 = vst.msk [vmem:[%s3546_s8 + $0xd8] sm:$0xff] %vm914_vm0, %v3634_v35  ;;  %v522_v40 = vpop.f32.mrb[8].mxu0  ;;  %v666_v41 = vpop.f32.mrb[8].mxu1  ;;  %2953 = vmatprep.subr.bf16.mxu1 %v2952_v28 }
 0x15e   : > { %v3653_v43 = vadd.f32 %v522_v40, %v3526_v23  ;;  %v524_v45 = vpop.f32.mrb[9].mxu0  ;;  %v3656_v46 = vadd.f32 %v666_v41, %v3526_v23  ;;  %v668_v47 = vpop.f32.mrb[9].mxu1  ;;  %2955 = vmatpush3.bf16.msra.mxu1 %v2952_v28 }
 0x15f   : > { %v3659_v20 = vadd.f32 %v524_v45, %v3528_v0  ;;  %v3662_v24 = vadd.f32 %v668_v47, %v3528_v0  ;;  %v387_v45 = vld [vmem:[#allocation4 + $0xa0] sm:$0xff]  ;;  %v390_v47 = vld [vmem:[#allocation4 + $0xb8] sm:$0xff] }
 0x160   : > { %1239 = vrot.lane.b32.xlu1 %v3572_v36, %s3190_s30  ;;  %1237 = vrot.lane.b32.xlu0 %v3537_v26, %s3190_s30  ;;  %919 = vst.msk [vmem:[%s3534_s14 + $0x20] sm:$0xff] %vm914_vm0, %v3653_v43  ;;  %943 = vst.msk [vmem:[%s3534_s14 + $0xe0] sm:$0xff] %vm914_vm0, %v3656_v46  ;;  %v2956_v18 = vpack.c.bf16 %v390_v47, %v387_v45  ;;  %v396_v45 = vld [vmem:[#allocation4 + $0xe8] sm:$0xff] }
 0x161   : > { %5363 = vst [vmem:[#allocation9_spill] sm:$0xff] %v3662_v24  ;;  %1370 = vst.msk [vmem:[%s3546_s8 + $0x20] sm:$0xff] %vm914_vm0, %v3659_v20  ;;  %v528_v29 = vpop.f32.mrb[10].mxu0  ;;  %v672_v32 = vpop.f32.mrb[10].mxu1 }
 0x162   : > { %1394 = vst.msk [vmem:[%s3546_s8 + $0xe0] sm:$0xff] %vm914_vm0, %v3662_v24  ;;  %v3681_v26 = vadd.f32 %v528_v29, %v3526_v23  ;;  %v530_v37 = vpop.f32.mrb[11].mxu0  ;;  %v3684_v40 = vadd.f32 %v672_v32, %v3526_v23  ;;  %v674_v41 = vpop.f32.mrb[11].mxu1  ;;  %2957 = vmatprep.subr.bf16.mxu1 %v2956_v18 }
 0x163   : > { %v3687_v16 = vadd.f32 %v530_v37, %v3528_v0  ;;  %v3690_v19 = vadd.f32 %v674_v41, %v3528_v0  ;;  %2959 = vmatpush3.bf16.msra.mxu1 %v2956_v18  ;;  %v393_v41 = vld [vmem:[#allocation4 + $0xd0] sm:$0xff] }
 0x164   : > { %1287 = vrot.lane.b32.xlu1 %v3569_v34, %s3190_s30  ;;  %1285 = vrot.lane.b32.xlu0 %v3540_v27, %s3190_s30  ;;  %920 = vst.msk [vmem:[%s3534_s14 + $0x28] sm:$0xff] %vm914_vm0, %v3681_v26  ;;  %944 = vst.msk [vmem:[%s3534_s14 + $0xe8] sm:$0xff] %vm914_vm0, %v3684_v40  ;;  %v2960_v24 = vpack.c.bf16 %v396_v45, %v393_v41  ;;  %v399_v45 = vld [vmem:[#allocation4 + $0x100] sm:$0xff] }
 0x165   : > { %5364 = vst [vmem:[#allocation10_spill] sm:$0xff] %v3690_v19  ;;  %1371 = vst.msk [vmem:[%s3546_s8 + $0x28] sm:$0xff] %vm914_vm0, %v3687_v16  ;;  %v534_v28 = vpop.f32.mrb[12].mxu0  ;;  %v678_v29 = vpop.f32.mrb[12].mxu1 }
 0x166   : > { %1395 = vst.msk [vmem:[%s3546_s8 + $0xe8] sm:$0xff] %vm914_vm0, %v3690_v19  ;;  %v3709_v27 = vadd.f32 %v534_v28, %v3526_v23  ;;  %v536_v34 = vpop.f32.mrb[13].mxu0  ;;  %v3712_v32 = vadd.f32 %v678_v29, %v3526_v23  ;;  %v680_v37 = vpop.f32.mrb[13].mxu1  ;;  %2961 = vmatprep.subr.bf16.mxu1 %v2960_v24 }
 0x167   : > { %v3715_v47 = vadd.f32 %v536_v34, %v3528_v0  ;;  %v3718_v19 = vadd.f32 %v680_v37, %v3528_v0  ;;  %2963 = vmatpush3.bf16.msra.mxu1 %v2960_v24  ;;  %v405_v24 = vld [vmem:[#allocation4 + $0x130] sm:$0xff] }
 0x168   : > { %5365 = vst [vmem:[#allocation11_spill] sm:$0xff] %v3709_v27  ;;  %5366 = vst [vmem:[#allocation12_spill] sm:$0xff] %v3712_v32  ;;  %1432 = vrot.lane.b32.xlu1 %v3578_v39, %s3188_s7  ;;  %1430 = vrot.lane.b32.xlu0 %v3552_v31, %s3188_s7 }
 0x169   : > { %5367 = vst [vmem:[#allocation13_spill] sm:$0xff] %v3715_v47  ;;  %5368 = vst [vmem:[#allocation14_spill] sm:$0xff] %v3718_v19  ;;  %v540_v18 = vpop.f32.mrb[14].mxu0  ;;  %v684_v28 = vpop.f32.mrb[14].mxu1 }
 0x16a   : > { %921 = vst.msk [vmem:[%s3534_s14 + $0x30] sm:$0xff] %vm914_vm0, %v3709_v27  ;;  %945 = vst.msk [vmem:[%s3534_s14 + $0xf0] sm:$0xff] %vm914_vm0, %v3712_v32  ;;  %v3737_v29 = vadd.f32 %v540_v18, %v3526_v23  ;;  %v542_v34 = vpop.f32.mrb[15].mxu0  ;;  %v3740_v37 = vadd.f32 %v684_v28, %v3526_v23  ;;  %v686_v41 = vpop.f32.mrb[15].mxu1  ;;  %v411_v28 = vld [vmem:[#allocation4 + $0x160] sm:$0xff] }
 0x16b   : > { %1372 = vst.msk [vmem:[%s3546_s8 + $0x30] sm:$0xff] %vm914_vm0, %v3715_v47  ;;  %1396 = vst.msk [vmem:[%s3546_s8 + $0xf0] sm:$0xff] %vm914_vm0, %v3718_v19  ;;  %v402_v47 = vld [vmem:[#allocation4 + $0x118] sm:$0xff]  ;;  %v3743_v32 = vadd.f32 %v542_v34, %v3528_v0  ;;  %v3746_v19 = vadd.f32 %v686_v41, %v3528_v0 }
 0x16c   : > { %v2964_v27 = vpack.c.bf16 %v402_v47, %v399_v45  ;;  %1480 = vrot.lane.b32.xlu1 %v3575_v38, %s3188_s7  ;;  %1478 = vrot.lane.b32.xlu0 %v3549_v30, %s3188_s7  ;;  %922 = vst.msk [vmem:[%s3534_s14 + $0x38] sm:$0xff] %vm914_vm0, %v3737_v29  ;;  %946 = vst.msk [vmem:[%s3534_s14 + $0xf8] sm:$0xff] %vm914_vm0, %v3740_v37  ;;  %v408_v47 = vld [vmem:[#allocation4 + $0x148] sm:$0xff]  ;;  %v414_v34 = vld [vmem:[#allocation4 + $0x178] sm:$0xff] }
 0x16d   : > { %1373 = vst.msk [vmem:[%s3546_s8 + $0x38] sm:$0xff] %vm914_vm0, %v3743_v32  ;;  %1397 = vst.msk [vmem:[%s3546_s8 + $0xf8] sm:$0xff] %vm914_vm0, %v3746_v19  ;;  %v2968_v18 = vpack.c.bf16 %v408_v47, %v405_v24  ;;  %v2972_v41 = vpack.c.bf16 %v414_v34, %v411_v28 }
 0x16e   : > { %2965 = vmatprep.subr.bf16.mxu1 %v2964_v27 }
 0x16f   : > { %2967 = vmatpush3.bf16.msra.mxu1 %v2964_v27  ;;  %v546_v27 = vpop.f32.mrb[16].mxu0 }
 0x170   : > { %1561 = vrot.lane.b32.xlu1 %v3578_v39, %s3189_s9  ;;  %1559 = vrot.lane.b32.xlu0 %v3552_v31, %s3189_s9  ;;  %v3783_v45 = vadd.f32 %v546_v27, %v3526_v23 }
 0x171   : > { %2969 = vmatprep.subr.bf16.mxu1 %v2968_v18 }
 0x172   : > { %923 = vst.msk [vmem:[%s3534_s14 + $0x40] sm:$0xff] %vm914_vm0, %v3783_v45 }
 0x173   : > { %2971 = vmatpush3.bf16.msra.mxu1 %v2968_v18 }
 0x174   : > { %1609 = vrot.lane.b32.xlu1 %v3575_v38, %s3189_s9  ;;  %1607 = vrot.lane.b32.xlu0 %v3549_v30, %s3189_s9 }
 0x175   : > { %2973 = vmatprep.subr.bf16.mxu1 %v2972_v41 }
 0x177   : > { %2975 = vmatpush3.bf16.msra.mxu1 %v2972_v41 }
 0x178   : > { %1690 = vrot.lane.b32.xlu1 %v3578_v39, %s3190_s30  ;;  %1688 = vrot.lane.b32.xlu0 %v3552_v31, %s3190_s30  ;;  %v548_v39 = vpop.f32.mrb[17].mxu0 }
 0x179   : > { %v3786_v24 = vadd.f32 %v548_v39, %v3528_v0 }
 0x17a   : > { %2865 = vmatmul.mubr.f32.vlgmr.msra.gmra.mrb[16].mxu1 %v3371_v52  ;;  %v552_v52 = vpop.f32.mrb[18].mxu0 }
 0x17b   : > { %2867 = vmatprep.mubr.f32.mxu1 %v3377_v53  ;;  %1374 = vst.msk [vmem:[%s3546_s8 + $0x40] sm:$0xff] %vm914_vm0, %v3786_v24  ;;  %v3801_v53 = vadd.f32 %v552_v52, %v3526_v23  ;;  %v554_v31 = vpop.f32.mrb[19].mxu0 }
 0x17c   : > { %983 = vrot.lane.b32.xlu1 %v3597_v42, %s3188_s7  ;;  %981 = vrot.lane.b32.xlu0 %v3572_v36, %s3188_s7 }
 0x17d   : > { %924 = vst.msk [vmem:[%s3534_s14 + $0x48] sm:$0xff] %vm914_vm0, %v3801_v53 }
 0x17e   : > { %2868 = vmatmul.mubr.f32.gmra.mrb[18].mxu1 %v3387_v55  ;;  %v3804_v55 = vadd.f32 %v554_v31, %v3528_v0 }
 0x17f   : > { %2870 = vmatprep.mubr.f32.mxu1 %v3397_v57  ;;  %v558_v57 = vpop.f32.mrb[20].mxu0 }
 0x180   : > { %985 = vrot.lane.b32.xlu1 %v3625_v21, %s3188_s7  ;;  %1031 = vrot.lane.b32.xlu0 %v3600_v44, %s3188_s7  ;;  %1375 = vst.msk [vmem:[%s3546_s8 + $0x48] sm:$0xff] %vm914_vm0, %v3804_v55 }
 0x182   : > { %2871 = vmatmul.mubr.f32.gmra.mrb[20].mxu1 %v3407_v59  ;;  %v3843_v59 = vadd.f32 %v558_v57, %v3526_v23 }
 0x183   : > { %2873 = vmatprep.mubr.f32.mxu1 %v3417_v61  ;;  %v560_v61 = vpop.f32.mrb[21].mxu0 }
 0x184   : > { %1033 = vrot.lane.b32.xlu1 %v3628_v25, %s3188_s7  ;;  %1112 = vrot.lane.b32.xlu0 %v3597_v42, %s3189_s9  ;;  %925 = vst.msk [vmem:[%s3534_s14 + $0x50] sm:$0xff] %vm914_vm0, %v3843_v59 }
 0x186   : > { %2874 = vmatmul.mubr.f32.gmra.mrb[22].mxu1 %v3427_v63  ;;  %v3846_v63 = vadd.f32 %v560_v61, %v3528_v0 }
 0x187   : > { %2876 = vmatprep.mubr.f32.mxu1 %v3437_v2  ;;  %v564_v2 = vpop.f32.mrb[22].mxu0 }
 0x188   : > { %1114 = vrot.lane.b32.xlu1 %v3625_v21, %s3189_s9  ;;  %1160 = vrot.lane.b32.xlu0 %v3600_v44, %s3189_s9  ;;  %1376 = vst.msk [vmem:[%s3546_s8 + $0x50] sm:$0xff] %vm914_vm0, %v3846_v63 }
 0x18a   : > { %2877 = vmatmul.mubr.f32.gmra.mrb[24].mxu1 %v3442_v3  ;;  %v3861_v3 = vadd.f32 %v564_v2, %v3526_v23 }
 0x18b   : > { %2879 = vmatprep.mubr.f32.mxu1 %v3447_v4  ;;  %v566_v4 = vpop.f32.mrb[23].mxu0 }
 0x18c   : > { %1162 = vrot.lane.b32.xlu1 %v3628_v25, %s3189_s9  ;;  %1241 = vrot.lane.b32.xlu0 %v3597_v42, %s3190_s30  ;;  %926 = vst.msk [vmem:[%s3534_s14 + $0x58] sm:$0xff] %vm914_vm0, %v3861_v3 }
 0x18e   : > { %2880 = vmatmul.mubr.f32.gmra.mrb[26].mxu1 %v3452_v5  ;;  %v3864_v5 = vadd.f32 %v566_v4, %v3528_v0 }
 0x18f   : > { %2882 = vmatprep.mubr.f32.mxu1 %v3457_v6  ;;  %v570_v6 = vpop.f32.mrb[24].mxu0 }
 0x190   : > { %1243 = vrot.lane.b32.xlu1 %v3625_v21, %s3190_s30  ;;  %1289 = vrot.lane.b32.xlu0 %v3600_v44, %s3190_s30  ;;  %1377 = vst.msk [vmem:[%s3546_s8 + $0x58] sm:$0xff] %vm914_vm0, %v3864_v5 }
 0x192   : > { %2883 = vmatmul.mubr.f32.gmra.mrb[28].mxu1 %v3462_v7  ;;  %v572_v7 = vpop.f32.mrb[25].mxu0 }
 0x193   : > { %2885 = vmatprep.mubr.f32.mxu1 %v3467_v8  ;;  %v3907_v8 = vadd.f32 %v572_v7, %v3528_v0 }
 0x194   : > { %1291 = vrot.lane.b32.xlu1 %v3628_v25, %s3190_s30  ;;  %1434 = vrot.lane.b32.xlu0 %v3603_v48, %s3188_s7 }
 0x195   : > { %1378 = vst.msk [vmem:[%s3546_s8 + $0x60] sm:$0xff] %vm914_vm0, %v3907_v8 }
 0x196   : > { %2886 = vmatmul.mubr.f32.gmra.mrb[30].mxu1 %v3472_v9 }
 0x197   : > { %2888 = vmatprep.mubr.f32.mxu1 %v3477_v10 }
 0x198   : > { %1436 = vrot.lane.b32.xlu1 %v3631_v33, %s3188_s7  ;;  %1482 = vrot.lane.b32.xlu0 %v3606_v49, %s3188_s7 }
 0x19a   : > { %2889 = vmatmul.mubr.f32.gmra.mrb[32].mxu1 %v3482_v11 }
 0x19b   : > { %2891 = vmatprep.mubr.f32.mxu1 %v3487_v12 }
 0x19c   : > { %1484 = vrot.lane.b32.xlu1 %v3634_v35, %s3188_s7  ;;  %1563 = vrot.lane.b32.xlu0 %v3603_v48, %s3189_s9 }
 0x19e   : > { %2892 = vmatmul.mubr.f32.gmra.mrb[34].mxu1 %v3492_v13 }
 0x19f   : > { %2894 = vmatprep.mubr.f32.mxu1 %v3497_v14  ;;  %v5370_v14 = vld [vmem:[#allocation10_spill] sm:$0xff] }
 0x1a0   : > { %1565 = vrot.lane.b32.xlu1 %v3631_v33, %s3189_s9  ;;  %1611 = vrot.lane.b32.xlu0 %v3606_v49, %s3189_s9 }
 0x1a2   : > { %2895 = vmatmul.mubr.f32.gmra.mrb[36].mxu1 %v3502_v15 }
 0x1a3   : > { %2897 = vmatprep.mubr.f32.mxu1 %v3507_v17 }
 0x1a4   : > { %1613 = vrot.lane.b32.xlu1 %v3634_v35, %s3189_s9  ;;  %1692 = vrot.lane.b32.xlu0 %v3603_v48, %s3190_s30 }
 0x1a6   : > { %2898 = vmatmul.mubr.f32.gmra.mrb[38].mxu1 %v3521_v22 }
 0x1a7   : > { %2900 = vmatprep.mubr.f32.mxu1 %v3362_v50  ;;  %v3903_v50 = vadd.f32 %v570_v6, %v3526_v23 }
 0x1a8   : > { %1694 = vrot.lane.b32.xlu1 %v3631_v33, %s3190_s30  ;;  %987 = vrot.lane.b32.xlu0 %v3653_v43, %s3188_s7 }
 0x1a9   : > { %927 = vst.msk [vmem:[%s3534_s14 + $0x60] sm:$0xff] %vm914_vm0, %v3903_v50 }
 0x1aa   : > { %2901 = vmatmul.mubr.f32.gmra.mrb[40].mxu1 %v3367_v51  ;;  %v576_v51 = vpop.f32.mrb[26].mxu0 }
 0x1ab   : > { %2903 = vmatprep.mubr.f32.mxu1 %v3381_v54  ;;  %v3921_v54 = vadd.f32 %v576_v51, %v3526_v23 }
 0x1ac   : > { %989 = vrot.lane.b32.xlu1 %v3681_v26, %s3188_s7  ;;  %1035 = vrot.lane.b32.xlu0 %v3656_v46, %s3188_s7 }
 0x1ad   : > { %928 = vst.msk [vmem:[%s3534_s14 + $0x68] sm:$0xff] %vm914_vm0, %v3921_v54 }
 0x1ae   : > { %2904 = vmatmul.mubr.f32.gmra.mrb[42].mxu1 %v3391_v56  ;;  %v578_v56 = vpop.f32.mrb[27].mxu0 }
 0x1af   : > { %2906 = vmatprep.mubr.f32.mxu1 %v3401_v58  ;;  %v3925_v58 = vadd.f32 %v578_v56, %v3528_v0  ;;  %v5373_v56 = vld [vmem:[#allocation13_spill] sm:$0xff] }
 0x1b0   : > { %1037 = vrot.lane.b32.xlu1 %v3684_v40, %s3188_s7  ;;  %1116 = vrot.lane.b32.xlu0 %v3653_v43, %s3189_s9 }
 0x1b1   : > { %1379 = vst.msk [vmem:[%s3546_s8 + $0x68] sm:$0xff] %vm914_vm0, %v3925_v58 }
 0x1b2   : > { %2907 = vmatmul.mubr.f32.gmra.mrb[44].mxu1 %v3411_v60 }
 0x1b3   : > { %2909 = vmatprep.mubr.f32.mxu1 %v3421_v62  ;;  %v5369_v62 = vld [vmem:[#allocation9_spill] sm:$0xff] }
 0x1b4   : > { %1118 = vrot.lane.b32.xlu1 %v3681_v26, %s3189_s9  ;;  %1164 = vrot.lane.b32.xlu0 %v3656_v46, %s3189_s9 }
 0x1b6   : > { %2910 = vmatmul.mubr.f32.gmra.mrb[46].mxu1 %v3431_v1  ;;  %v582_v1 = vpop.f32.mrb[28].mxu0 }
 0x1b7   : > { %v3958_v9 = vadd.f32 %v582_v1, %v3526_v23  ;;  %v584_v10 = vpop.f32.mrb[29].mxu0 }
 0x1b8   : > { %1166 = vrot.lane.b32.xlu1 %v3684_v40, %s3189_s9  ;;  %1245 = vrot.lane.b32.xlu0 %v3653_v43, %s3190_s30  ;;  %v3961_v13 = vadd.f32 %v584_v10, %v3528_v0  ;;  %v588_v15 = vpop.f32.mrb[30].mxu0  ;;  %v5371_v43 = vld [vmem:[#allocation11_spill] sm:$0xff] }
 0x1b9   : > { %929 = vst.msk [vmem:[%s3534_s14 + $0x70] sm:$0xff] %vm914_vm0, %v3958_v9  ;;  %v3978_v17 = vadd.f32 %v588_v15, %v3526_v23  ;;  %v590_v22 = vpop.f32.mrb[31].mxu0 }
 0x1ba   : > { %1380 = vst.msk [vmem:[%s3546_s8 + $0x70] sm:$0xff] %vm914_vm0, %v3961_v13  ;;  %v3981_v44 = vadd.f32 %v590_v22, %v3528_v0 }
 0x1bb   : > { %930 = vst.msk [vmem:[%s3534_s14 + $0x78] sm:$0xff] %vm914_vm0, %v3978_v17 }
 0x1bc   : > { %1247 = vrot.lane.b32.xlu1 %v3681_v26, %s3190_s30  ;;  %1293 = vrot.lane.b32.xlu0 %v3656_v46, %s3190_s30  ;;  %1381 = vst.msk [vmem:[%s3546_s8 + $0x78] sm:$0xff] %vm914_vm0, %v3981_v44 }
 0x1c0   : > { %1295 = vrot.lane.b32.xlu1 %v3684_v40, %s3190_s30  ;;  %1438 = vrot.lane.b32.xlu0 %v3659_v20, %s3188_s7  ;;  %v594_v40 = vpop.f32.mrb[32].mxu0 }
 0x1c1   : > { %v596_v47 = vpop.f32.mrb[33].mxu0 }
 0x1c2   : > { %v980_v60 = vpop.permute.xlu0 %979  ;;  %v4025_v34 = vadd.f32 %v596_v47, %v3528_v0  ;;  %v600_v41 = vpop.f32.mrb[34].mxu0 }
 0x1c3   : > { %2490 = vst.msk [vmem:[%s3534_s14 + $0x100] sm:$0xff] %vm914_vm0, %v980_v60  ;;  %v4042_v27 = vadd.f32 %v600_v41, %v3526_v23  ;;  %v602_v39 = vpop.f32.mrb[35].mxu0 }
 0x1c4   : > { %1440 = vrot.lane.b32.xlu1 %v3687_v16, %s3188_s7  ;;  %1486 = vrot.lane.b32.xlu0 %v5369_v62, %s3188_s7  ;;  %1382 = vst.msk [vmem:[%s3546_s8 + $0x80] sm:$0xff] %vm914_vm0, %v4025_v34  ;;  %v4045_v57 = vadd.f32 %v602_v39, %v3528_v0  ;;  %v606_v60 = vpop.f32.mrb[36].mxu0 }
 0x1c5   : > { %932 = vst.msk [vmem:[%s3534_s14 + $0x88] sm:$0xff] %vm914_vm0, %v4042_v27  ;;  %v608_v1 = vpop.f32.mrb[37].mxu0 }
 0x1c6   : > { %v1030_v11 = vpop.permute.xlu1 %1029  ;;  %v1028_v12 = vpop.permute.xlu0 %1027  ;;  %1383 = vst.msk [vmem:[%s3546_s8 + $0x88] sm:$0xff] %vm914_vm0, %v4045_v57 }
 0x1c7   : > { %2515 = vst.msk [vmem:[%s3534_s14 + $0x1c8] sm:$0xff] %vm914_vm0, %v1030_v11  ;;  %2514 = vst.msk [vmem:[%s3534_s14 + $0x1c0] sm:$0xff] %vm914_vm0, %v1028_v12  ;;  %v4089_v12 = vadd.f32 %v608_v1, %v3528_v0  ;;  %v612_v15 = vpop.f32.mrb[38].mxu0 }
 0x1c8   : > { %1488 = vrot.lane.b32.xlu1 %v5370_v14, %s3188_s7  ;;  %1567 = vrot.lane.b32.xlu0 %v3659_v20, %s3189_s9  ;;  %v4106_v22 = vadd.f32 %v612_v15, %v3526_v23 }
 0x1c9   : > { %1384 = vst.msk [vmem:[%s3546_s8 + $0x90] sm:$0xff] %vm914_vm0, %v4089_v12 }
 0x1ca   : > { %v1111_v36 = vpop.permute.xlu1 %1110  ;;  %v1109_v42 = vpop.permute.xlu0 %1108  ;;  %934 = vst.msk [vmem:[%s3534_s14 + $0x98] sm:$0xff] %vm914_vm0, %v4106_v22 }
 0x1cb   : > { %2523 = vst.msk [vmem:[%s3534_s14 + $0x208] sm:$0xff] %vm914_vm0, %v1111_v36  ;;  %2522 = vst.msk [vmem:[%s3534_s14 + $0x200] sm:$0xff] %vm914_vm0, %v1109_v42  ;;  %v614_v36 = vpop.f32.mrb[39].mxu0 }
 0x1cc   : > { %1569 = vrot.lane.b32.xlu1 %v3687_v16, %s3189_s9  ;;  %1615 = vrot.lane.b32.xlu0 %v5369_v62, %s3189_s9 }
 0x1ce   : > { %v1159_v48 = vpop.permute.xlu1 %1158  ;;  %v1157_v21 = vpop.permute.xlu0 %1156 }
 0x1cf   : > { %2547 = vst.msk [vmem:[%s3534_s14 + $0x2c8] sm:$0xff] %vm914_vm0, %v1159_v48  ;;  %2546 = vst.msk [vmem:[%s3534_s14 + $0x2c0] sm:$0xff] %vm914_vm0, %v1157_v21  ;;  %v4109_v21 = vadd.f32 %v614_v36, %v3528_v0 }
 0x1d0   : > { %1617 = vrot.lane.b32.xlu1 %v5370_v14, %s3189_s9  ;;  %1696 = vrot.lane.b32.xlu0 %v3659_v20, %s3190_s30  ;;  %v5372_v20 = vld [vmem:[#allocation12_spill] sm:$0xff] }
 0x1d1   : > { %1385 = vst.msk [vmem:[%s3546_s8 + $0x98] sm:$0xff] %vm914_vm0, %v4109_v21 }
 0x1d2   : > { %v1240_v25 = vpop.permute.xlu1 %1239  ;;  %v1238_v33 = vpop.permute.xlu0 %1237 }
 0x1d3   : > { %2555 = vst.msk [vmem:[%s3534_s14 + $0x308] sm:$0xff] %vm914_vm0, %v1240_v25  ;;  %2554 = vst.msk [vmem:[%s3534_s14 + $0x300] sm:$0xff] %vm914_vm0, %v1238_v33 }
 0x1d4   : > { %1698 = vrot.lane.b32.xlu1 %v3687_v16, %s3190_s30  ;;  %991 = vrot.lane.b32.xlu0 %v5371_v43, %s3188_s7  ;;  %v4022_v16 = vadd.f32 %v594_v40, %v3526_v23  ;;  %v618_v40 = vpop.f32.mrb[40].mxu0 }
 0x1d5   : > { %v4150_v47 = vadd.f32 %v618_v40, %v3526_v23 }
 0x1d6   : > { %v1288_v46 = vpop.permute.xlu1 %1287  ;;  %v1286_v26 = vpop.permute.xlu0 %1285  ;;  %931 = vst.msk [vmem:[%s3534_s14 + $0x80] sm:$0xff] %vm914_vm0, %v4022_v16 }
 0x1d7   : > { %2579 = vst.msk [vmem:[%s3534_s14 + $0x3c8] sm:$0xff] %vm914_vm0, %v1288_v46  ;;  %2578 = vst.msk [vmem:[%s3534_s14 + $0x3c0] sm:$0xff] %vm914_vm0, %v1286_v26 }
 0x1d8   : > { %993 = vrot.lane.b32.xlu1 %v3737_v29, %s3188_s7  ;;  %1039 = vrot.lane.b32.xlu0 %v5372_v20, %s3188_s7  ;;  %935 = vst.msk [vmem:[%s3534_s14 + $0xa0] sm:$0xff] %vm914_vm0, %v4150_v47 }
 0x1da   : > { %v1433_v18 = vpop.permute.xlu1 %1432  ;;  %v1431_v28 = vpop.permute.xlu0 %1430 }
 0x1db   : > { %2587 = vst.msk [vmem:[%s3546_s8 + $0x108] sm:$0xff] %vm914_vm0, %v1433_v18  ;;  %2586 = vst.msk [vmem:[%s3546_s8 + $0x100] sm:$0xff] %vm914_vm0, %v1431_v28  ;;  %v620_v18 = vpop.f32.mrb[41].mxu0 }
 0x1dc   : > { %1041 = vrot.lane.b32.xlu1 %v3740_v37, %s3188_s7  ;;  %1120 = vrot.lane.b32.xlu0 %v5371_v43, %s3189_s9  ;;  %v4153_v39 = vadd.f32 %v620_v18, %v3528_v0 }
 0x1de   : > { %v1481_v52 = vpop.permute.xlu1 %1480  ;;  %v1479_v31 = vpop.permute.xlu0 %1478  ;;  %1386 = vst.msk [vmem:[%s3546_s8 + $0xa0] sm:$0xff] %vm914_vm0, %v4153_v39 }
 0x1df   : > { %2611 = vst.msk [vmem:[%s3546_s8 + $0x1c8] sm:$0xff] %vm914_vm0, %v1481_v52  ;;  %2610 = vst.msk [vmem:[%s3546_s8 + $0x1c0] sm:$0xff] %vm914_vm0, %v1479_v31 }
 0x1e0   : > { %1122 = vrot.lane.b32.xlu1 %v3737_v29, %s3189_s9  ;;  %1168 = vrot.lane.b32.xlu0 %v5372_v20, %s3189_s9 }
 0x1e2   : > { %v1562_v61 = vpop.permute.xlu1 %1561  ;;  %v1560_v2 = vpop.permute.xlu0 %1559 }
 0x1e3   : > { %2619 = vst.msk [vmem:[%s3546_s8 + $0x208] sm:$0xff] %vm914_vm0, %v1562_v61  ;;  %2618 = vst.msk [vmem:[%s3546_s8 + $0x200] sm:$0xff] %vm914_vm0, %v1560_v2 }
 0x1e4   : > { %1170 = vrot.lane.b32.xlu1 %v3740_v37, %s3189_s9  ;;  %1249 = vrot.lane.b32.xlu0 %v5371_v43, %s3190_s30 }
 0x1e6   : > { %v1610_v4 = vpop.permute.xlu1 %1609  ;;  %v1608_v6 = vpop.permute.xlu0 %1607 }
 0x1e7   : > { %2643 = vst.msk [vmem:[%s3546_s8 + $0x2c8] sm:$0xff] %vm914_vm0, %v1610_v4  ;;  %2642 = vst.msk [vmem:[%s3546_s8 + $0x2c0] sm:$0xff] %vm914_vm0, %v1608_v6 }
 0x1e8   : > { %1251 = vrot.lane.b32.xlu1 %v3737_v29, %s3190_s30  ;;  %1297 = vrot.lane.b32.xlu0 %v5372_v20, %s3190_s30  ;;  %v4086_v29 = vadd.f32 %v606_v60, %v3526_v23 }
 0x1ea   : > { %v1691_v7 = vpop.permute.xlu1 %1690  ;;  %v1689_v51 = vpop.permute.xlu0 %1688  ;;  %933 = vst.msk [vmem:[%s3534_s14 + $0x90] sm:$0xff] %vm914_vm0, %v4086_v29 }
 0x1eb   : > { %2651 = vst.msk [vmem:[%s3546_s8 + $0x308] sm:$0xff] %vm914_vm0, %v1691_v7  ;;  %2650 = vst.msk [vmem:[%s3546_s8 + $0x300] sm:$0xff] %vm914_vm0, %v1689_v51 }
 0x1ec   : > { %1299 = vrot.lane.b32.xlu1 %v3740_v37, %s3190_s30  ;;  %1442 = vrot.lane.b32.xlu0 %v5373_v56, %s3188_s7  ;;  %v5374_v37 = vld [vmem:[#allocation14_spill] sm:$0xff] }
 0x1ee   : > { %v984_v10 = vpop.permute.xlu1 %983  ;;  %v982_v11 = vpop.permute.xlu0 %981 }
 0x1ef   : > { %2492 = vst.msk [vmem:[%s3534_s14 + $0x110] sm:$0xff] %vm914_vm0, %v984_v10  ;;  %2491 = vst.msk [vmem:[%s3534_s14 + $0x108] sm:$0xff] %vm914_vm0, %v982_v11 }
 0x1f0   : > { %1444 = vrot.lane.b32.xlu1 %v3743_v32, %s3188_s7  ;;  %1490 = vrot.lane.b32.xlu0 %v5374_v37, %s3188_s7 }
 0x1f2   : > { %v986_v42 = vpop.permute.xlu1 %985  ;;  %v1032_v48 = vpop.permute.xlu0 %1031 }
 0x1f3   : > { %2493 = vst.msk [vmem:[%s3534_s14 + $0x118] sm:$0xff] %vm914_vm0, %v986_v42  ;;  %2516 = vst.msk [vmem:[%s3534_s14 + $0x1d0] sm:$0xff] %vm914_vm0, %v1032_v48 }
 0x1f4   : > { %1492 = vrot.lane.b32.xlu1 %v3746_v19, %s3188_s7  ;;  %1571 = vrot.lane.b32.xlu0 %v5373_v56, %s3189_s9 }
 0x1f6   : > { %v1034_v25 = vpop.permute.xlu1 %1033  ;;  %v1113_v33 = vpop.permute.xlu0 %1112 }
 0x1f7   : > { %2517 = vst.msk [vmem:[%s3534_s14 + $0x1d8] sm:$0xff] %vm914_vm0, %v1034_v25  ;;  %2524 = vst.msk [vmem:[%s3534_s14 + $0x210] sm:$0xff] %vm914_vm0, %v1113_v33 }
 0x1f8   : > { %1573 = vrot.lane.b32.xlu1 %v3743_v32, %s3189_s9  ;;  %1619 = vrot.lane.b32.xlu0 %v5374_v37, %s3189_s9 }
 0x1fa   : > { %v1115_v43 = vpop.permute.xlu1 %1114  ;;  %v1161_v46 = vpop.permute.xlu0 %1160 }
 0x1fb   : > { %2525 = vst.msk [vmem:[%s3534_s14 + $0x218] sm:$0xff] %vm914_vm0, %v1115_v43  ;;  %2548 = vst.msk [vmem:[%s3534_s14 + $0x2d0] sm:$0xff] %vm914_vm0, %v1161_v46 }
 0x1fc   : > { %1621 = vrot.lane.b32.xlu1 %v3746_v19, %s3189_s9  ;;  %1700 = vrot.lane.b32.xlu0 %v5373_v56, %s3190_s30 }
 0x1fe   : > { %v1163_v26 = vpop.permute.xlu1 %1162  ;;  %v1242_v20 = vpop.permute.xlu0 %1241 }
 0x1ff   : > { %2549 = vst.msk [vmem:[%s3534_s14 + $0x2d8] sm:$0xff] %vm914_vm0, %v1163_v26  ;;  %2556 = vst.msk [vmem:[%s3534_s14 + $0x310] sm:$0xff] %vm914_vm0, %v1242_v20 }
 0x200   : > { %1702 = vrot.lane.b32.xlu1 %v3743_v32, %s3190_s30  ;;  %995 = vrot.lane.b32.xlu0 %v3783_v45, %s3188_s7  ;;  %v624_v32 = vpop.f32.mrb[42].mxu0 }
 0x201   : > { %v4170_v52 = vadd.f32 %v624_v32, %v3526_v23  ;;  %v626_v31 = vpop.f32.mrb[43].mxu0 }
 0x202   : > { %v1244_v28 = vpop.permute.xlu1 %1243  ;;  %v1290_v41 = vpop.permute.xlu0 %1289  ;;  %v4173_v4 = vadd.f32 %v626_v31, %v3528_v0 }
 0x203   : > { %2557 = vst.msk [vmem:[%s3534_s14 + $0x318] sm:$0xff] %vm914_vm0, %v1244_v28  ;;  %2580 = vst.msk [vmem:[%s3534_s14 + $0x3d0] sm:$0xff] %vm914_vm0, %v1290_v41  ;;  %v630_v60 = vpop.f32.mrb[44].mxu0 }
 0x204   : > { %997 = vrot.lane.b32.xlu1 %v3801_v53, %s3188_s7  ;;  %1124 = vrot.lane.b32.xlu0 %v3783_v45, %s3189_s9  ;;  %936 = vst.msk [vmem:[%s3534_s14 + $0xa8] sm:$0xff] %vm914_vm0, %v4170_v52  ;;  %1387 = vst.msk [vmem:[%s3546_s8 + $0xa8] sm:$0xff] %vm914_vm0, %v4173_v4  ;;  %v4214_v1 = vadd.f32 %v630_v60, %v3526_v23 }
 0x206   : > { %v1292_v61 = vpop.permute.xlu1 %1291  ;;  %v1435_v2 = vpop.permute.xlu0 %1434  ;;  %937 = vst.msk [vmem:[%s3534_s14 + $0xb0] sm:$0xff] %vm914_vm0, %v4214_v1 }
 0x207   : > { %2581 = vst.msk [vmem:[%s3534_s14 + $0x3d8] sm:$0xff] %vm914_vm0, %v1292_v61  ;;  %2588 = vst.msk [vmem:[%s3546_s8 + $0x110] sm:$0xff] %vm914_vm0, %v1435_v2 }
 0x208   : > { %1126 = vrot.lane.b32.xlu1 %v3801_v53, %s3189_s9  ;;  %1253 = vrot.lane.b32.xlu0 %v3783_v45, %s3190_s30 }
 0x20a   : > { %v1437_v6 = vpop.permute.xlu1 %1436  ;;  %v1483_v7 = vpop.permute.xlu0 %1482 }
 0x20b   : > { %2589 = vst.msk [vmem:[%s3546_s8 + $0x118] sm:$0xff] %vm914_vm0, %v1437_v6  ;;  %2612 = vst.msk [vmem:[%s3546_s8 + $0x1d0] sm:$0xff] %vm914_vm0, %v1483_v7 }
 0x20c   : > { %1255 = vrot.lane.b32.xlu1 %v3801_v53, %s3190_s30  ;;  %1446 = vrot.lane.b32.xlu0 %v3786_v24, %s3188_s7 }
 0x20e   : > { %v1485_v51 = vpop.permute.xlu1 %1484  ;;  %v1564_v45 = vpop.permute.xlu0 %1563 }
 0x20f   : > { %2613 = vst.msk [vmem:[%s3546_s8 + $0x1d8] sm:$0xff] %vm914_vm0, %v1485_v51  ;;  %2620 = vst.msk [vmem:[%s3546_s8 + $0x210] sm:$0xff] %vm914_vm0, %v1564_v45 }
 0x210   : > { %1448 = vrot.lane.b32.xlu1 %v3804_v55, %s3188_s7  ;;  %1575 = vrot.lane.b32.xlu0 %v3786_v24, %s3189_s9 }
 0x212   : > { %v1566_v56 = vpop.permute.xlu1 %1565  ;;  %v1612_v53 = vpop.permute.xlu0 %1611 }
 0x213   : > { %2621 = vst.msk [vmem:[%s3546_s8 + $0x218] sm:$0xff] %vm914_vm0, %v1566_v56  ;;  %2644 = vst.msk [vmem:[%s3546_s8 + $0x2d0] sm:$0xff] %vm914_vm0, %v1612_v53  ;;  %v5375_v56 = vld [vmem:[#allocation8_spill] sm:$0xff] }
 0x214   : > { %1577 = vrot.lane.b32.xlu1 %v3804_v55, %s3189_s9  ;;  %1704 = vrot.lane.b32.xlu0 %v3786_v24, %s3190_s30  ;;  %v632_v24 = vpop.f32.mrb[45].mxu0  ;;  %v427_v53 = vsub.s32 2, %v5375_v56 }
 0x215   : > { %v4228_v15 = vadd.f32 %v632_v24, %v3528_v0 }
 0x216   : > { %v1614_v10 = vpop.permute.xlu1 %1613  ;;  %v1693_v11 = vpop.permute.xlu0 %1692 }
 0x217   : > { %2645 = vst.msk [vmem:[%s3546_s8 + $0x2d8] sm:$0xff] %vm914_vm0, %v1614_v10  ;;  %2652 = vst.msk [vmem:[%s3546_s8 + $0x310] sm:$0xff] %vm914_vm0, %v1693_v11 }
 0x218   : > { %1706 = vrot.lane.b32.xlu1 %v3804_v55, %s3190_s30  ;;  %999 = vrot.lane.b32.xlu0 %v3843_v59, %s3188_s7  ;;  %1388 = vst.msk [vmem:[%s3546_s8 + $0xb0] sm:$0xff] %vm914_vm0, %v4228_v15  ;;  %v636_v55 = vpop.f32.mrb[46].mxu0 }
 0x219   : > { %v4242_v48 = vadd.f32 %v636_v55, %v3526_v23  ;;  %v638_v25 = vpop.f32.mrb[47].mxu0 }
 0x21a   : > { %v1695_v36 = vpop.permute.xlu1 %1694  ;;  %v988_v42 = vpop.permute.xlu0 %987  ;;  %v4245_v46 = vadd.f32 %v638_v25, %v3528_v0 }
 0x21b   : > { %2653 = vst.msk [vmem:[%s3546_s8 + $0x318] sm:$0xff] %vm914_vm0, %v1695_v36  ;;  %2494 = vst.msk [vmem:[%s3534_s14 + $0x120] sm:$0xff] %vm914_vm0, %v988_v42 }
 0x21c   : > { %1001 = vrot.lane.b32.xlu1 %v3861_v3, %s3188_s7  ;;  %1128 = vrot.lane.b32.xlu0 %v3843_v59, %s3189_s9  ;;  %938 = vst.msk [vmem:[%s3534_s14 + $0xb8] sm:$0xff] %vm914_vm0, %v4242_v48  ;;  %1389 = vst.msk [vmem:[%s3546_s8 + $0xb8] sm:$0xff] %vm914_vm0, %v4245_v46 }
 0x21e   : > { %v990_v33 = vpop.permute.xlu1 %989  ;;  %v1036_v43 = vpop.permute.xlu0 %1035 }
 0x21f   : > { %2495 = vst.msk [vmem:[%s3534_s14 + $0x128] sm:$0xff] %vm914_vm0, %v990_v33  ;;  %2518 = vst.msk [vmem:[%s3534_s14 + $0x1e0] sm:$0xff] %vm914_vm0, %v1036_v43 }
 0x220   : > { %1130 = vrot.lane.b32.xlu1 %v3861_v3, %s3189_s9  ;;  %1257 = vrot.lane.b32.xlu0 %v3843_v59, %s3190_s30 }
 0x222   : > { %v1038_v23 = vpop.permute.xlu1 %1037  ;;  %v1117_v0 = vpop.permute.xlu0 %1116 }
 0x223   : > { %2519 = vst.msk [vmem:[%s3534_s14 + $0x1e8] sm:$0xff] %vm914_vm0, %v1038_v23  ;;  %2526 = vst.msk [vmem:[%s3534_s14 + $0x220] sm:$0xff] %vm914_vm0, %v1117_v0 }
 0x224   : > { %1259 = vrot.lane.b32.xlu1 %v3861_v3, %s3190_s30  ;;  %1450 = vrot.lane.b32.xlu0 %v3846_v63, %s3188_s7 }
 0x226   : > { %v1119_v59 = vpop.permute.xlu1 %1118  ;;  %v1165_v26 = vpop.permute.xlu0 %1164 }
 0x227   : > { %2527 = vst.msk [vmem:[%s3534_s14 + $0x228] sm:$0xff] %vm914_vm0, %v1119_v59  ;;  %2550 = vst.msk [vmem:[%s3534_s14 + $0x2e0] sm:$0xff] %vm914_vm0, %v1165_v26 }
 0x228   : > { %1452 = vrot.lane.b32.xlu1 %v3864_v5, %s3188_s7  ;;  %1579 = vrot.lane.b32.xlu0 %v3846_v63, %s3189_s9 }
 0x22a   : > { %v1167_v3 = vpop.permute.xlu1 %1166  ;;  %v1246_v20 = vpop.permute.xlu0 %1245 }
 0x22b   : > { %2551 = vst.msk [vmem:[%s3534_s14 + $0x2e8] sm:$0xff] %vm914_vm0, %v1167_v3  ;;  %2558 = vst.msk [vmem:[%s3534_s14 + $0x320] sm:$0xff] %vm914_vm0, %v1246_v20 }
 0x22c   : > { %1581 = vrot.lane.b32.xlu1 %v3864_v5, %s3189_s9  ;;  %1708 = vrot.lane.b32.xlu0 %v3846_v63, %s3190_s30 }
 0x22e   : > { %v1248_v40 = vpop.permute.xlu1 %1247  ;;  %v1294_v18 = vpop.permute.xlu0 %1293 }
 0x22f   : > { %2559 = vst.msk [vmem:[%s3534_s14 + $0x328] sm:$0xff] %vm914_vm0, %v1248_v40  ;;  %2582 = vst.msk [vmem:[%s3534_s14 + $0x3e0] sm:$0xff] %vm914_vm0, %v1294_v18 }
 0x230   : > { %1710 = vrot.lane.b32.xlu1 %v3864_v5, %s3190_s30  ;;  %1003 = vrot.lane.b32.xlu0 %v3903_v50, %s3188_s7 }
 0x232   : > { %v1296_v28 = vpop.permute.xlu1 %1295  ;;  %v1439_v41 = vpop.permute.xlu0 %1438 }
 0x233   : > { %2583 = vst.msk [vmem:[%s3534_s14 + $0x3e8] sm:$0xff] %vm914_vm0, %v1296_v28  ;;  %2590 = vst.msk [vmem:[%s3546_s8 + $0x120] sm:$0xff] %vm914_vm0, %v1439_v41 }
 0x234   : > { %1005 = vrot.lane.b32.xlu1 %v3921_v54, %s3188_s7  ;;  %1132 = vrot.lane.b32.xlu0 %v3903_v50, %s3189_s9 }
 0x236   : > { %v1441_v63 = vpop.permute.xlu1 %1440  ;;  %v1487_v5 = vpop.permute.xlu0 %1486 }
 0x237   : > { %2591 = vst.msk [vmem:[%s3546_s8 + $0x128] sm:$0xff] %vm914_vm0, %v1441_v63  ;;  %2614 = vst.msk [vmem:[%s3546_s8 + $0x1e0] sm:$0xff] %vm914_vm0, %v1487_v5 }
 0x238   : > { %1134 = vrot.lane.b32.xlu1 %v3921_v54, %s3189_s9  ;;  %1261 = vrot.lane.b32.xlu0 %v3903_v50, %s3190_s30 }
 0x23a   : > { %v1489_v32 = vpop.permute.xlu1 %1488  ;;  %v1568_v31 = vpop.permute.xlu0 %1567 }
 0x23b   : > { %2615 = vst.msk [vmem:[%s3546_s8 + $0x1e8] sm:$0xff] %vm914_vm0, %v1489_v32  ;;  %2622 = vst.msk [vmem:[%s3546_s8 + $0x220] sm:$0xff] %vm914_vm0, %v1568_v31 }
 0x23c   : > { %1263 = vrot.lane.b32.xlu1 %v3921_v54, %s3190_s30  ;;  %1454 = vrot.lane.b32.xlu0 %v3907_v8, %s3188_s7 }
 0x23e   : > { %v1570_v61 = vpop.permute.xlu1 %1569  ;;  %v1616_v2 = vpop.permute.xlu0 %1615 }
 0x23f   : > { %2623 = vst.msk [vmem:[%s3546_s8 + $0x228] sm:$0xff] %vm914_vm0, %v1570_v61  ;;  %2646 = vst.msk [vmem:[%s3546_s8 + $0x2e0] sm:$0xff] %vm914_vm0, %v1616_v2 }
 0x240   : > { %1456 = vrot.lane.b32.xlu1 %v3925_v58, %s3188_s7  ;;  %1583 = vrot.lane.b32.xlu0 %v3907_v8, %s3189_s9 }
 0x242   : > { %v1618_v50 = vpop.permute.xlu1 %1617  ;;  %v1697_v54 = vpop.permute.xlu0 %1696 }
 0x243   : > { %2647 = vst.msk [vmem:[%s3546_s8 + $0x2e8] sm:$0xff] %vm914_vm0, %v1618_v50  ;;  %2654 = vst.msk [vmem:[%s3546_s8 + $0x320] sm:$0xff] %vm914_vm0, %v1697_v54 }
 0x244   : > { %1585 = vrot.lane.b32.xlu1 %v3925_v58, %s3189_s9  ;;  %1712 = vrot.lane.b32.xlu0 %v3907_v8, %s3190_s30  ;;  %v3066_v8 = vld [vmem:[%s5333_s2] sm:$0x7] }
 0x246   : > { %v1699_v6 = vpop.permute.xlu1 %1698  ;;  %v992_v7 = vpop.permute.xlu0 %991 }
 0x247   : > { %2655 = vst.msk [vmem:[%s3546_s8 + $0x328] sm:$0xff] %vm914_vm0, %v1699_v6  ;;  %2496 = vst.msk [vmem:[%s3534_s14 + $0x130] sm:$0xff] %vm914_vm0, %v992_v7 }
 0x248   : > { %1714 = vrot.lane.b32.xlu1 %v3925_v58, %s3190_s30  ;;  %1007 = vrot.lane.b32.xlu0 %v3958_v9, %s3188_s7  ;;  %v4353_v58 = vrot.slane %v3066_v8, %v427_v53 }
 0x24a   : > { %v994_v51 = vpop.permute.xlu1 %993  ;;  %v1040_v45 = vpop.permute.xlu0 %1039 }
 0x24b   : > { %2497 = vst.msk [vmem:[%s3534_s14 + $0x138] sm:$0xff] %vm914_vm0, %v994_v51  ;;  %2520 = vst.msk [vmem:[%s3534_s14 + $0x1f0] sm:$0xff] %vm914_vm0, %v1040_v45 }
 0x24c   : > { %1009 = vrot.lane.b32.xlu1 %v3978_v17, %s3188_s7  ;;  %1136 = vrot.lane.b32.xlu0 %v3958_v9, %s3189_s9 }
 0x24d   : > { %v2866_v60 = vpop.f32.mrb[16].mxu1 }
 0x24e   : > { %v755_v10 = vpop.f32.mrb[17].mxu1  ;;  %v1042_v11 = vpop.permute.xlu1 %1041  ;;  %v4362_v36 = vadd.f32 %v2866_v60, %v4353_v58 }
 0x24f   : > { %v1121_v24 = vpop.permute.xlu0 %1120  ;;  %v4365_v42 = vadd.f32 %v755_v10, %v4353_v58  ;;  %2521 = vst.msk [vmem:[%s3534_s14 + $0x1f8] sm:$0xff] %vm914_vm0, %v1042_v11 }
 0x250   : > { %2528 = vst.msk [vmem:[%s3534_s14 + $0x230] sm:$0xff] %vm914_vm0, %v1121_v24  ;;  %1138 = vrot.lane.b32.xlu1 %v3978_v17, %s3189_s9  ;;  %1265 = vrot.lane.b32.xlu0 %v3958_v9, %s3190_s30  ;;  %1818 = vst.msk [vmem:[%s4359_s18 + $0x8] sm:$0xff] %vm914_vm0, %v4362_v36 }
 0x251   : > { %1817 = vst.msk [vmem:[%s4359_s18] sm:$0xff] %vm914_vm0, %v4365_v42  ;;  %v2869_v55 = vpop.f32.mrb[18].mxu1 }
 0x252   : > { %v4382_v25 = vadd.f32 %v2869_v55, %v4353_v58  ;;  %v765_v33 = vpop.f32.mrb[19].mxu1  ;;  %v1123_v43 = vpop.permute.xlu1 %1122 }
 0x253   : > { %v1169_v23 = vpop.permute.xlu0 %1168  ;;  %v4385_v0 = vadd.f32 %v765_v33, %v4353_v58  ;;  %2529 = vst.msk [vmem:[%s3534_s14 + $0x238] sm:$0xff] %vm914_vm0, %v1123_v43 }
 0x254   : > { %2552 = vst.msk [vmem:[%s3534_s14 + $0x2f0] sm:$0xff] %vm914_vm0, %v1169_v23  ;;  %1820 = vst.msk [vmem:[%s4359_s18 + $0x18] sm:$0xff] %vm914_vm0, %v4382_v25  ;;  %1267 = vrot.lane.b32.xlu1 %v3978_v17, %s3190_s30  ;;  %1458 = vrot.lane.b32.xlu0 %v3961_v13, %s3188_s7 }
 0x255   : > { %1819 = vst.msk [vmem:[%s4359_s18 + $0x10] sm:$0xff] %vm914_vm0, %v4385_v0  ;;  %v2872_v9 = vpop.f32.mrb[20].mxu1 }
 0x256   : > { %v4402_v59 = vadd.f32 %v2872_v9, %v4353_v58  ;;  %v775_v26 = vpop.f32.mrb[21].mxu1  ;;  %v1171_v3 = vpop.permute.xlu1 %1170 }
 0x257   : > { %v1250_v20 = vpop.permute.xlu0 %1249  ;;  %v4405_v40 = vadd.f32 %v775_v26, %v4353_v58  ;;  %2553 = vst.msk [vmem:[%s3534_s14 + $0x2f8] sm:$0xff] %vm914_vm0, %v1171_v3 }
 0x258   : > { %2560 = vst.msk [vmem:[%s3534_s14 + $0x330] sm:$0xff] %vm914_vm0, %v1250_v20  ;;  %1822 = vst.msk [vmem:[%s4359_s18 + $0x28] sm:$0xff] %vm914_vm0, %v4402_v59  ;;  %1460 = vrot.lane.b32.xlu1 %v3981_v44, %s3188_s7  ;;  %1587 = vrot.lane.b32.xlu0 %v3961_v13, %s3189_s9 }
 0x259   : > { %1821 = vst.msk [vmem:[%s4359_s18 + $0x20] sm:$0xff] %vm914_vm0, %v4405_v40  ;;  %v2875_v17 = vpop.f32.mrb[22].mxu1 }
 0x25a   : > { %v4422_v18 = vadd.f32 %v2875_v17, %v4353_v58  ;;  %v785_v28 = vpop.f32.mrb[23].mxu1  ;;  %v1252_v41 = vpop.permute.xlu1 %1251 }
 0x25b   : > { %v1298_v63 = vpop.permute.xlu0 %1297  ;;  %v4425_v5 = vadd.f32 %v785_v28, %v4353_v58  ;;  %2561 = vst.msk [vmem:[%s3534_s14 + $0x338] sm:$0xff] %vm914_vm0, %v1252_v41 }
 0x25c   : > { %2584 = vst.msk [vmem:[%s3534_s14 + $0x3f0] sm:$0xff] %vm914_vm0, %v1298_v63  ;;  %1824 = vst.msk [vmem:[%s4359_s18 + $0x38] sm:$0xff] %vm914_vm0, %v4422_v18  ;;  %1589 = vrot.lane.b32.xlu1 %v3981_v44, %s3189_s9  ;;  %1011 = vrot.lane.b32.xlu0 %v4022_v16, %s3188_s7 }
 0x25d   : > { %1823 = vst.msk [vmem:[%s4359_s18 + $0x30] sm:$0xff] %vm914_vm0, %v4425_v5  ;;  %v2878_v32 = vpop.f32.mrb[24].mxu1 }
 0x25e   : > { %v4442_v31 = vadd.f32 %v2878_v32, %v4353_v58  ;;  %v795_v61 = vpop.f32.mrb[25].mxu1  ;;  %v1300_v2 = vpop.permute.xlu1 %1299 }
 0x25f   : > { %v1443_v50 = vpop.permute.xlu0 %1442  ;;  %v4445_v54 = vadd.f32 %v795_v61, %v4353_v58  ;;  %2585 = vst.msk [vmem:[%s3534_s14 + $0x3f8] sm:$0xff] %vm914_vm0, %v1300_v2 }
 0x260   : > { %2592 = vst.msk [vmem:[%s3546_s8 + $0x130] sm:$0xff] %vm914_vm0, %v1443_v50  ;;  %1826 = vst.msk [vmem:[%s4359_s18 + $0x48] sm:$0xff] %vm914_vm0, %v4442_v31  ;;  %1013 = vrot.lane.b32.xlu1 %v4042_v27, %s3188_s7  ;;  %1140 = vrot.lane.b32.xlu0 %v4022_v16, %s3189_s9 }
 0x261   : > { %1825 = vst.msk [vmem:[%s4359_s18 + $0x40] sm:$0xff] %vm914_vm0, %v4445_v54  ;;  %v2881_v6 = vpop.f32.mrb[26].mxu1 }
 0x262   : > { %v4462_v7 = vadd.f32 %v2881_v6, %v4353_v58  ;;  %v805_v51 = vpop.f32.mrb[27].mxu1  ;;  %v1445_v45 = vpop.permute.xlu1 %1444 }
 0x263   : > { %v1491_v56 = vpop.permute.xlu0 %1490  ;;  %v4465_v53 = vadd.f32 %v805_v51, %v4353_v58  ;;  %2593 = vst.msk [vmem:[%s3546_s8 + $0x138] sm:$0xff] %vm914_vm0, %v1445_v45 }
 0x264   : > { %2616 = vst.msk [vmem:[%s3546_s8 + $0x1f0] sm:$0xff] %vm914_vm0, %v1491_v56  ;;  %1828 = vst.msk [vmem:[%s4359_s18 + $0x58] sm:$0xff] %vm914_vm0, %v4462_v7  ;;  %1142 = vrot.lane.b32.xlu1 %v4042_v27, %s3189_s9  ;;  %1269 = vrot.lane.b32.xlu0 %v4022_v16, %s3190_s30 }
 0x265   : > { %1827 = vst.msk [vmem:[%s4359_s18 + $0x50] sm:$0xff] %vm914_vm0, %v4465_v53  ;;  %v2884_v8 = vpop.f32.mrb[28].mxu1 }
 0x266   : > { %v4482_v60 = vadd.f32 %v2884_v8, %v4353_v58  ;;  %v815_v10 = vpop.f32.mrb[29].mxu1  ;;  %v1493_v11 = vpop.permute.xlu1 %1492 }
 0x267   : > { %v1572_v24 = vpop.permute.xlu0 %1571  ;;  %v4485_v55 = vadd.f32 %v815_v10, %v4353_v58  ;;  %2617 = vst.msk [vmem:[%s3546_s8 + $0x1f8] sm:$0xff] %vm914_vm0, %v1493_v11 }
 0x268   : > { %2624 = vst.msk [vmem:[%s3546_s8 + $0x230] sm:$0xff] %vm914_vm0, %v1572_v24  ;;  %1830 = vst.msk [vmem:[%s4359_s18 + $0x68] sm:$0xff] %vm914_vm0, %v4482_v60  ;;  %1271 = vrot.lane.b32.xlu1 %v4042_v27, %s3190_s30  ;;  %1462 = vrot.lane.b32.xlu0 %v4025_v34, %s3188_s7 }
 0x269   : > { %1829 = vst.msk [vmem:[%s4359_s18 + $0x60] sm:$0xff] %vm914_vm0, %v4485_v55  ;;  %v2887_v16 = vpop.f32.mrb[30].mxu1 }
 0x26a   : > { %v4502_v33 = vadd.f32 %v2887_v16, %v4353_v58  ;;  %v825_v43 = vpop.f32.mrb[31].mxu1  ;;  %v1574_v23 = vpop.permute.xlu1 %1573 }
 0x26b   : > { %v1620_v9 = vpop.permute.xlu0 %1619  ;;  %v4505_v26 = vadd.f32 %v825_v43, %v4353_v58  ;;  %2625 = vst.msk [vmem:[%s3546_s8 + $0x238] sm:$0xff] %vm914_vm0, %v1574_v23 }
 0x26c   : > { %2648 = vst.msk [vmem:[%s3546_s8 + $0x2f0] sm:$0xff] %vm914_vm0, %v1620_v9  ;;  %1832 = vst.msk [vmem:[%s4359_s18 + $0x78] sm:$0xff] %vm914_vm0, %v4502_v33  ;;  %1464 = vrot.lane.b32.xlu1 %v4045_v57, %s3188_s7  ;;  %1591 = vrot.lane.b32.xlu0 %v4025_v34, %s3189_s9 }
 0x26d   : > { %1831 = vst.msk [vmem:[%s4359_s18 + $0x70] sm:$0xff] %vm914_vm0, %v4505_v26  ;;  %v2890_v27 = vpop.f32.mrb[32].mxu1 }
 0x26e   : > { %v4522_v3 = vadd.f32 %v2890_v27, %v4353_v58  ;;  %v835_v20 = vpop.f32.mrb[33].mxu1  ;;  %v1622_v17 = vpop.permute.xlu1 %1621 }
 0x26f   : > { %v1701_v28 = vpop.permute.xlu0 %1700  ;;  %v4525_v41 = vadd.f32 %v835_v20, %v4353_v58  ;;  %2649 = vst.msk [vmem:[%s3546_s8 + $0x2f8] sm:$0xff] %vm914_vm0, %v1622_v17 }
 0x270   : > { %2656 = vst.msk [vmem:[%s3546_s8 + $0x330] sm:$0xff] %vm914_vm0, %v1701_v28  ;;  %1834 = vst.msk [vmem:[%s4359_s18 + $0x88] sm:$0xff] %vm914_vm0, %v4522_v3  ;;  %1593 = vrot.lane.b32.xlu1 %v4045_v57, %s3189_s9  ;;  %1015 = vrot.lane.b32.xlu0 %v4086_v29, %s3188_s7 }
 0x271   : > { %1833 = vst.msk [vmem:[%s4359_s18 + $0x80] sm:$0xff] %vm914_vm0, %v4525_v41  ;;  %v2893_v63 = vpop.f32.mrb[34].mxu1 }
 0x272   : > { %v4542_v32 = vadd.f32 %v2893_v63, %v4353_v58  ;;  %v845_v61 = vpop.f32.mrb[35].mxu1  ;;  %v1703_v2 = vpop.permute.xlu1 %1702 }
 0x273   : > { %v996_v50 = vpop.permute.xlu0 %995  ;;  %v4545_v6 = vadd.f32 %v845_v61, %v4353_v58  ;;  %2657 = vst.msk [vmem:[%s3546_s8 + $0x338] sm:$0xff] %vm914_vm0, %v1703_v2 }
 0x274   : > { %2498 = vst.msk [vmem:[%s3534_s14 + $0x140] sm:$0xff] %vm914_vm0, %v996_v50  ;;  %1836 = vst.msk [vmem:[%s4359_s18 + $0x98] sm:$0xff] %vm914_vm0, %v4542_v32  ;;  %1017 = vrot.lane.b32.xlu1 %v4106_v22, %s3188_s7  ;;  %1144 = vrot.lane.b32.xlu0 %v4086_v29, %s3189_s9 }
 0x275   : > { %1835 = vst.msk [vmem:[%s4359_s18 + $0x90] sm:$0xff] %vm914_vm0, %v4545_v6  ;;  %v2896_v51 = vpop.f32.mrb[36].mxu1 }
 0x276   : > { %v4562_v45 = vadd.f32 %v2896_v51, %v4353_v58  ;;  %v855_v56 = vpop.f32.mrb[37].mxu1  ;;  %v998_v8 = vpop.permute.xlu1 %997 }
 0x277   : > { %v1125_v10 = vpop.permute.xlu0 %1124  ;;  %v4565_v11 = vadd.f32 %v855_v56, %v4353_v58  ;;  %2499 = vst.msk [vmem:[%s3534_s14 + $0x148] sm:$0xff] %vm914_vm0, %v998_v8 }
 0x278   : > { %2530 = vst.msk [vmem:[%s3534_s14 + $0x240] sm:$0xff] %vm914_vm0, %v1125_v10  ;;  %1838 = vst.msk [vmem:[%s4359_s18 + $0xa8] sm:$0xff] %vm914_vm0, %v4562_v45  ;;  %1146 = vrot.lane.b32.xlu1 %v4106_v22, %s3189_s9  ;;  %1273 = vrot.lane.b32.xlu0 %v4086_v29, %s3190_s30 }
 0x279   : > { %1837 = vst.msk [vmem:[%s4359_s18 + $0xa0] sm:$0xff] %vm914_vm0, %v4565_v11  ;;  %v2899_v24 = vpop.f32.mrb[38].mxu1 }
 0x27a   : > { %v4582_v16 = vadd.f32 %v2899_v24, %v4353_v58  ;;  %v865_v43 = vpop.f32.mrb[39].mxu1  ;;  %v1127_v23 = vpop.permute.xlu1 %1126 }
 0x27b   : > { %v1254_v9 = vpop.permute.xlu0 %1253  ;;  %v4585_v27 = vadd.f32 %v865_v43, %v4353_v58  ;;  %2531 = vst.msk [vmem:[%s3534_s14 + $0x248] sm:$0xff] %vm914_vm0, %v1127_v23 }
 0x27c   : > { %2562 = vst.msk [vmem:[%s3534_s14 + $0x340] sm:$0xff] %vm914_vm0, %v1254_v9  ;;  %1840 = vst.msk [vmem:[%s4359_s18 + $0xb8] sm:$0xff] %vm914_vm0, %v4582_v16  ;;  %1275 = vrot.lane.b32.xlu1 %v4106_v22, %s3190_s30  ;;  %1466 = vrot.lane.b32.xlu0 %v4089_v12, %s3188_s7 }
 0x27d   : > { %1839 = vst.msk [vmem:[%s4359_s18 + $0xb0] sm:$0xff] %vm914_vm0, %v4585_v27  ;;  %v2902_v29 = vpop.f32.mrb[40].mxu1 }
 0x27e   : > { %v4602_v20 = vadd.f32 %v2902_v29, %v4353_v58  ;;  %v875_v17 = vpop.f32.mrb[41].mxu1  ;;  %v1256_v28 = vpop.permute.xlu1 %1255 }
 0x27f   : > { %v1447_v63 = vpop.permute.xlu0 %1446  ;;  %v4605_v61 = vadd.f32 %v875_v17, %v4353_v58  ;;  %2563 = vst.msk [vmem:[%s3534_s14 + $0x348] sm:$0xff] %vm914_vm0, %v1256_v28 }
 0x280   : > { %2594 = vst.msk [vmem:[%s3546_s8 + $0x140] sm:$0xff] %vm914_vm0, %v1447_v63  ;;  %1842 = vst.msk [vmem:[%s4359_s18 + $0xc8] sm:$0xff] %vm914_vm0, %v4602_v20  ;;  %1468 = vrot.lane.b32.xlu1 %v4109_v21, %s3188_s7  ;;  %1595 = vrot.lane.b32.xlu0 %v4089_v12, %s3189_s9 }
 0x281   : > { %1841 = vst.msk [vmem:[%s4359_s18 + $0xc0] sm:$0xff] %vm914_vm0, %v4605_v61  ;;  %v2905_v22 = vpop.f32.mrb[42].mxu1 }
 0x282   : > { %v4622_v2 = vadd.f32 %v2905_v22, %v4353_v58  ;;  %v885_v50 = vpop.f32.mrb[43].mxu1  ;;  %v1449_v51 = vpop.permute.xlu1 %1448 }
 0x283   : > { %v1576_v56 = vpop.permute.xlu0 %1575  ;;  %v4625_v8 = vadd.f32 %v885_v50, %v4353_v58  ;;  %2595 = vst.msk [vmem:[%s3546_s8 + $0x148] sm:$0xff] %vm914_vm0, %v1449_v51 }
 0x284   : > { %2626 = vst.msk [vmem:[%s3546_s8 + $0x240] sm:$0xff] %vm914_vm0, %v1576_v56  ;;  %1844 = vst.msk [vmem:[%s4359_s18 + $0xd8] sm:$0xff] %vm914_vm0, %v4622_v2  ;;  %1597 = vrot.lane.b32.xlu1 %v4109_v21, %s3189_s9  ;;  %1019 = vrot.lane.b32.xlu0 %v4150_v47, %s3188_s7 }
 0x285   : > { %1843 = vst.msk [vmem:[%s4359_s18 + $0xd0] sm:$0xff] %vm914_vm0, %v4625_v8  ;;  %v2908_v10 = vpop.f32.mrb[44].mxu1 }
 0x286   : > { %v4642_v24 = vadd.f32 %v2908_v10, %v4353_v58  ;;  %v895_v43 = vpop.f32.mrb[45].mxu1  ;;  %v1578_v23 = vpop.permute.xlu1 %1577 }
 0x287   : > { %v1705_v9 = vpop.permute.xlu0 %1704  ;;  %v4645_v29 = vadd.f32 %v895_v43, %v4353_v58  ;;  %2627 = vst.msk [vmem:[%s3546_s8 + $0x248] sm:$0xff] %vm914_vm0, %v1578_v23 }
 0x288   : > { %2658 = vst.msk [vmem:[%s3546_s8 + $0x340] sm:$0xff] %vm914_vm0, %v1705_v9  ;;  %1846 = vst.msk [vmem:[%s4359_s18 + $0xe8] sm:$0xff] %vm914_vm0, %v4642_v24  ;;  %1021 = vrot.lane.b32.xlu1 %v4170_v52, %s3188_s7  ;;  %1148 = vrot.lane.b32.xlu0 %v4150_v47, %s3189_s9 }
 0x289   : > { %1845 = vst.msk [vmem:[%s4359_s18 + $0xe0] sm:$0xff] %vm914_vm0, %v4645_v29  ;;  %v2911_v17 = vpop.f32.mrb[46].mxu1 }
 0x28a   : > { %v4662_v28 = vadd.f32 %v2911_v17, %v4353_v58  ;;  %v905_v63 = vpop.f32.mrb[47].mxu1  ;;  %v1707_v22 = vpop.permute.xlu1 %1706 }
 0x28b   : > { %v1000_v50 = vpop.permute.xlu0 %999  ;;  %v4665_v51 = vadd.f32 %v905_v63, %v4353_v58  ;;  %2659 = vst.msk [vmem:[%s3546_s8 + $0x348] sm:$0xff] %vm914_vm0, %v1707_v22 }
 0x28c   : > { %2500 = vst.msk [vmem:[%s3534_s14 + $0x150] sm:$0xff] %vm914_vm0, %v1000_v50  ;;  %1848 = vst.msk [vmem:[%s4359_s18 + $0xf8] sm:$0xff] %vm914_vm0, %v4662_v28  ;;  %1150 = vrot.lane.b32.xlu1 %v4170_v52, %s3189_s9  ;;  %1277 = vrot.lane.b32.xlu0 %v4150_v47, %s3190_s30 }
 0x28d   : > { %1847 = vst.msk [vmem:[%s4359_s18 + $0xf0] sm:$0xff] %vm914_vm0, %v4665_v51 }
 0x28e   : > { %v1002_v58 = vpop.permute.xlu1 %1001 }
 0x28f   : > { %v1129_v56 = vpop.permute.xlu0 %1128  ;;  %2501 = vst.msk [vmem:[%s3534_s14 + $0x158] sm:$0xff] %vm914_vm0, %v1002_v58 }
 0x290   : > { %2532 = vst.msk [vmem:[%s3534_s14 + $0x250] sm:$0xff] %vm914_vm0, %v1129_v56  ;;  %1279 = vrot.lane.b32.xlu1 %v4170_v52, %s3190_s30  ;;  %1470 = vrot.lane.b32.xlu0 %v4153_v39, %s3188_s7 }
 0x292   : > { %v1131_v47 = vpop.permute.xlu1 %1130 }
 0x293   : > { %v1258_v10 = vpop.permute.xlu0 %1257  ;;  %2533 = vst.msk [vmem:[%s3534_s14 + $0x258] sm:$0xff] %vm914_vm0, %v1131_v47 }
 0x294   : > { %2564 = vst.msk [vmem:[%s3534_s14 + $0x350] sm:$0xff] %vm914_vm0, %v1258_v10  ;;  %1472 = vrot.lane.b32.xlu1 %v4173_v4, %s3188_s7  ;;  %1599 = vrot.lane.b32.xlu0 %v4153_v39, %s3189_s9 }
 0x296   : > { %v1260_v52 = vpop.permute.xlu1 %1259 }
 0x297   : > { %v1451_v43 = vpop.permute.xlu0 %1450  ;;  %2565 = vst.msk [vmem:[%s3534_s14 + $0x358] sm:$0xff] %vm914_vm0, %v1260_v52 }
 0x298   : > { %2596 = vst.msk [vmem:[%s3546_s8 + $0x150] sm:$0xff] %vm914_vm0, %v1451_v43  ;;  %1601 = vrot.lane.b32.xlu1 %v4173_v4, %s3189_s9  ;;  %1023 = vrot.lane.b32.xlu0 %v4214_v1, %s3188_s7 }
 0x29a   : > { %v1453_v23 = vpop.permute.xlu1 %1452 }
 0x29b   : > { %v1580_v9 = vpop.permute.xlu0 %1579  ;;  %2597 = vst.msk [vmem:[%s3546_s8 + $0x158] sm:$0xff] %vm914_vm0, %v1453_v23 }
 0x29c   : > { %2628 = vst.msk [vmem:[%s3546_s8 + $0x250] sm:$0xff] %vm914_vm0, %v1580_v9  ;;  %1718 = vrot.lane.b32.xlu1 %v3981_v44, %s3190_s30  ;;  %1152 = vrot.lane.b32.xlu0 %v4214_v1, %s3189_s9 }
 0x29e   : > { %v1582_v17 = vpop.permute.xlu1 %1581 }
 0x29f   : > { %v1709_v63 = vpop.permute.xlu0 %1708  ;;  %2629 = vst.msk [vmem:[%s3546_s8 + $0x258] sm:$0xff] %vm914_vm0, %v1582_v17 }
 0x2a0   : > { %2660 = vst.msk [vmem:[%s3546_s8 + $0x350] sm:$0xff] %vm914_vm0, %v1709_v63  ;;  %1025 = vrot.lane.b32.xlu1 %v4242_v48, %s3188_s7  ;;  %1281 = vrot.lane.b32.xlu0 %v4214_v1, %s3190_s30 }
 0x2a2   : > { %v1711_v44 = vpop.permute.xlu1 %1710 }
 0x2a3   : > { %v1004_v22 = vpop.permute.xlu0 %1003  ;;  %2661 = vst.msk [vmem:[%s3546_s8 + $0x358] sm:$0xff] %vm914_vm0, %v1711_v44 }
 0x2a4   : > { %2502 = vst.msk [vmem:[%s3534_s14 + $0x160] sm:$0xff] %vm914_vm0, %v1004_v22  ;;  %1154 = vrot.lane.b32.xlu1 %v4242_v48, %s3189_s9  ;;  %1474 = vrot.lane.b32.xlu0 %v4228_v15, %s3188_s7 }
 0x2a6   : > { %v1006_v50 = vpop.permute.xlu1 %1005 }
 0x2a7   : > { %v1133_v58 = vpop.permute.xlu0 %1132  ;;  %2503 = vst.msk [vmem:[%s3534_s14 + $0x168] sm:$0xff] %vm914_vm0, %v1006_v50 }
 0x2a8   : > { %2534 = vst.msk [vmem:[%s3534_s14 + $0x260] sm:$0xff] %vm914_vm0, %v1133_v58  ;;  %1283 = vrot.lane.b32.xlu1 %v4242_v48, %s3190_s30  ;;  %1603 = vrot.lane.b32.xlu0 %v4228_v15, %s3189_s9 }
 0x2aa   : > { %v1135_v1 = vpop.permute.xlu1 %1134 }
 0x2ab   : > { %v1262_v56 = vpop.permute.xlu0 %1261  ;;  %2535 = vst.msk [vmem:[%s3534_s14 + $0x268] sm:$0xff] %vm914_vm0, %v1135_v1 }
 0x2ac   : > { %2566 = vst.msk [vmem:[%s3534_s14 + $0x360] sm:$0xff] %vm914_vm0, %v1262_v56  ;;  %1476 = vrot.lane.b32.xlu1 %v4245_v46, %s3188_s7  ;;  %1716 = vrot.lane.b32.xlu0 %v3961_v13, %s3190_s30 }
 0x2ae   : > { %v1264_v48 = vpop.permute.xlu1 %1263 }
 0x2af   : > { %v1455_v47 = vpop.permute.xlu0 %1454  ;;  %2567 = vst.msk [vmem:[%s3534_s14 + $0x368] sm:$0xff] %vm914_vm0, %v1264_v48 }
 0x2b0   : > { %2598 = vst.msk [vmem:[%s3546_s8 + $0x160] sm:$0xff] %vm914_vm0, %v1455_v47  ;;  %1605 = vrot.lane.b32.xlu1 %v4245_v46, %s3189_s9  ;;  %1720 = vrot.lane.b32.xlu0 %v4025_v34, %s3190_s30 }
 0x2b2   : > { %v1457_v10 = vpop.permute.xlu1 %1456 }
 0x2b3   : > { %v1584_v52 = vpop.permute.xlu0 %1583  ;;  %2599 = vst.msk [vmem:[%s3546_s8 + $0x168] sm:$0xff] %vm914_vm0, %v1457_v10 }
 0x2b4   : > { %2630 = vst.msk [vmem:[%s3546_s8 + $0x260] sm:$0xff] %vm914_vm0, %v1584_v52  ;;  %1722 = vrot.lane.b32.xlu1 %v4045_v57, %s3190_s30  ;;  %1724 = vrot.lane.b32.xlu0 %v4089_v12, %s3190_s30 }
 0x2b6   : > { %v1586_v13 = vpop.permute.xlu1 %1585 }
 0x2b7   : > { %v1713_v43 = vpop.permute.xlu0 %1712  ;;  %2631 = vst.msk [vmem:[%s3546_s8 + $0x268] sm:$0xff] %vm914_vm0, %v1586_v13 }
 0x2b8   : > { %2662 = vst.msk [vmem:[%s3546_s8 + $0x360] sm:$0xff] %vm914_vm0, %v1713_v43  ;;  %1726 = vrot.lane.b32.xlu1 %v4109_v21, %s3190_s30  ;;  %1728 = vrot.lane.b32.xlu0 %v4153_v39, %s3190_s30 }
 0x2ba   : > { %v1715_v34 = vpop.permute.xlu1 %1714 }
 0x2bb   : > { %v1008_v57 = vpop.permute.xlu0 %1007  ;;  %2663 = vst.msk [vmem:[%s3546_s8 + $0x368] sm:$0xff] %vm914_vm0, %v1715_v34 }
 0x2bc   : > { %2504 = vst.msk [vmem:[%s3534_s14 + $0x170] sm:$0xff] %vm914_vm0, %v1008_v57  ;;  %1730 = vrot.lane.b32.xlu1 %v4173_v4, %s3190_s30  ;;  %1732 = vrot.lane.b32.xlu0 %v4228_v15, %s3190_s30 }
 0x2be   : > { %v1010_v12 = vpop.permute.xlu1 %1009 }
 0x2bf   : > { %v1137_v21 = vpop.permute.xlu0 %1136  ;;  %2505 = vst.msk [vmem:[%s3534_s14 + $0x178] sm:$0xff] %vm914_vm0, %v1010_v12 }
 0x2c0   : > { %2536 = vst.msk [vmem:[%s3534_s14 + $0x270] sm:$0xff] %vm914_vm0, %v1137_v21  ;;  %1734 = vrot.lane.b32.xlu1 %v4245_v46, %s3190_s30  ;;  %1736 = vrot.lane.b32.xlu0 %v3549_v30, %s3190_s30 }
 0x2c2   : > { %v1139_v39 = vpop.permute.xlu1 %1138 }
 0x2c3   : > { %v1266_v4 = vpop.permute.xlu0 %1265  ;;  %2537 = vst.msk [vmem:[%s3534_s14 + $0x278] sm:$0xff] %vm914_vm0, %v1139_v39 }
 0x2c4   : > { %2568 = vst.msk [vmem:[%s3534_s14 + $0x370] sm:$0xff] %vm914_vm0, %v1266_v4  ;;  %1738 = vrot.lane.b32.xlu1 %v3575_v38, %s3190_s30  ;;  %1740 = vrot.lane.b32.xlu0 %v3606_v49, %s3190_s30 }
 0x2c6   : > { %v1268_v15 = vpop.permute.xlu1 %1267 }
 0x2c7   : > { %v1459_v46 = vpop.permute.xlu0 %1458  ;;  %2569 = vst.msk [vmem:[%s3534_s14 + $0x378] sm:$0xff] %vm914_vm0, %v1268_v15 }
 0x2c8   : > { %2600 = vst.msk [vmem:[%s3546_s8 + $0x170] sm:$0xff] %vm914_vm0, %v1459_v46  ;;  %1742 = vrot.lane.b32.xlu1 %v3634_v35, %s3190_s30  ;;  %1744 = vrot.lane.b32.xlu0 %v5369_v62, %s3190_s30 }
 0x2ca   : > { %v1461_v30 = vpop.permute.xlu1 %1460 }
 0x2cb   : > { %v1588_v38 = vpop.permute.xlu0 %1587  ;;  %2601 = vst.msk [vmem:[%s3546_s8 + $0x178] sm:$0xff] %vm914_vm0, %v1461_v30 }
 0x2cc   : > { %2632 = vst.msk [vmem:[%s3546_s8 + $0x270] sm:$0xff] %vm914_vm0, %v1588_v38  ;;  %1746 = vrot.lane.b32.xlu1 %v5370_v14, %s3190_s30  ;;  %1748 = vrot.lane.b32.xlu0 %v5374_v37, %s3190_s30 }
 0x2ce   : > { %v1590_v49 = vpop.permute.xlu1 %1589 }
 0x2cf   : > { %v1012_v35 = vpop.permute.xlu0 %1011  ;;  %2633 = vst.msk [vmem:[%s3546_s8 + $0x278] sm:$0xff] %vm914_vm0, %v1590_v49 }
 0x2d0   : > { %2506 = vst.msk [vmem:[%s3534_s14 + $0x180] sm:$0xff] %vm914_vm0, %v1012_v35  ;;  %1750 = vrot.lane.b32.xlu1 %v3746_v19, %s3190_s30  ;;  %1881 = vrot.lane.b32.xlu0 %v4365_v42, %s3188_s7 }
 0x2d2   : > { %v1014_v62 = vpop.permute.xlu1 %1013 }
 0x2d3   : > { %v1141_v14 = vpop.permute.xlu0 %1140  ;;  %2507 = vst.msk [vmem:[%s3534_s14 + $0x188] sm:$0xff] %vm914_vm0, %v1014_v62 }
 0x2d4   : > { %2538 = vst.msk [vmem:[%s3534_s14 + $0x280] sm:$0xff] %vm914_vm0, %v1141_v14  ;;  %1883 = vrot.lane.b32.xlu1 %v4362_v36, %s3188_s7  ;;  %1885 = vrot.lane.b32.xlu0 %v4385_v0, %s3188_s7 }
 0x2d6   : > { %v1143_v19 = vpop.permute.xlu1 %1142 }
 0x2d7   : > { %v1270_v37 = vpop.permute.xlu0 %1269  ;;  %2539 = vst.msk [vmem:[%s3534_s14 + $0x288] sm:$0xff] %vm914_vm0, %v1143_v19 }
 0x2d8   : > { %2570 = vst.msk [vmem:[%s3534_s14 + $0x380] sm:$0xff] %vm914_vm0, %v1270_v37  ;;  %1887 = vrot.lane.b32.xlu1 %v4382_v25, %s3188_s7  ;;  %1889 = vrot.lane.b32.xlu0 %v4405_v40, %s3188_s7 }
 0x2da   : > { %v1272_v23 = vpop.permute.xlu1 %1271 }
 0x2db   : > { %v1463_v9 = vpop.permute.xlu0 %1462  ;;  %2571 = vst.msk [vmem:[%s3534_s14 + $0x388] sm:$0xff] %vm914_vm0, %v1272_v23 }
 0x2dc   : > { %2602 = vst.msk [vmem:[%s3546_s8 + $0x180] sm:$0xff] %vm914_vm0, %v1463_v9  ;;  %1891 = vrot.lane.b32.xlu1 %v4402_v59, %s3188_s7  ;;  %1893 = vrot.lane.b32.xlu0 %v4425_v5, %s3188_s7 }
 0x2de   : > { %v1465_v17 = vpop.permute.xlu1 %1464 }
 0x2df   : > { %v1592_v63 = vpop.permute.xlu0 %1591  ;;  %2603 = vst.msk [vmem:[%s3546_s8 + $0x188] sm:$0xff] %vm914_vm0, %v1465_v17 }
 0x2e0   : > { %2634 = vst.msk [vmem:[%s3546_s8 + $0x280] sm:$0xff] %vm914_vm0, %v1592_v63  ;;  %1895 = vrot.lane.b32.xlu1 %v4422_v18, %s3188_s7  ;;  %1897 = vrot.lane.b32.xlu0 %v4445_v54, %s3188_s7 }
 0x2e2   : > { %v1594_v44 = vpop.permute.xlu1 %1593 }
 0x2e3   : > { %v1016_v22 = vpop.permute.xlu0 %1015  ;;  %2635 = vst.msk [vmem:[%s3546_s8 + $0x288] sm:$0xff] %vm914_vm0, %v1594_v44 }
 0x2e4   : > { %2508 = vst.msk [vmem:[%s3534_s14 + $0x190] sm:$0xff] %vm914_vm0, %v1016_v22  ;;  %1899 = vrot.lane.b32.xlu1 %v4442_v31, %s3188_s7  ;;  %1901 = vrot.lane.b32.xlu0 %v4465_v53, %s3188_s7 }
 0x2e6   : > { %v1018_v50 = vpop.permute.xlu1 %1017 }
 0x2e7   : > { %v1145_v58 = vpop.permute.xlu0 %1144  ;;  %2509 = vst.msk [vmem:[%s3534_s14 + $0x198] sm:$0xff] %vm914_vm0, %v1018_v50 }
 0x2e8   : > { %2540 = vst.msk [vmem:[%s3534_s14 + $0x290] sm:$0xff] %vm914_vm0, %v1145_v58  ;;  %1903 = vrot.lane.b32.xlu1 %v4462_v7, %s3188_s7  ;;  %1905 = vrot.lane.b32.xlu0 %v4485_v55, %s3188_s7 }
 0x2ea   : > { %v1147_v1 = vpop.permute.xlu1 %1146 }
 0x2eb   : > { %v1274_v56 = vpop.permute.xlu0 %1273  ;;  %2541 = vst.msk [vmem:[%s3534_s14 + $0x298] sm:$0xff] %vm914_vm0, %v1147_v1 }
 0x2ec   : > { %2572 = vst.msk [vmem:[%s3534_s14 + $0x390] sm:$0xff] %vm914_vm0, %v1274_v56  ;;  %1907 = vrot.lane.b32.xlu1 %v4482_v60, %s3188_s7  ;;  %1909 = vrot.lane.b32.xlu0 %v4505_v26, %s3188_s7 }
 0x2ee   : > { %v1276_v48 = vpop.permute.xlu1 %1275 }
 0x2ef   : > { %v1467_v47 = vpop.permute.xlu0 %1466  ;;  %2573 = vst.msk [vmem:[%s3534_s14 + $0x398] sm:$0xff] %vm914_vm0, %v1276_v48 }
 0x2f0   : > { %2604 = vst.msk [vmem:[%s3546_s8 + $0x190] sm:$0xff] %vm914_vm0, %v1467_v47  ;;  %1911 = vrot.lane.b32.xlu1 %v4502_v33, %s3188_s7  ;;  %1913 = vrot.lane.b32.xlu0 %v4525_v41, %s3188_s7 }
 0x2f2   : > { %v1469_v10 = vpop.permute.xlu1 %1468 }
 0x2f3   : > { %v1596_v52 = vpop.permute.xlu0 %1595  ;;  %2605 = vst.msk [vmem:[%s3546_s8 + $0x198] sm:$0xff] %vm914_vm0, %v1469_v10 }
 0x2f4   : > { %2636 = vst.msk [vmem:[%s3546_s8 + $0x290] sm:$0xff] %vm914_vm0, %v1596_v52  ;;  %1915 = vrot.lane.b32.xlu1 %v4522_v3, %s3188_s7  ;;  %1917 = vrot.lane.b32.xlu0 %v4545_v6, %s3188_s7 }
 0x2f6   : > { %v1598_v13 = vpop.permute.xlu1 %1597 }
 0x2f7   : > { %v1020_v43 = vpop.permute.xlu0 %1019  ;;  %2637 = vst.msk [vmem:[%s3546_s8 + $0x298] sm:$0xff] %vm914_vm0, %v1598_v13 }
 0x2f8   : > { %2510 = vst.msk [vmem:[%s3534_s14 + $0x1a0] sm:$0xff] %vm914_vm0, %v1020_v43  ;;  %1919 = vrot.lane.b32.xlu1 %v4542_v32, %s3188_s7  ;;  %1921 = vrot.lane.b32.xlu0 %v4565_v11, %s3188_s7 }
 0x2fa   : > { %v1022_v34 = vpop.permute.xlu1 %1021 }
 0x2fb   : > { %v1149_v57 = vpop.permute.xlu0 %1148  ;;  %2511 = vst.msk [vmem:[%s3534_s14 + $0x1a8] sm:$0xff] %vm914_vm0, %v1022_v34 }
 0x2fc   : > { %2542 = vst.msk [vmem:[%s3534_s14 + $0x2a0] sm:$0xff] %vm914_vm0, %v1149_v57  ;;  %1923 = vrot.lane.b32.xlu1 %v4562_v45, %s3188_s7  ;;  %1925 = vrot.lane.b32.xlu0 %v4585_v27, %s3188_s7 }
 0x2fe   : > { %v1151_v12 = vpop.permute.xlu1 %1150 }
 0x2ff   : > { %v1278_v21 = vpop.permute.xlu0 %1277  ;;  %2543 = vst.msk [vmem:[%s3534_s14 + $0x2a8] sm:$0xff] %vm914_vm0, %v1151_v12 }
 0x300   : > { %2574 = vst.msk [vmem:[%s3534_s14 + $0x3a0] sm:$0xff] %vm914_vm0, %v1278_v21  ;;  %1927 = vrot.lane.b32.xlu1 %v4582_v16, %s3188_s7  ;;  %1929 = vrot.lane.b32.xlu0 %v4605_v61, %s3188_s7 }
 0x302   : > { %v1280_v39 = vpop.permute.xlu1 %1279 }
 0x303   : > { %v1471_v4 = vpop.permute.xlu0 %1470  ;;  %2575 = vst.msk [vmem:[%s3534_s14 + $0x3a8] sm:$0xff] %vm914_vm0, %v1280_v39 }
 0x304   : > { %2606 = vst.msk [vmem:[%s3546_s8 + $0x1a0] sm:$0xff] %vm914_vm0, %v1471_v4  ;;  %1931 = vrot.lane.b32.xlu1 %v4602_v20, %s3188_s7  ;;  %1933 = vrot.lane.b32.xlu0 %v4625_v8, %s3188_s7 }
 0x306   : > { %v1473_v15 = vpop.permute.xlu1 %1472 }
 0x307   : > { %v1600_v46 = vpop.permute.xlu0 %1599  ;;  %2607 = vst.msk [vmem:[%s3546_s8 + $0x1a8] sm:$0xff] %vm914_vm0, %v1473_v15 }
 0x308   : > { %2638 = vst.msk [vmem:[%s3546_s8 + $0x2a0] sm:$0xff] %vm914_vm0, %v1600_v46  ;;  %1935 = vrot.lane.b32.xlu1 %v4622_v2, %s3188_s7  ;;  %1937 = vrot.lane.b32.xlu0 %v4645_v29, %s3188_s7 }
 0x30a   : > { %v1602_v30 = vpop.permute.xlu1 %1601 }
 0x30b   : > { %v1024_v38 = vpop.permute.xlu0 %1023  ;;  %2639 = vst.msk [vmem:[%s3546_s8 + $0x2a8] sm:$0xff] %vm914_vm0, %v1602_v30 }
 0x30c   : > { %2512 = vst.msk [vmem:[%s3534_s14 + $0x1b0] sm:$0xff] %vm914_vm0, %v1024_v38  ;;  %1939 = vrot.lane.b32.xlu1 %v4642_v24, %s3188_s7  ;;  %1941 = vrot.lane.b32.xlu0 %v4665_v51, %s3188_s7 }
 0x30e   : > { %v1719_v49 = vpop.permute.xlu1 %1718 }
 0x30f   : > { %v1153_v35 = vpop.permute.xlu0 %1152  ;;  %2665 = vst.msk [vmem:[%s3546_s8 + $0x378] sm:$0xff] %vm914_vm0, %v1719_v49 }
 0x310   : > { %2544 = vst.msk [vmem:[%s3534_s14 + $0x2b0] sm:$0xff] %vm914_vm0, %v1153_v35  ;;  %1943 = vrot.lane.b32.xlu1 %v4662_v28, %s3188_s7  ;;  %2010 = vrot.lane.b32.xlu0 %v4365_v42, %s3189_s9 }
 0x312   : > { %v1026_v62 = vpop.permute.xlu1 %1025 }
 0x313   : > { %v1282_v14 = vpop.permute.xlu0 %1281  ;;  %2513 = vst.msk [vmem:[%s3534_s14 + $0x1b8] sm:$0xff] %vm914_vm0, %v1026_v62 }
 0x314   : > { %2576 = vst.msk [vmem:[%s3534_s14 + $0x3b0] sm:$0xff] %vm914_vm0, %v1282_v14  ;;  %2012 = vrot.lane.b32.xlu1 %v4362_v36, %s3189_s9  ;;  %2014 = vrot.lane.b32.xlu0 %v4385_v0, %s3189_s9 }
 0x316   : > { %v1155_v19 = vpop.permute.xlu1 %1154 }
 0x317   : > { %v1475_v37 = vpop.permute.xlu0 %1474  ;;  %2545 = vst.msk [vmem:[%s3534_s14 + $0x2b8] sm:$0xff] %vm914_vm0, %v1155_v19 }
 0x318   : > { %2608 = vst.msk [vmem:[%s3546_s8 + $0x1b0] sm:$0xff] %vm914_vm0, %v1475_v37  ;;  %2016 = vrot.lane.b32.xlu1 %v4382_v25, %s3189_s9  ;;  %2018 = vrot.lane.b32.xlu0 %v4405_v40, %s3189_s9 }
 0x31a   : > { %v1284_v23 = vpop.permute.xlu1 %1283 }
 0x31b   : > { %v1604_v9 = vpop.permute.xlu0 %1603  ;;  %2577 = vst.msk [vmem:[%s3534_s14 + $0x3b8] sm:$0xff] %vm914_vm0, %v1284_v23 }
 0x31c   : > { %2640 = vst.msk [vmem:[%s3546_s8 + $0x2b0] sm:$0xff] %vm914_vm0, %v1604_v9  ;;  %2020 = vrot.lane.b32.xlu1 %v4402_v59, %s3189_s9  ;;  %2022 = vrot.lane.b32.xlu0 %v4425_v5, %s3189_s9 }
 0x31e   : > { %v1477_v17 = vpop.permute.xlu1 %1476 }
 0x31f   : > { %v1717_v63 = vpop.permute.xlu0 %1716  ;;  %2609 = vst.msk [vmem:[%s3546_s8 + $0x1b8] sm:$0xff] %vm914_vm0, %v1477_v17 }
 0x320   : > { %2664 = vst.msk [vmem:[%s3546_s8 + $0x370] sm:$0xff] %vm914_vm0, %v1717_v63  ;;  %2024 = vrot.lane.b32.xlu1 %v4422_v18, %s3189_s9  ;;  %2026 = vrot.lane.b32.xlu0 %v4445_v54, %s3189_s9 }
 0x322   : > { %v1606_v44 = vpop.permute.xlu1 %1605 }
 0x323   : > { %v1721_v22 = vpop.permute.xlu0 %1720  ;;  %2641 = vst.msk [vmem:[%s3546_s8 + $0x2b8] sm:$0xff] %vm914_vm0, %v1606_v44 }
 0x324   : > { %2666 = vst.msk [vmem:[%s3546_s8 + $0x380] sm:$0xff] %vm914_vm0, %v1721_v22  ;;  %2028 = vrot.lane.b32.xlu1 %v4442_v31, %s3189_s9  ;;  %2030 = vrot.lane.b32.xlu0 %v4465_v53, %s3189_s9 }
 0x326   : > { %v1723_v50 = vpop.permute.xlu1 %1722 }
 0x327   : > { %v1725_v58 = vpop.permute.xlu0 %1724  ;;  %2667 = vst.msk [vmem:[%s3546_s8 + $0x388] sm:$0xff] %vm914_vm0, %v1723_v50 }
 0x328   : > { %2668 = vst.msk [vmem:[%s3546_s8 + $0x390] sm:$0xff] %vm914_vm0, %v1725_v58  ;;  %2032 = vrot.lane.b32.xlu1 %v4462_v7, %s3189_s9  ;;  %2034 = vrot.lane.b32.xlu0 %v4485_v55, %s3189_s9 }
 0x32a   : > { %v1727_v1 = vpop.permute.xlu1 %1726 }
 0x32b   : > { %v1729_v56 = vpop.permute.xlu0 %1728  ;;  %2669 = vst.msk [vmem:[%s3546_s8 + $0x398] sm:$0xff] %vm914_vm0, %v1727_v1 }
 0x32c   : > { %2670 = vst.msk [vmem:[%s3546_s8 + $0x3a0] sm:$0xff] %vm914_vm0, %v1729_v56  ;;  %2036 = vrot.lane.b32.xlu1 %v4482_v60, %s3189_s9  ;;  %2038 = vrot.lane.b32.xlu0 %v4505_v26, %s3189_s9 }
 0x32e   : > { %v1731_v48 = vpop.permute.xlu1 %1730 }
 0x32f   : > { %v1733_v47 = vpop.permute.xlu0 %1732  ;;  %2671 = vst.msk [vmem:[%s3546_s8 + $0x3a8] sm:$0xff] %vm914_vm0, %v1731_v48 }
 0x330   : > { %2672 = vst.msk [vmem:[%s3546_s8 + $0x3b0] sm:$0xff] %vm914_vm0, %v1733_v47  ;;  %2040 = vrot.lane.b32.xlu1 %v4502_v33, %s3189_s9  ;;  %2042 = vrot.lane.b32.xlu0 %v4525_v41, %s3189_s9 }
 0x332   : > { %v1735_v10 = vpop.permute.xlu1 %1734 }
 0x333   : > { %v1737_v52 = vpop.permute.xlu0 %1736  ;;  %2673 = vst.msk [vmem:[%s3546_s8 + $0x3b8] sm:$0xff] %vm914_vm0, %v1735_v10 }
 0x334   : > { %2674 = vst.msk [vmem:[%s3546_s8 + $0x3c0] sm:$0xff] %vm914_vm0, %v1737_v52  ;;  %2044 = vrot.lane.b32.xlu1 %v4522_v3, %s3189_s9  ;;  %2046 = vrot.lane.b32.xlu0 %v4545_v6, %s3189_s9 }
 0x336   : > { %v1739_v13 = vpop.permute.xlu1 %1738 }
 0x337   : > { %v1741_v43 = vpop.permute.xlu0 %1740  ;;  %2675 = vst.msk [vmem:[%s3546_s8 + $0x3c8] sm:$0xff] %vm914_vm0, %v1739_v13 }
 0x338   : > { %2676 = vst.msk [vmem:[%s3546_s8 + $0x3d0] sm:$0xff] %vm914_vm0, %v1741_v43  ;;  %2048 = vrot.lane.b32.xlu1 %v4542_v32, %s3189_s9  ;;  %2050 = vrot.lane.b32.xlu0 %v4565_v11, %s3189_s9 }
 0x33a   : > { %v1743_v34 = vpop.permute.xlu1 %1742 }
 0x33b   : > { %v1745_v57 = vpop.permute.xlu0 %1744  ;;  %2677 = vst.msk [vmem:[%s3546_s8 + $0x3d8] sm:$0xff] %vm914_vm0, %v1743_v34 }
 0x33c   : > { %2678 = vst.msk [vmem:[%s3546_s8 + $0x3e0] sm:$0xff] %vm914_vm0, %v1745_v57  ;;  %2052 = vrot.lane.b32.xlu1 %v4562_v45, %s3189_s9  ;;  %2054 = vrot.lane.b32.xlu0 %v4585_v27, %s3189_s9 }
 0x33e   : > { %v1747_v12 = vpop.permute.xlu1 %1746 }
 0x33f   : > { %v1749_v21 = vpop.permute.xlu0 %1748  ;;  %2679 = vst.msk [vmem:[%s3546_s8 + $0x3e8] sm:$0xff] %vm914_vm0, %v1747_v12 }
 0x340   : > { %2680 = vst.msk [vmem:[%s3546_s8 + $0x3f0] sm:$0xff] %vm914_vm0, %v1749_v21  ;;  %2056 = vrot.lane.b32.xlu1 %v4582_v16, %s3189_s9  ;;  %2058 = vrot.lane.b32.xlu0 %v4605_v61, %s3189_s9 }
 0x342   : > { %v1751_v39 = vpop.permute.xlu1 %1750 }
 0x343   : > { %v1882_v4 = vpop.permute.xlu0 %1881  ;;  %2681 = vst.msk [vmem:[%s3546_s8 + $0x3f8] sm:$0xff] %vm914_vm0, %v1751_v39 }
 0x344   : > { %2682 = vst.msk [vmem:[%s4359_s18 + $0x100] sm:$0xff] %vm914_vm0, %v1882_v4  ;;  %2060 = vrot.lane.b32.xlu1 %v4602_v20, %s3189_s9  ;;  %2062 = vrot.lane.b32.xlu0 %v4625_v8, %s3189_s9 }
 0x346   : > { %v1884_v15 = vpop.permute.xlu1 %1883 }
 0x347   : > { %v1886_v46 = vpop.permute.xlu0 %1885  ;;  %2683 = vst.msk [vmem:[%s4359_s18 + $0x108] sm:$0xff] %vm914_vm0, %v1884_v15 }
 0x348   : > { %2684 = vst.msk [vmem:[%s4359_s18 + $0x110] sm:$0xff] %vm914_vm0, %v1886_v46  ;;  %2064 = vrot.lane.b32.xlu1 %v4622_v2, %s3189_s9  ;;  %2066 = vrot.lane.b32.xlu0 %v4645_v29, %s3189_s9 }
 0x34a   : > { %v1888_v30 = vpop.permute.xlu1 %1887 }
 0x34b   : > { %v1890_v38 = vpop.permute.xlu0 %1889  ;;  %2685 = vst.msk [vmem:[%s4359_s18 + $0x118] sm:$0xff] %vm914_vm0, %v1888_v30 }
 0x34c   : > { %2686 = vst.msk [vmem:[%s4359_s18 + $0x120] sm:$0xff] %vm914_vm0, %v1890_v38  ;;  %2068 = vrot.lane.b32.xlu1 %v4642_v24, %s3189_s9  ;;  %2070 = vrot.lane.b32.xlu0 %v4665_v51, %s3189_s9 }
 0x34e   : > { %v1892_v49 = vpop.permute.xlu1 %1891 }
 0x34f   : > { %v1894_v35 = vpop.permute.xlu0 %1893  ;;  %2687 = vst.msk [vmem:[%s4359_s18 + $0x128] sm:$0xff] %vm914_vm0, %v1892_v49 }
 0x350   : > { %2688 = vst.msk [vmem:[%s4359_s18 + $0x130] sm:$0xff] %vm914_vm0, %v1894_v35  ;;  %2072 = vrot.lane.b32.xlu1 %v4662_v28, %s3189_s9  ;;  %2139 = vrot.lane.b32.xlu0 %v4365_v42, %s3190_s30 }
 0x352   : > { %v1896_v62 = vpop.permute.xlu1 %1895 }
 0x353   : > { %v1898_v14 = vpop.permute.xlu0 %1897  ;;  %2689 = vst.msk [vmem:[%s4359_s18 + $0x138] sm:$0xff] %vm914_vm0, %v1896_v62 }
 0x354   : > { %2690 = vst.msk [vmem:[%s4359_s18 + $0x140] sm:$0xff] %vm914_vm0, %v1898_v14  ;;  %2141 = vrot.lane.b32.xlu1 %v4362_v36, %s3190_s30  ;;  %2143 = vrot.lane.b32.xlu0 %v4385_v0, %s3190_s30 }
 0x356   : > { %v1900_v19 = vpop.permute.xlu1 %1899 }
 0x357   : > { %v1902_v37 = vpop.permute.xlu0 %1901  ;;  %2691 = vst.msk [vmem:[%s4359_s18 + $0x148] sm:$0xff] %vm914_vm0, %v1900_v19 }
 0x358   : > { %2692 = vst.msk [vmem:[%s4359_s18 + $0x150] sm:$0xff] %vm914_vm0, %v1902_v37  ;;  %2145 = vrot.lane.b32.xlu1 %v4382_v25, %s3190_s30  ;;  %2147 = vrot.lane.b32.xlu0 %v4405_v40, %s3190_s30 }
 0x35a   : > { %v1904_v36 = vpop.permute.xlu1 %1903 }
 0x35b   : > { %v1906_v42 = vpop.permute.xlu0 %1905  ;;  %2693 = vst.msk [vmem:[%s4359_s18 + $0x158] sm:$0xff] %vm914_vm0, %v1904_v36 }
 0x35c   : > { %2694 = vst.msk [vmem:[%s4359_s18 + $0x160] sm:$0xff] %vm914_vm0, %v1906_v42  ;;  %2149 = vrot.lane.b32.xlu1 %v4402_v59, %s3190_s30  ;;  %2151 = vrot.lane.b32.xlu0 %v4425_v5, %s3190_s30 }
 0x35e   : > { %v1908_v25 = vpop.permute.xlu1 %1907 }
 0x35f   : > { %v1910_v0 = vpop.permute.xlu0 %1909  ;;  %2695 = vst.msk [vmem:[%s4359_s18 + $0x168] sm:$0xff] %vm914_vm0, %v1908_v25 }
 0x360   : > { %2696 = vst.msk [vmem:[%s4359_s18 + $0x170] sm:$0xff] %vm914_vm0, %v1910_v0  ;;  %2153 = vrot.lane.b32.xlu1 %v4422_v18, %s3190_s30  ;;  %2155 = vrot.lane.b32.xlu0 %v4445_v54, %s3190_s30 }
 0x362   : > { %v1912_v59 = vpop.permute.xlu1 %1911 }
 0x363   : > { %v1914_v40 = vpop.permute.xlu0 %1913  ;;  %2697 = vst.msk [vmem:[%s4359_s18 + $0x178] sm:$0xff] %vm914_vm0, %v1912_v59 }
 0x364   : > { %2698 = vst.msk [vmem:[%s4359_s18 + $0x180] sm:$0xff] %vm914_vm0, %v1914_v40  ;;  %2157 = vrot.lane.b32.xlu1 %v4442_v31, %s3190_s30  ;;  %2159 = vrot.lane.b32.xlu0 %v4465_v53, %s3190_s30 }
 0x366   : > { %v1916_v18 = vpop.permute.xlu1 %1915 }
 0x367   : > { %v1918_v5 = vpop.permute.xlu0 %1917  ;;  %2699 = vst.msk [vmem:[%s4359_s18 + $0x188] sm:$0xff] %vm914_vm0, %v1916_v18 }
 0x368   : > { %2700 = vst.msk [vmem:[%s4359_s18 + $0x190] sm:$0xff] %vm914_vm0, %v1918_v5  ;;  %2161 = vrot.lane.b32.xlu1 %v4462_v7, %s3190_s30  ;;  %2163 = vrot.lane.b32.xlu0 %v4485_v55, %s3190_s30 }
 0x36a   : > { %v1920_v31 = vpop.permute.xlu1 %1919 }
 0x36b   : > { %v1922_v54 = vpop.permute.xlu0 %1921  ;;  %2701 = vst.msk [vmem:[%s4359_s18 + $0x198] sm:$0xff] %vm914_vm0, %v1920_v31 }
 0x36c   : > { %2702 = vst.msk [vmem:[%s4359_s18 + $0x1a0] sm:$0xff] %vm914_vm0, %v1922_v54  ;;  %2165 = vrot.lane.b32.xlu1 %v4482_v60, %s3190_s30  ;;  %2167 = vrot.lane.b32.xlu0 %v4505_v26, %s3190_s30 }
 0x36e   : > { %v1924_v7 = vpop.permute.xlu1 %1923 }
 0x36f   : > { %v1926_v53 = vpop.permute.xlu0 %1925  ;;  %2703 = vst.msk [vmem:[%s4359_s18 + $0x1a8] sm:$0xff] %vm914_vm0, %v1924_v7 }
 0x370   : > { %2704 = vst.msk [vmem:[%s4359_s18 + $0x1b0] sm:$0xff] %vm914_vm0, %v1926_v53  ;;  %2169 = vrot.lane.b32.xlu1 %v4502_v33, %s3190_s30  ;;  %2171 = vrot.lane.b32.xlu0 %v4525_v41, %s3190_s30 }
 0x372   : > { %v1928_v60 = vpop.permute.xlu1 %1927 }
 0x373   : > { %v1930_v55 = vpop.permute.xlu0 %1929  ;;  %2705 = vst.msk [vmem:[%s4359_s18 + $0x1b8] sm:$0xff] %vm914_vm0, %v1928_v60 }
 0x374   : > { %2706 = vst.msk [vmem:[%s4359_s18 + $0x1c0] sm:$0xff] %vm914_vm0, %v1930_v55  ;;  %2173 = vrot.lane.b32.xlu1 %v4522_v3, %s3190_s30  ;;  %2175 = vrot.lane.b32.xlu0 %v4545_v6, %s3190_s30 }
 0x376   : > { %v1932_v33 = vpop.permute.xlu1 %1931 }
 0x377   : > { %v1934_v26 = vpop.permute.xlu0 %1933  ;;  %2707 = vst.msk [vmem:[%s4359_s18 + $0x1c8] sm:$0xff] %vm914_vm0, %v1932_v33 }
 0x378   : > { %2708 = vst.msk [vmem:[%s4359_s18 + $0x1d0] sm:$0xff] %vm914_vm0, %v1934_v26  ;;  %2177 = vrot.lane.b32.xlu1 %v4542_v32, %s3190_s30  ;;  %2179 = vrot.lane.b32.xlu0 %v4565_v11, %s3190_s30 }
 0x37a   : > { %v1936_v3 = vpop.permute.xlu1 %1935 }
 0x37b   : > { %v1938_v41 = vpop.permute.xlu0 %1937  ;;  %2709 = vst.msk [vmem:[%s4359_s18 + $0x1d8] sm:$0xff] %vm914_vm0, %v1936_v3 }
 0x37c   : > { %2710 = vst.msk [vmem:[%s4359_s18 + $0x1e0] sm:$0xff] %vm914_vm0, %v1938_v41  ;;  %2181 = vrot.lane.b32.xlu1 %v4562_v45, %s3190_s30  ;;  %2183 = vrot.lane.b32.xlu0 %v4585_v27, %s3190_s30 }
 0x37e   : > { %v1940_v32 = vpop.permute.xlu1 %1939 }
 0x37f   : > { %v1942_v6 = vpop.permute.xlu0 %1941  ;;  %2711 = vst.msk [vmem:[%s4359_s18 + $0x1e8] sm:$0xff] %vm914_vm0, %v1940_v32 }
 0x380   : > { %2712 = vst.msk [vmem:[%s4359_s18 + $0x1f0] sm:$0xff] %vm914_vm0, %v1942_v6  ;;  %2185 = vrot.lane.b32.xlu1 %v4582_v16, %s3190_s30  ;;  %2187 = vrot.lane.b32.xlu0 %v4605_v61, %s3190_s30 }
 0x382   : > { %v1944_v45 = vpop.permute.xlu1 %1943 }
 0x383   : > { %v2011_v11 = vpop.permute.xlu0 %2010  ;;  %2713 = vst.msk [vmem:[%s4359_s18 + $0x1f8] sm:$0xff] %vm914_vm0, %v1944_v45 }
 0x384   : > { %2714 = vst.msk [vmem:[%s4359_s18 + $0x200] sm:$0xff] %vm914_vm0, %v2011_v11  ;;  %2189 = vrot.lane.b32.xlu1 %v4602_v20, %s3190_s30  ;;  %2191 = vrot.lane.b32.xlu0 %v4625_v8, %s3190_s30 }
 0x386   : > { %v2013_v16 = vpop.permute.xlu1 %2012 }
 0x387   : > { %v2015_v27 = vpop.permute.xlu0 %2014  ;;  %2715 = vst.msk [vmem:[%s4359_s18 + $0x208] sm:$0xff] %vm914_vm0, %v2013_v16 }
 0x388   : > { %2716 = vst.msk [vmem:[%s4359_s18 + $0x210] sm:$0xff] %vm914_vm0, %v2015_v27  ;;  %2193 = vrot.lane.b32.xlu1 %v4622_v2, %s3190_s30  ;;  %2195 = vrot.lane.b32.xlu0 %v4645_v29, %s3190_s30 }
 0x38a   : > { %v2017_v20 = vpop.permute.xlu1 %2016 }
 0x38b   : > { %v2019_v61 = vpop.permute.xlu0 %2018  ;;  %2717 = vst.msk [vmem:[%s4359_s18 + $0x218] sm:$0xff] %vm914_vm0, %v2017_v20 }
 0x38c   : > { %2718 = vst.msk [vmem:[%s4359_s18 + $0x220] sm:$0xff] %vm914_vm0, %v2019_v61  ;;  %2197 = vrot.lane.b32.xlu1 %v4642_v24, %s3190_s30  ;;  %2199 = vrot.lane.b32.xlu0 %v4665_v51, %s3190_s30 }
 0x38e   : > { %v2021_v2 = vpop.permute.xlu1 %2020 }
 0x38f   : > { %v2023_v8 = vpop.permute.xlu0 %2022  ;;  %2719 = vst.msk [vmem:[%s4359_s18 + $0x228] sm:$0xff] %vm914_vm0, %v2021_v2 }
 0x390   : > { %2720 = vst.msk [vmem:[%s4359_s18 + $0x230] sm:$0xff] %vm914_vm0, %v2023_v8  ;;  %2201 = vrot.lane.b32.xlu1 %v4662_v28, %s3190_s30 }
 0x392   : > { %v2025_v29 = vpop.permute.xlu1 %2024 }
 0x393   : > { %v2027_v23 = vpop.permute.xlu0 %2026  ;;  %2721 = vst.msk [vmem:[%s4359_s18 + $0x238] sm:$0xff] %vm914_vm0, %v2025_v29 }
 0x394   : > { %2722 = vst.msk [vmem:[%s4359_s18 + $0x240] sm:$0xff] %vm914_vm0, %v2027_v23 }
 0x396   : > { %v2029_v24 = vpop.permute.xlu1 %2028 }
 0x397   : > { %v2031_v51 = vpop.permute.xlu0 %2030  ;;  %2723 = vst.msk [vmem:[%s4359_s18 + $0x248] sm:$0xff] %vm914_vm0, %v2029_v24 }
 0x398   : > { %2724 = vst.msk [vmem:[%s4359_s18 + $0x250] sm:$0xff] %vm914_vm0, %v2031_v51 }
 0x39a   : > { %v2033_v9 = vpop.permute.xlu1 %2032 }
 0x39b   : > { %v2035_v17 = vpop.permute.xlu0 %2034  ;;  %2725 = vst.msk [vmem:[%s4359_s18 + $0x258] sm:$0xff] %vm914_vm0, %v2033_v9 }
 0x39c   : > { %2726 = vst.msk [vmem:[%s4359_s18 + $0x260] sm:$0xff] %vm914_vm0, %v2035_v17 }
 0x39e   : > { %v2037_v28 = vpop.permute.xlu1 %2036 }
 0x39f   : > { %v2039_v63 = vpop.permute.xlu0 %2038  ;;  %2727 = vst.msk [vmem:[%s4359_s18 + $0x268] sm:$0xff] %vm914_vm0, %v2037_v28 }
 0x3a0   : > { %2728 = vst.msk [vmem:[%s4359_s18 + $0x270] sm:$0xff] %vm914_vm0, %v2039_v63 }
 0x3a2   : > { %v2041_v44 = vpop.permute.xlu1 %2040 }
 0x3a3   : > { %v2043_v22 = vpop.permute.xlu0 %2042  ;;  %2729 = vst.msk [vmem:[%s4359_s18 + $0x278] sm:$0xff] %vm914_vm0, %v2041_v44 }
 0x3a4   : > { %2730 = vst.msk [vmem:[%s4359_s18 + $0x280] sm:$0xff] %vm914_vm0, %v2043_v22 }
 0x3a6   : > { %v2045_v50 = vpop.permute.xlu1 %2044 }
 0x3a7   : > { %v2047_v58 = vpop.permute.xlu0 %2046  ;;  %2731 = vst.msk [vmem:[%s4359_s18 + $0x288] sm:$0xff] %vm914_vm0, %v2045_v50 }
 0x3a8   : > { %2732 = vst.msk [vmem:[%s4359_s18 + $0x290] sm:$0xff] %vm914_vm0, %v2047_v58 }
 0x3aa   : > { %v2049_v1 = vpop.permute.xlu1 %2048 }
 0x3ab   : > { %v2051_v56 = vpop.permute.xlu0 %2050  ;;  %2733 = vst.msk [vmem:[%s4359_s18 + $0x298] sm:$0xff] %vm914_vm0, %v2049_v1 }
 0x3ac   : > { %2734 = vst.msk [vmem:[%s4359_s18 + $0x2a0] sm:$0xff] %vm914_vm0, %v2051_v56 }
 0x3ae   : > { %v2053_v48 = vpop.permute.xlu1 %2052 }
 0x3af   : > { %v2055_v47 = vpop.permute.xlu0 %2054  ;;  %2735 = vst.msk [vmem:[%s4359_s18 + $0x2a8] sm:$0xff] %vm914_vm0, %v2053_v48 }
 0x3b0   : > { %2736 = vst.msk [vmem:[%s4359_s18 + $0x2b0] sm:$0xff] %vm914_vm0, %v2055_v47 }
 0x3b2   : > { %v2057_v10 = vpop.permute.xlu1 %2056 }
 0x3b3   : > { %v2059_v52 = vpop.permute.xlu0 %2058  ;;  %2737 = vst.msk [vmem:[%s4359_s18 + $0x2b8] sm:$0xff] %vm914_vm0, %v2057_v10 }
 0x3b4   : > { %2738 = vst.msk [vmem:[%s4359_s18 + $0x2c0] sm:$0xff] %vm914_vm0, %v2059_v52 }
 0x3b6   : > { %v2061_v13 = vpop.permute.xlu1 %2060 }
 0x3b7   : > { %v2063_v43 = vpop.permute.xlu0 %2062  ;;  %2739 = vst.msk [vmem:[%s4359_s18 + $0x2c8] sm:$0xff] %vm914_vm0, %v2061_v13 }
 0x3b8   : > { %2740 = vst.msk [vmem:[%s4359_s18 + $0x2d0] sm:$0xff] %vm914_vm0, %v2063_v43 }
 0x3ba   : > { %v2065_v34 = vpop.permute.xlu1 %2064 }
 0x3bb   : > { %v2067_v57 = vpop.permute.xlu0 %2066  ;;  %2741 = vst.msk [vmem:[%s4359_s18 + $0x2d8] sm:$0xff] %vm914_vm0, %v2065_v34 }
 0x3bc   : > { %2742 = vst.msk [vmem:[%s4359_s18 + $0x2e0] sm:$0xff] %vm914_vm0, %v2067_v57 }
 0x3be   : > { %v2069_v12 = vpop.permute.xlu1 %2068 }
 0x3bf   : > { %v2071_v21 = vpop.permute.xlu0 %2070  ;;  %2743 = vst.msk [vmem:[%s4359_s18 + $0x2e8] sm:$0xff] %vm914_vm0, %v2069_v12 }
 0x3c0   : > { %2744 = vst.msk [vmem:[%s4359_s18 + $0x2f0] sm:$0xff] %vm914_vm0, %v2071_v21 }
 0x3c2   : > { %v2073_v39 = vpop.permute.xlu1 %2072 }
 0x3c3   : > { %v2140_v4 = vpop.permute.xlu0 %2139  ;;  %2745 = vst.msk [vmem:[%s4359_s18 + $0x2f8] sm:$0xff] %vm914_vm0, %v2073_v39 }
 0x3c4   : > { %2746 = vst.msk [vmem:[%s4359_s18 + $0x300] sm:$0xff] %vm914_vm0, %v2140_v4 }
 0x3c6   : > { %v2142_v15 = vpop.permute.xlu1 %2141 }
 0x3c7   : > { %v2144_v46 = vpop.permute.xlu0 %2143  ;;  %2747 = vst.msk [vmem:[%s4359_s18 + $0x308] sm:$0xff] %vm914_vm0, %v2142_v15 }
 0x3c8   : > { %2748 = vst.msk [vmem:[%s4359_s18 + $0x310] sm:$0xff] %vm914_vm0, %v2144_v46 }
 0x3ca   : > { %v2146_v30 = vpop.permute.xlu1 %2145 }
 0x3cb   : > { %v2148_v38 = vpop.permute.xlu0 %2147  ;;  %2749 = vst.msk [vmem:[%s4359_s18 + $0x318] sm:$0xff] %vm914_vm0, %v2146_v30 }
 0x3cc   : > { %2750 = vst.msk [vmem:[%s4359_s18 + $0x320] sm:$0xff] %vm914_vm0, %v2148_v38 }
 0x3ce   : > { %v2150_v49 = vpop.permute.xlu1 %2149 }
 0x3cf   : > { %v2152_v35 = vpop.permute.xlu0 %2151  ;;  %2751 = vst.msk [vmem:[%s4359_s18 + $0x328] sm:$0xff] %vm914_vm0, %v2150_v49 }
 0x3d0   : > { %2752 = vst.msk [vmem:[%s4359_s18 + $0x330] sm:$0xff] %vm914_vm0, %v2152_v35 }
 0x3d2   : > { %v2154_v62 = vpop.permute.xlu1 %2153 }
 0x3d3   : > { %v2156_v14 = vpop.permute.xlu0 %2155  ;;  %2753 = vst.msk [vmem:[%s4359_s18 + $0x338] sm:$0xff] %vm914_vm0, %v2154_v62 }
 0x3d4   : > { %2754 = vst.msk [vmem:[%s4359_s18 + $0x340] sm:$0xff] %vm914_vm0, %v2156_v14 }
 0x3d6   : > { %v2158_v19 = vpop.permute.xlu1 %2157 }
 0x3d7   : > { %v2160_v37 = vpop.permute.xlu0 %2159  ;;  %2755 = vst.msk [vmem:[%s4359_s18 + $0x348] sm:$0xff] %vm914_vm0, %v2158_v19 }
 0x3d8   : > { %2756 = vst.msk [vmem:[%s4359_s18 + $0x350] sm:$0xff] %vm914_vm0, %v2160_v37 }
 0x3da   : > { %v2162_v36 = vpop.permute.xlu1 %2161 }
 0x3db   : > { %v2164_v42 = vpop.permute.xlu0 %2163  ;;  %2757 = vst.msk [vmem:[%s4359_s18 + $0x358] sm:$0xff] %vm914_vm0, %v2162_v36 }
 0x3dc   : > { %2758 = vst.msk [vmem:[%s4359_s18 + $0x360] sm:$0xff] %vm914_vm0, %v2164_v42 }
 0x3de   : > { %v2166_v25 = vpop.permute.xlu1 %2165 }
 0x3df   : > { %v2168_v0 = vpop.permute.xlu0 %2167  ;;  %2759 = vst.msk [vmem:[%s4359_s18 + $0x368] sm:$0xff] %vm914_vm0, %v2166_v25 }
 0x3e0   : > { %2760 = vst.msk [vmem:[%s4359_s18 + $0x370] sm:$0xff] %vm914_vm0, %v2168_v0 }
 0x3e2   : > { %v2170_v59 = vpop.permute.xlu1 %2169 }
 0x3e3   : > { %v2172_v40 = vpop.permute.xlu0 %2171  ;;  %2761 = vst.msk [vmem:[%s4359_s18 + $0x378] sm:$0xff] %vm914_vm0, %v2170_v59 }
 0x3e4   : > { %2762 = vst.msk [vmem:[%s4359_s18 + $0x380] sm:$0xff] %vm914_vm0, %v2172_v40 }
 0x3e6   : > { %v2174_v18 = vpop.permute.xlu1 %2173 }
 0x3e7   : > { %v2176_v5 = vpop.permute.xlu0 %2175  ;;  %2763 = vst.msk [vmem:[%s4359_s18 + $0x388] sm:$0xff] %vm914_vm0, %v2174_v18 }
 0x3e8   : > { %2764 = vst.msk [vmem:[%s4359_s18 + $0x390] sm:$0xff] %vm914_vm0, %v2176_v5 }
 0x3ea   : > { %v2178_v31 = vpop.permute.xlu1 %2177 }
 0x3eb   : > { %v2180_v54 = vpop.permute.xlu0 %2179  ;;  %2765 = vst.msk [vmem:[%s4359_s18 + $0x398] sm:$0xff] %vm914_vm0, %v2178_v31 }
 0x3ec   : > { %2766 = vst.msk [vmem:[%s4359_s18 + $0x3a0] sm:$0xff] %vm914_vm0, %v2180_v54 }
 0x3ee   : > { %v2182_v7 = vpop.permute.xlu1 %2181 }
 0x3ef   : > { %v2184_v53 = vpop.permute.xlu0 %2183  ;;  %2767 = vst.msk [vmem:[%s4359_s18 + $0x3a8] sm:$0xff] %vm914_vm0, %v2182_v7 }
 0x3f0   : > { %2768 = vst.msk [vmem:[%s4359_s18 + $0x3b0] sm:$0xff] %vm914_vm0, %v2184_v53 }
 0x3f2   : > { %v2186_v60 = vpop.permute.xlu1 %2185 }
 0x3f3   : > { %v2188_v55 = vpop.permute.xlu0 %2187  ;;  %2769 = vst.msk [vmem:[%s4359_s18 + $0x3b8] sm:$0xff] %vm914_vm0, %v2186_v60 }
 0x3f4   : > { %2770 = vst.msk [vmem:[%s4359_s18 + $0x3c0] sm:$0xff] %vm914_vm0, %v2188_v55 }
 0x3f6   : > { %v2190_v33 = vpop.permute.xlu1 %2189 }
 0x3f7   : > { %v2192_v26 = vpop.permute.xlu0 %2191  ;;  %2771 = vst.msk [vmem:[%s4359_s18 + $0x3c8] sm:$0xff] %vm914_vm0, %v2190_v33 }
 0x3f8   : > { %2772 = vst.msk [vmem:[%s4359_s18 + $0x3d0] sm:$0xff] %vm914_vm0, %v2192_v26 }
 0x3fa   : > { %v2194_v3 = vpop.permute.xlu1 %2193 }
 0x3fb   : > { %v2196_v41 = vpop.permute.xlu0 %2195  ;;  %2773 = vst.msk [vmem:[%s4359_s18 + $0x3d8] sm:$0xff] %vm914_vm0, %v2194_v3 }
 0x3fc   : > { %2774 = vst.msk [vmem:[%s4359_s18 + $0x3e0] sm:$0xff] %vm914_vm0, %v2196_v41 }
 0x3fe   : > { %v2198_v32 = vpop.permute.xlu1 %2197 }
 0x3ff   : > { %v2200_v6 = vpop.permute.xlu0 %2199  ;;  %2775 = vst.msk [vmem:[%s4359_s18 + $0x3e8] sm:$0xff] %vm914_vm0, %v2198_v32 }
 0x400   : > { %2776 = vst.msk [vmem:[%s4359_s18 + $0x3f0] sm:$0xff] %vm914_vm0, %v2200_v6 }
 0x402   : > { %v2202_v45 = vpop.permute.xlu1 %2201 }
 0x403   : > { %2777 = vst.msk [vmem:[%s4359_s18 + $0x3f8] sm:$0xff] %vm914_vm0, %v2202_v45 }
 0x404 PF: > { %s20_s23 = sadd.s32 1, %s3179_s23   ;;  %s5376_s18 = smov %s3163_s19 }
 0x405   : > { %p17_p1 = scmp.ge.s32.totalorder %s20_s23, 4   ;;  %s5377_s19 = smov %s3167_s20 }
 0x406   : > { %s5378_s20 = smov %s3304_s10  ;;  %s5379_s21 = smov %s3175_s22 }
 0x407   : > { %s5380_s22 = smov %s5382_s6  ;;  %19 = sbr.rel (!%p17_p1) target bundleno = 5 (0x5), region = 109 }
 0x40e   :  { %2348 = vsyncpa [#allocation3], 1 }
 0x40f   :  { %2350 = vsyncpa [#allocation3 + $0x1], 1 }
 0x410   :  { %2351 = vsyncpa [#allocation5], 1 }

</bundles_post_ra>
